<compile_context>
chip_gen: v7x
topology: tpu7x:2x2x1
jax: 0.10.0
libtpu: 0.0.40
codegen_flags: <defaults>
</compile_context>

<pallas_src>
import math
from functools import partial

import jax
import jax.numpy as jnp
from jax.experimental import pallas as pl
from jax.experimental.pallas import tpu as pltpu


SUBLANE = 8        # sublane granularity for M tiles
TM_MAX = 1024      # rows per M tile (8 MiB f32 double-buffered at K=1024)


def _round_up(x, m):
    return ((x + m - 1) // m) * m


def _linear_kernel(x_ref, w_ref, b_ref, o_ref):
    # x_ref: [TM, K]   w_ref: [K, N]   b_ref: [1, N]   o_ref: [TM, N]
    acc = jnp.dot(
        x_ref[...],
        w_ref[...],
        preferred_element_type=jnp.float32,
        precision=jax.lax.Precision.HIGHEST,  # exact-f32 path (matches nn.Linear)
    )
    o_ref[...] = (acc + b_ref[...]).astype(o_ref.dtype)


@jax.jit
def pallas_linear(x2d, w, b):
    """x2d: [B, K], w: [K, N], b: [1, N] -> [B, N]."""
    B, K = x2d.shape
    N = w.shape[1]

    # M tile: as large as reasonable, never larger than the sublane-rounded
    # batch.  The final grid block may be partial; Pallas masks its stores.
    tm = min(TM_MAX, _round_up(B, SUBLANE))
    grid = (pl.cdiv(B, tm),)

    cost = pl.CostEstimate(
        flops=2 * B * K * N,
        transcendentals=0,
        bytes_accessed=(B * K + K * N + N + B * N) * 4,
    )

    return pl.pallas_call(
        _linear_kernel,
        out_shape=jax.ShapeDtypeStruct((B, N), x2d.dtype),
        grid=grid,
        in_specs=[
            # Streamed activation tile: new block each grid step.
            pl.BlockSpec((tm, K), lambda i: (i, 0)),
            # Weight / bias: constant index_map -> DMA'd once, stay resident.
            pl.BlockSpec((K, N), lambda i: (0, 0)),
            pl.BlockSpec((1, N), lambda i: (0, 0)),
        ],
        out_specs=pl.BlockSpec((tm, N), lambda i: (i, 0)),
        compiler_params=pltpu.CompilerParams(
            dimension_semantics=("parallel",),
        ),
        cost_estimate=cost,
    )(x2d, w, b)


class SimpleChangeShape:
    """JAX/Pallas port of the PyTorch SimpleChangeShape module."""

    def __init__(self, original_shape, changed_shape, *, key):
        self.original_shape = tuple(original_shape)
        self.original_shape_len = len(original_shape)
        self.in_dim = int(math.prod(original_shape))
        self.out_dim = int(changed_shape)

        # Deterministic init matching nn.Linear's default:
        # U(-1/sqrt(in_dim), 1/sqrt(in_dim)) for both weight and bias.
        kw, kb = jax.random.split(key)
        bound = 1.0 / math.sqrt(self.in_dim)
        # Stored already transposed: [in_dim, out_dim] so the kernel does x @ W.
        self.weight = jax.random.uniform(
            kw, (self.in_dim, self.out_dim), jnp.float32, -bound, bound)
        self.bias = jax.random.uniform(
            kb, (1, self.out_dim), jnp.float32, -bound, bound)
        # TODO(synk): optionally keep bf16 weight/activation copies for a ~2x
        # HBM-bandwidth win if exact f32 nn.Linear numerics are not required.

    def __call__(self, x):
        batchshape = x.shape[: x.ndim - self.original_shape_len]
        x2d = x.reshape(-1, self.in_dim)
        y = pallas_linear(x2d, self.weight, self.bias)
        return y.reshape(*batchshape, self.out_dim)


if __name__ == "__main__":
    key = jax.random.PRNGKey(0)
    k_x, k_p = jax.random.split(key)

    # original_shape = (4, 16, 16) -> in_dim = 1024, changed_shape = 32
    original_shape = (4, 16, 16)
    changed_shape = 32
    model = SimpleChangeShape(original_shape, changed_shape, key=k_p)

    # Small demo shape (B=2).
    x = jax.random.normal(k_x, (2, 4, 16, 16), jnp.float32)

    y = model(x)
    y = jax.block_until_ready(y)

    # Correctness check against a plain-JAX reference (same exact-f32 path).
    ref = jnp.dot(
        x.reshape(-1, model.in_dim), model.weight,
        precision=jax.lax.Precision.HIGHEST) + model.bias
    ref = ref.reshape(2, changed_shape)
    assert y.shape == (2, changed_shape)
    assert jnp.allclose(y, ref, atol=1e-5, rtol=1e-5)

    print("KERNEL_OK")
</pallas_src>

<mosaic_0001>
module attributes {stable_mosaic.version = 11 : i64} {
  func.func @_linear_kernel(%arg0: i32, %arg1: memref<8x1024xf32, #tpu.memory_space<vmem>>, %arg2: memref<1024x32xf32, #tpu.memory_space<vmem>>, %arg3: memref<1x32xf32, #tpu.memory_space<vmem>>, %arg4: memref<8x32xf32, #tpu.memory_space<vmem>>) attributes {dimension_semantics = [#tpu.dimension_semantics<parallel>], iteration_bounds = array<i64: 1>, scalar_prefetch = 0 : i64, scratch_operands = 0 : i64, tpu.core_type = #tpu.core_type<tc>, window_params = [{transform_indices = @transform_0, window_bounds = array<i64: 8, 1024>}, {pipeline_mode = #tpu.pipeline_mode<synchronous>, transform_indices = @transform_1, window_bounds = array<i64: 1024, 32>}, {pipeline_mode = #tpu.pipeline_mode<synchronous>, transform_indices = @transform_2, window_bounds = array<i64: 1, 32>}, {transform_indices = @transform_3, window_bounds = array<i64: 8, 32>}]} {
    %c0 = arith.constant 0 : index
    %c0_0 = arith.constant 0 : index
    %0 = vector.load %arg1[%c0, %c0_0] : memref<8x1024xf32, #tpu.memory_space<vmem>>, vector<8x1024xf32>
    %c0_1 = arith.constant 0 : index
    %c0_2 = arith.constant 0 : index
    %1 = vector.load %arg2[%c0_1, %c0_2] : memref<1024x32xf32, #tpu.memory_space<vmem>>, vector<1024x32xf32>
    %cst = arith.constant dense<0.000000e+00> : vector<8x32xf32>
    %2 = tpu.matmul %0, %1, %cst {dimension_numbers = #tpu.dot_dimension_numbers<[1], [0], [0], [1], [0, 0, 1, 1], [], []>, precision = #tpu.contract_precision<fp32>} : vector<8x1024xf32>, vector<1024x32xf32>, vector<8x32xf32> -> vector<8x32xf32>
    %c0_3 = arith.constant 0 : index
    %c0_4 = arith.constant 0 : index
    %3 = vector.load %arg3[%c0_3, %c0_4] : memref<1x32xf32, #tpu.memory_space<vmem>>, vector<1x32xf32>
    %4 = vector.broadcast %3 : vector<1x32xf32> to vector<8x32xf32>
    %5 = arith.addf %2, %4 : vector<8x32xf32>
    %c0_5 = arith.constant 0 : index
    %c0_6 = arith.constant 0 : index
    %6 = vector.load %arg4[%c0_5, %c0_6] : memref<8x32xf32, #tpu.memory_space<vmem>>, vector<8x32xf32>
    tpu.vector_store %arg4[%c0_5, %c0_6], %5 {strides = array<i32>} : memref<8x32xf32, #tpu.memory_space<vmem>>, vector<8x32xf32>,
    return
  }
  func.func @transform_0(%arg0: i32) -> (i32, i32) {
    %c0_i32 = arith.constant 0 : i32
    %c0_i32_0 = arith.constant 0 : i32
    return %arg0, %c0_i32 : i32, i32
  }
  func.func @transform_1(%arg0: i32) -> (i32, i32) {
    %c0_i32 = arith.constant 0 : i32
    %c0_i32_0 = arith.constant 0 : i32
    %c0_i32_1 = arith.constant 0 : i32
    return %c0_i32, %c0_i32_0 : i32, i32
  }
  func.func @transform_2(%arg0: i32) -> (i32, i32) {
    %c0_i32 = arith.constant 0 : i32
    %c0_i32_0 = arith.constant 0 : i32
    %c0_i32_1 = arith.constant 0 : i32
    return %c0_i32, %c0_i32_0 : i32, i32
  }
  func.func @transform_3(%arg0: i32) -> (i32, i32) {
    %c0_i32 = arith.constant 0 : i32
    %c0_i32_0 = arith.constant 0 : i32
    return %arg0, %c0_i32 : i32, i32
  }
}

</mosaic_0001>

<bundles_post_ra>
// kernel: pallas_linear.1
= control target key start
LH: loop header
LB: loop body
LE: loop exit
PB: predicated region body
PF: predicated region fallthrough
CT: control target
= control target key end

     0   :  { %8 = vsyncpa [#allocation3], 0  ;;  %v5361_v25 = vmov 1983009808   ;;  %vm3694_vm0 = vcmask 261120   ;;  %s8417_s0 = inlined_call_operand.vmem [shape: f32[2,1024], index: 0, kind: input, shape index: {}]   ;;  %s8418_s1 = inlined_call_operand.vmem [shape: f32[1024,32], index: 1, kind: input, shape index: {}]   ;;  %s8419_s2 = inlined_call_operand.vmem [shape: f32[1,32], index: 2, kind: input, shape index: {}]   ;;  %s8420_s3 = inlined_call_operand.hbm [shape: f32[2,32], index: 3, kind: output, shape index: {}]  }
   0x1   :  { %v39_v0 = vld [vmem:[%s8418_s1 + $0x80] sm:$0xff]  ;;  %v40_v1 = vld [vmem:[%s8418_s1 + $0x88] sm:$0xff]  ;;  %v41_v6 = vld [vmem:[%s8418_s1 + $0x90] sm:$0xff]  ;;  %v5429_v26 = vunpack.c.l.s4 %v5361_v25 }
   0x2   :  { %v295_v2 = vand.u32 4294901760, %v39_v0  ;;  %v298_v3 = vand.u32 4294901760, %v40_v1  ;;  %v23_v4 = vld [vmem:[%s8418_s1] sm:$0xff]  ;;  %v24_v5 = vld [vmem:[%s8418_s1 + $0x8] sm:$0xff]  ;;  %v42_v9 = vld [vmem:[%s8418_s1 + $0x98] sm:$0xff]  ;;  %v301_v10 = vand.u32 4294901760, %v41_v6 }
   0x3   :  { %v247_v7 = vand.u32 4294901760, %v23_v4  ;;  %v250_v8 = vand.u32 4294901760, %v24_v5  ;;  %v25_v11 = vld [vmem:[%s8418_s1 + $0x10] sm:$0xff]  ;;  %v26_v12 = vld [vmem:[%s8418_s1 + $0x18] sm:$0xff]  ;;  %v304_v15 = vand.u32 4294901760, %v42_v9  ;;  %v43_v18 = vld [vmem:[%s8418_s1 + $0xa0] sm:$0xff] }
   0x4   :  { %v5409_v14 = vpack.c.bf16 %v298_v3, %v295_v2  ;;  %v253_v16 = vand.u32 4294901760, %v25_v11  ;;  %v256_v17 = vand.u32 4294901760, %v26_v12  ;;  %v44_v19 = vld [vmem:[%s8418_s1 + $0xa8] sm:$0xff]  ;;  %v27_v23 = vld [vmem:[%s8418_s1 + $0x20] sm:$0xff]  ;;  %v5434_v28 = vsub.f32 %v41_v6, %v301_v10  ;;  %v45_v39 = vld [vmem:[%s8418_s1 + $0xb0] sm:$0xff] }
   0x5   :  { %v5417_v20 = vpack.c.bf16 %v250_v8, %v247_v7  ;;  %v5419_v21 = vsub.f32 %v23_v4, %v247_v7  ;;  %v5421_v22 = vsub.f32 %v24_v5, %v250_v8  ;;  %v28_v24 = vld [vmem:[%s8418_s1 + $0x28] sm:$0xff]  ;;  %v5432_v27 = vpack.c.bf16 %v304_v15, %v301_v10  ;;  %v46_v44 = vld [vmem:[%s8418_s1 + $0xb8] sm:$0xff]  ;;  %v29_v53 = vld [vmem:[%s8418_s1 + $0x30] sm:$0xff] }
   0x6   :  { %4554 = vmatprep.subr.bf16.mxu0 %v5409_v14  ;;  %v5436_v29 = vsub.f32 %v42_v9, %v304_v15  ;;  %v5438_v30 = vpack.c.bf16 %v256_v17, %v253_v16  ;;  %v5441_v31 = vsub.f32 %v25_v11, %v253_v16  ;;  %v307_v32 = vand.u32 4294901760, %v43_v18  ;;  %v30_v54 = vld [vmem:[%s8418_s1 + $0x38] sm:$0xff]  ;;  %v47_v7 = vld [vmem:[%s8418_s1 + $0xc0] sm:$0xff] }
   0x7   :  { %4556 = vmatpush3.bf16.msra.mxu0 %v5417_v20  ;;  %v310_v33 = vand.u32 4294901760, %v44_v19  ;;  %v5443_v34 = vsub.f32 %v39_v0, %v295_v2  ;;  %v5446_v35 = vsub.f32 %v40_v1, %v298_v3  ;;  %v259_v36 = vand.u32 4294901760, %v27_v23 }
   0x8   :  { %4558 = vmatprep.subr.bf16.mxu0 %v5432_v27  ;;  %v262_v37 = vand.u32 4294901760, %v28_v24  ;;  %v8436_v38 = vand.u32 4294901760, %v5419_v21  ;;  %v5452_v40 = vsub.f32 %v26_v12, %v256_v17  ;;  %v5456_v42 = vsub.f32 %v43_v18, %v307_v32  ;;  %v48_v12 = vld [vmem:[%s8418_s1 + $0xc8] sm:$0xff] }
   0x9   :  { %v5454_v41 = vpack.c.bf16 %v310_v33, %v307_v32  ;;  %v8439_v43 = vand.u32 4294901760, %v5443_v34  ;;  %v5462_v45 = vsub.f32 %v44_v19, %v310_v33  ;;  %v8438_v46 = vand.u32 4294901760, %v5446_v35  ;;  %v31_v19 = vld [vmem:[%s8418_s1 + $0x40] sm:$0xff] }
   0xa   :  { %v5465_v47 = vpack.c.bf16 %v262_v37, %v259_v36  ;;  %v5467_v48 = vsub.f32 %v27_v23, %v259_v36  ;;  %v362_v50 = vsub.f32 %v5419_v21, %v8436_v38  ;;  %v8434_v51 = vand.u32 4294901760, %v5421_v22 }
   0xb   :  { %4560 = vmatpush3.bf16.msra.mxu0 %v5438_v30  ;;  %v474_v49 = vsub.f32 %v5443_v34, %v8439_v43  ;;  %v313_v52 = vand.u32 4294901760, %v45_v39  ;;  %v481_v55 = vsub.f32 %v5446_v35, %v8438_v46  ;;  %v316_v56 = vand.u32 4294901760, %v46_v44 }
   0xc   :  { %4562 = vmatprep.subr.bf16.mxu0 %v5454_v41  ;;  %v8432_v57 = vand.u32 4294901760, %v5434_v28  ;;  %v8431_v58 = vand.u32 4294901760, %v5436_v29  ;;  %v5489_v60 = vsub.f32 %v28_v24, %v262_v37  ;;  %v363_v61 = vand.u32 4294901760, %v362_v50 }
   0xd   :  { %v475_v59 = vand.u32 4294901760, %v474_v49  ;;  %v369_v62 = vsub.f32 %v5421_v22, %v8434_v51  ;;  %v482_v63 = vand.u32 4294901760, %v481_v55  ;;  %v5494_v0 = vpack.c.bf16 %v316_v56, %v313_v52  ;;  %v49_v55 = vld [vmem:[%s8418_s1 + $0xd0] sm:$0xff] }
   0xe   :  { %v5496_v1 = vsub.f32 %v45_v39, %v313_v52  ;;  %v488_v2 = vsub.f32 %v5434_v28, %v8432_v57  ;;  %v495_v4 = vsub.f32 %v5436_v29, %v8431_v58  ;;  %v265_v5 = vand.u32 4294901760, %v29_v53 }
   0xf   :  { %4564 = vmatpush3.bf16.msra.mxu0 %v5465_v47  ;;  %v370_v3 = vand.u32 4294901760, %v369_v62  ;;  %v268_v6 = vand.u32 4294901760, %v30_v54  ;;  %v4585_v8 = vpack.c.bf16 %v482_v63, %v475_v59  ;;  %v8429_v10 = vand.u32 4294901760, %v5441_v31  ;;  %v50_v62 = vld [vmem:[%s8418_s1 + $0xd8] sm:$0xff] }
  0x10   :  { %4566 = vmatprep.subr.bf16.mxu0 %v5494_v0  ;;  %v489_v9 = vand.u32 4294901760, %v488_v2  ;;  %v8428_v11 = vand.u32 4294901760, %v5452_v40  ;;  %v5514_v16 = vsub.f32 %v46_v44, %v316_v56  ;;  %v496_v17 = vand.u32 4294901760, %v495_v4  ;;  %v32_v44 = vld [vmem:[%s8418_s1 + $0x48] sm:$0xff] }
  0x11   :  { %v4587_v15 = vpack.c.bf16 %v370_v3, %v363_v61  ;;  %v5516_v18 = vpack.c.bf16 %v268_v6, %v265_v5  ;;  %4586 = vmatprep.subr.bf16.mxu1 %v4585_v8  ;;  %v5521_v23 = vsub.f32 %v29_v53, %v265_v5  ;;  %v376_v24 = vsub.f32 %v5441_v31, %v8429_v10 }
  0x12   :  { %v383_v25 = vsub.f32 %v5452_v40, %v8428_v11  ;;  %v319_v32 = vand.u32 4294901760, %v47_v7  ;;  %v4589_v33 = vpack.c.bf16 %v496_v17, %v489_v9  ;;  %v322_v36 = vand.u32 4294901760, %v48_v12 }
  0x13   :  { %4588 = vmatpush3.bf16.msra.mxu1 %v4587_v15  ;;  %4568 = vmatpush3.bf16.msra.mxu0 %v5516_v18  ;;  %v8426_v37 = vand.u32 4294901760, %v5456_v42  ;;  %v8424_v39 = vand.u32 4294901760, %v5462_v45  ;;  %v5535_v49 = vsub.f32 %v30_v54, %v268_v6  ;;  %v377_v50 = vand.u32 4294901760, %v376_v24  ;;  %v33_v24 = vld [vmem:[%s8418_s1 + $0x50] sm:$0xff] }
  0x14   :  { %v384_v52 = vand.u32 4294901760, %v383_v25  ;;  %v271_v53 = vand.u32 4294901760, %v31_v19  ;;  %4590 = vmatprep.subr.bf16.mxu1 %v4589_v33  ;;  %v5540_v56 = vpack.c.bf16 %v322_v36, %v319_v32  ;;  %v5542_v59 = vsub.f32 %v47_v7, %v319_v32  ;;  %v34_v25 = vld [vmem:[%s8418_s1 + $0x58] sm:$0xff] }
  0x15   :  { %v502_v61 = vsub.f32 %v5456_v42, %v8426_v37  ;;  %v509_v54 = vsub.f32 %v5462_v45, %v8424_v39  ;;  %v5553_v2 = vsub.f32 %v48_v12, %v322_v36  ;;  %v274_v3 = vand.u32 4294901760, %v32_v44 }
  0x16   :  { %v4591_v63 = vpack.c.bf16 %v384_v52, %v377_v50  ;;  %v8423_v4 = vand.u32 4294901760, %v5467_v48  ;;  %4570 = vmatprep.subr.bf16.mxu0 %v5540_v56  ;;  %v8422_v7 = vand.u32 4294901760, %v5489_v60  ;;  %v325_v8 = vand.u32 4294901760, %v49_v55  ;;  %v51_v50 = vld [vmem:[%s8418_s1 + $0xe0] sm:$0xff] }
  0x17   :  { %v503_v5 = vand.u32 4294901760, %v502_v61  ;;  %v510_v6 = vand.u32 4294901760, %v509_v54  ;;  %v5558_v9 = vpack.c.bf16 %v274_v3, %v271_v53  ;;  %v5560_v15 = vsub.f32 %v31_v19, %v271_v53 }
  0x18   :  { %4592 = vmatpush3.bf16.msra.mxu1 %v4591_v63  ;;  %v390_v12 = vsub.f32 %v5467_v48, %v8423_v4  ;;  %v328_v17 = vand.u32 4294901760, %v50_v62  ;;  %v5571_v33 = vsub.f32 %v32_v44, %v274_v3  ;;  %v397_v19 = vsub.f32 %v5489_v60, %v8422_v7 }
  0x19   :  { %v4593_v32 = vpack.c.bf16 %v510_v6, %v503_v5  ;;  %v8421_v36 = vand.u32 4294901760, %v5496_v1  ;;  %4572 = vmatpush3.bf16.msra.mxu0 %v5558_v9  ;;  %v5583_v61 = vsub.f32 %v49_v55, %v325_v8  ;;  %v8425_v44 = vand.u32 4294901760, %v5514_v16 }
  0x1a   :  { %v391_v52 = vand.u32 4294901760, %v390_v12  ;;  %v5581_v53 = vpack.c.bf16 %v328_v17, %v325_v8  ;;  %v398_v54 = vand.u32 4294901760, %v397_v19  ;;  %v277_v3 = vand.u32 4294901760, %v33_v24 }
  0x1b   :  { %4594 = vmatprep.subr.bf16.mxu1 %v4593_v32  ;;  %v516_v63 = vsub.f32 %v5496_v1, %v8421_v36  ;;  %v280_v5 = vand.u32 4294901760, %v34_v25  ;;  %v5590_v6 = vsub.f32 %v50_v62, %v328_v17  ;;  %v523_v12 = vsub.f32 %v5514_v16, %v8425_v44  ;;  %v52_v32 = vld [vmem:[%s8418_s1 + $0xe8] sm:$0xff]  ;;  %v35_v62 = vld [vmem:[%s8418_s1 + $0x60] sm:$0xff] }
  0x1c   :  { %8655 = vst [vmem:[#allocation5_spill] sm:$0xff] %v5581_v53  ;;  %4574 = vmatprep.subr.bf16.mxu0 %v5581_v53  ;;  %v8427_v55 = vand.u32 4294901760, %v5521_v23  ;;  %v8430_v8 = vand.u32 4294901760, %v5535_v49  ;;  %v4595_v19 = vpack.c.bf16 %v398_v54, %v391_v52  ;;  %v331_v4 = vand.u32 4294901760, %v51_v50 }
  0x1d   :  { %v517_v36 = vand.u32 4294901760, %v516_v63  ;;  %v5600_v7 = vpack.c.bf16 %v280_v5, %v277_v3  ;;  %v524_v17 = vand.u32 4294901760, %v523_v12  ;;  %v5605_v39 = vsub.f32 %v33_v24, %v277_v3  ;;  %v36_v24 = vld [vmem:[%s8418_s1 + $0x68] sm:$0xff] }
  0x1e   :  { %v404_v44 = vsub.f32 %v5521_v23, %v8427_v55  ;;  %v411_v37 = vsub.f32 %v5535_v49, %v8430_v8  ;;  %4596 = vmatpush3.bf16.msra.mxu1 %v4595_v19  ;;  %v5614_v52 = vsub.f32 %v34_v25, %v280_v5  ;;  %v334_v54 = vand.u32 4294901760, %v52_v32  ;;  %v53_v19 = vld [vmem:[%s8418_s1 + $0xf0] sm:$0xff] }
  0x1f   :  { %8656 = vst [vmem:[#allocation6_spill] sm:$0xff] %v5600_v7  ;;  %4576 = vmatpush3.bf16.msra.mxu0 %v5600_v7  ;;  %v8433_v63 = vand.u32 4294901760, %v5542_v59  ;;  %v8435_v12 = vand.u32 4294901760, %v5553_v2  ;;  %v4597_v3 = vpack.c.bf16 %v524_v17, %v517_v36  ;;  %v283_v10 = vand.u32 4294901760, %v35_v62 }
  0x20   :  { %v405_v55 = vand.u32 4294901760, %v404_v44  ;;  %v412_v11 = vand.u32 4294901760, %v411_v37  ;;  %v5624_v8 = vpack.c.bf16 %v334_v54, %v331_v4  ;;  %v5626_v25 = vsub.f32 %v51_v50, %v331_v4  ;;  %v54_v37 = vld [vmem:[%s8418_s1 + $0xf8] sm:$0xff] }
  0x21   :  { %v530_v5 = vsub.f32 %v5542_v59, %v8433_v63  ;;  %v537_v58 = vsub.f32 %v5553_v2, %v8435_v12  ;;  %4598 = vmatprep.subr.bf16.mxu1 %v4597_v3  ;;  %v5637_v44 = vsub.f32 %v52_v32, %v334_v54  ;;  %v286_v17 = vand.u32 4294901760, %v36_v24  ;;  %v37_v32 = vld [vmem:[%s8418_s1 + $0x70] sm:$0xff] }
  0x22   :  { %8657 = vst [vmem:[#allocation7_spill] sm:$0xff] %v5624_v8  ;;  %v4599_v36 = vpack.c.bf16 %v412_v11, %v405_v55  ;;  %v8437_v4 = vand.u32 4294901760, %v5560_v15  ;;  %4578 = vmatprep.subr.bf16.mxu0 %v5624_v8  ;;  %v8440_v63 = vand.u32 4294901760, %v5571_v33  ;;  %v337_v51 = vand.u32 4294901760, %v53_v19 }
  0x23   :  { %v531_v50 = vand.u32 4294901760, %v530_v5  ;;  %v538_v57 = vand.u32 4294901760, %v537_v58  ;;  %v5642_v12 = vpack.c.bf16 %v286_v17, %v283_v10  ;;  %v5644_v38 = vsub.f32 %v35_v62, %v283_v10  ;;  %v38_v58 = vld [vmem:[%s8418_s1 + $0x78] sm:$0xff] }
  0x24   :  { %4600 = vmatpush3.bf16.msra.mxu1 %v4599_v36  ;;  %v418_v11 = vsub.f32 %v5560_v15, %v8437_v4  ;;  %v340_v55 = vand.u32 4294901760, %v54_v37  ;;  %v5655_v3 = vsub.f32 %v36_v24, %v286_v17  ;;  %v425_v10 = vsub.f32 %v5571_v33, %v8440_v63 }
  0x25   :  { %8658 = vst [vmem:[#allocation8_spill] sm:$0xff] %v5642_v12  ;;  %v4601_v54 = vpack.c.bf16 %v538_v57, %v531_v50  ;;  %v8441_v62 = vand.u32 4294901760, %v5583_v61  ;;  %4580 = vmatpush3.bf16.msra.mxu0 %v5642_v12  ;;  %v5664_v4 = vsub.f32 %v53_v19, %v337_v51  ;;  %v8446_v46 = vand.u32 4294901760, %v5590_v6 }
  0x26   :  { %v419_v5 = vand.u32 4294901760, %v418_v11  ;;  %v5662_v36 = vpack.c.bf16 %v340_v55, %v337_v51  ;;  %v426_v43 = vand.u32 4294901760, %v425_v10  ;;  %v289_v24 = vand.u32 4294901760, %v37_v32 }
  0x27   :  { %4602 = vmatprep.subr.bf16.mxu1 %v4601_v54  ;;  %v544_v57 = vsub.f32 %v5583_v61, %v8441_v62  ;;  %v292_v17 = vand.u32 4294901760, %v38_v58  ;;  %v5671_v50 = vsub.f32 %v54_v37, %v340_v55  ;;  %v551_v11 = vsub.f32 %v5590_v6, %v8446_v46 }
  0x28   :  { %8659 = vst [vmem:[#allocation9_spill] sm:$0xff] %v5662_v36  ;;  %4582 = vmatprep.subr.bf16.mxu0 %v5662_v36  ;;  %v8445_v51 = vand.u32 4294901760, %v5605_v39  ;;  %v8444_v19 = vand.u32 4294901760, %v5614_v52  ;;  %v4603_v54 = vpack.c.bf16 %v426_v43, %v419_v5  ;;  %v172_v62 = vunpack.c.0.s8 %v5429_v26  ;;  %v5325_v43 = vld [vmem:[%s8417_s0] ss:$16 sps:$4 sm:$0xff]  }
  0x29   :  { %8660 = vst [vmem:[#allocation10_spill] sm:$0xff] %v5671_v50  ;;  %v545_v10 = vand.u32 4294901760, %v544_v57  ;;  %v5678_v63 = vpack.c.bf16 %v292_v17, %v289_v24  ;;  %v552_v13 = vand.u32 4294901760, %v551_v11  ;;  %v5681_v12 = vsub.f32 %v37_v32, %v289_v24  ;;  %v5328_v26 = vld [vmem:[%s8417_s0 + $0x20] ss:$16 sps:$4 sm:$0xff]  }
  0x2a   :  { %v432_v37 = vsub.f32 %v5605_v39, %v8445_v51  ;;  %v439_v55 = vsub.f32 %v5614_v52, %v8444_v19  ;;  %4604 = vmatpush3.bf16.msra.mxu1 %v4603_v54  ;;  %v8662_v32 = vlaneseq  ;;  %v8455_v57 = vand.u32 4294901760, %v5626_v25 }
  0x2b   :  { %8661 = vst [vmem:[#allocation11_spill] sm:$0xff] %v5678_v63  ;;  %4584 = vmatpush3.bf16.msra.mxu0 %v5678_v63  ;;  %v8457_v24 = vand.u32 4294901760, %v5637_v44  ;;  %v4617_v11 = vpack.c.bf16 %v5446_v35, %v5443_v34  ;;  %v4605_v19 = vpack.c.bf16 %v552_v13, %v545_v10  ;;  %v8456_v54 = vand.u32 4294901760, %v5644_v38 }
  0x2c   :  { %v174_v5 = vshrl.u32 %v8662_v32, 7  ;;  %v433_v51 = vand.u32 4294901760, %v432_v37  ;;  %v440_v46 = vand.u32 4294901760, %v439_v55  ;;  %v558_v63 = vsub.f32 %v5626_v25, %v8455_v57 }
  0x2d   :  { %v565_v32 = vsub.f32 %v5637_v44, %v8457_v24  ;;  %4618 = vmatprep.subr.bf16.mxu0 %v4617_v11  ;;  %v8460_v8 = vand.u32 4294901760, %v5655_v3  ;;  %4606 = vmatprep.subr.bf16.mxu1 %v4605_v19  ;;  %v5711_v7 = vsub.f32 %v38_v58, %v292_v17  ;;  %v571_v10 = vand.u32 4294901760, %v5664_v4 }
  0x2e   :  { %v5702_v36 = vsub.s32 %v172_v62, %v174_v5  ;;  %v4607_v13 = vpack.c.bf16 %v440_v46, %v433_v51  ;;  %v446_v62 = vsub.f32 %v5644_v38, %v8456_v54  ;;  %v559_v5 = vand.u32 4294901760, %v558_v63 }
  0x2f   :  { %v566_v57 = vand.u32 4294901760, %v565_v32  ;;  %v453_v58 = vsub.f32 %v5655_v3, %v8460_v8  ;;  %v572_v46 = vsub.f32 %v5664_v4, %v571_v10  ;;  %v578_v17 = vand.u32 4294901760, %v5671_v50 }
  0x30   :  { %8663 = vst [vmem:[#allocation12_spill] sm:$0xff] %v5702_v36  ;;  %v176_v37 = vrot.slane %v5325_v43, %v5702_v36  ;;  %v190_v55 = vrot.slane %v5328_v26, %v5702_v36  ;;  %4608 = vmatpush3.bf16.msra.mxu1 %v4607_v13  ;;  %v447_v11 = vand.u32 4294901760, %v446_v62  ;;  %v459_v63 = vand.u32 4294901760, %v5681_v12 }
  0x31   :  { %v4609_v19 = vpack.c.bf16 %v566_v57, %v559_v5  ;;  %v454_v24 = vand.u32 4294901760, %v453_v58  ;;  %v573_v53 = vand.u32 4294901760, %v572_v46  ;;  %v579_v43 = vsub.f32 %v5671_v50, %v578_v17 }
  0x32   :  { %v199_v51 = vcombine.high %v176_v37, %v190_v55  ;;  %v198_v54 = vcombine.low %v176_v37, %v190_v55  ;;  %v466_v13 = vand.u32 4294901760, %v5711_v7  ;;  %v460_v36 = vsub.f32 %v5681_v12, %v459_v63 }
  0x33   :  { %4610 = vmatprep.subr.bf16.mxu1 %v4609_v19  ;;  %v4611_v62 = vpack.c.bf16 %v454_v24, %v447_v11  ;;  %v580_v8 = vand.u32 4294901760, %v579_v43  ;;  %v4621_v43 = vpack.c.bf16 %v5436_v29, %v5434_v28 }
  0x34   :  { %v5726_v26 = vand.u32 4294901760, %v199_v51  ;;  %v5728_v32 = vand.u32 4294901760, %v198_v54  ;;  %v467_v55 = vsub.f32 %v5711_v7, %v466_v13  ;;  %v461_v58 = vand.u32 4294901760, %v460_v36 }
  0x35   :  { %4612 = vmatpush3.bf16.msra.mxu1 %v4611_v62  ;;  %v4613_v5 = vpack.c.bf16 %v580_v8, %v573_v53  ;;  %v8667_v53 = vand.u32 4294901760, %v5443_v34  ;;  %v8668_v8 = vand.u32 4294901760, %v5446_v35  ;;  %v8669_v62 = vand.u32 4294901760, %v5419_v21 }
  0x36   :  { %8664 = vst [vmem:[#allocation13_spill] sm:$0xff] %v5726_v26  ;;  %8665 = vst [vmem:[#allocation14_spill] sm:$0xff] %v5728_v32  ;;  %v343_v57 = vsub.f32 %v199_v51, %v5726_v26  ;;  %v5734_v37 = vsub.f32 %v198_v54, %v5728_v32  ;;  %583 = vmatprep.mubr.f32.mxu1 %v5726_v26  ;;  %v468_v50 = vand.u32 4294901760, %v467_v55  ;;  %v8670_v55 = vand.u32 4294901760, %v5421_v22 }
  0x37   :  { %4614 = vmatprep.subr.bf16.mxu1 %v4613_v5  ;;  %v4619_v54 = vpack.c.bf16 %v5421_v22, %v5419_v21  ;;  %v5750_v36 = vpack.c.bf16 %v8668_v8, %v8667_v53  ;;  %v8672_v26 = vand.u32 4294901760, %v5436_v29  ;;  %v8673_v34 = vand.u32 4294901760, %v5441_v31 }
  0x38   :  { %8666 = vst [vmem:[#allocation15_spill] sm:$0xff] %v5734_v37  ;;  %v344_v46 = vand.u32 4294901760, %v343_v57  ;;  %v8464_v19 = vand.u32 4294901760, %v5734_v37  ;;  %v4615_v51 = vpack.c.bf16 %v468_v50, %v461_v58  ;;  %v5756_v5 = vpack.c.bf16 %v8670_v55, %v8669_v62 }
  0x39   :  { %v8671_v58 = vand.u32 4294901760, %v5434_v28  ;;  %v8674_v35 = vand.u32 4294901760, %v5452_v40  ;;  %v8675_v21 = vand.u32 4294901760, %v5456_v42  ;;  %v8676_v22 = vand.u32 4294901760, %v5462_v45 }
  0x3a   :  { %v345_v24 = vsub.f32 %v343_v57, %v344_v46  ;;  %v351_v11 = vsub.f32 %v5734_v37, %v8464_v19  ;;  %4616 = vmatpush3.bf16.msra.mxu1 %v4615_v51  ;;  %v8677_v28 = vand.u32 4294901760, %v5467_v48  ;;  %v8678_v29 = vand.u32 4294901760, %v5489_v60 }
  0x3b   :  { %v5762_v37 = vpack.c.bf16 %v8672_v26, %v8671_v58  ;;  %v5768_v53 = vpack.c.bf16 %v8674_v35, %v8673_v34  ;;  %4650 = vmatprep.subr.bf16.mxu1 %v5409_v14  ;;  %v8680_v51 = vand.u32 4294901760, %v5514_v16  ;;  %v8682_v62 = vand.u32 4294901760, %v5521_v23 }
  0x3c   :  { %v346_v19 = vand.u32 4294901760, %v345_v24  ;;  %v352_v50 = vand.u32 4294901760, %v351_v11  ;;  %v5775_v24 = vpack.c.bf16 %v8676_v22, %v8675_v21  ;;  %v5781_v26 = vpack.c.bf16 %v8678_v29, %v8677_v28 }
  0x3d   :  { %v8679_v11 = vand.u32 4294901760, %v5496_v1  ;;  %v8683_v55 = vand.u32 4294901760, %v5535_v49  ;;  %v8684_v34 = vand.u32 4294901760, %v5542_v59  ;;  %v8685_v35 = vand.u32 4294901760, %v5553_v2  ;;  %585 = vmatmul.mubr.f32.vlgmr.msra.gmra.mrb[0].mxu1 %v5728_v32 }
  0x3e   :  { %347 = vmatprep.mubr.f32.mxu0 %v346_v19  ;;  %v8686_v22 = vand.u32 4294901760, %v5560_v15  ;;  %v8687_v28 = vand.u32 4294901760, %v5571_v33  ;;  %v8691_v19 = vand.u32 4294901760, %v5605_v39  ;;  %4652 = vmatpush3.bf16.msra.mxu1 %v5417_v20 }
  0x3f   :  { %v5787_v8 = vpack.c.bf16 %v8680_v51, %v8679_v11  ;;  %v5793_v58 = vpack.c.bf16 %v8683_v55, %v8682_v62  ;;  %v5799_v21 = vpack.c.bf16 %v8685_v35, %v8684_v34  ;;  %v8688_v11 = vand.u32 4294901760, %v5583_v61  ;;  %353 = vmatmul.mubr.f32.vlgmr.msra.gmra.mrb[0].mxu0 %v352_v50  ;;  %4654 = vmatprep.subr.bf16.mxu1 %v5432_v27 }
  0x40   :  { %v5805_v29 = vpack.c.bf16 %v8687_v28, %v8686_v22  ;;  %v8689_v51 = vand.u32 4294901760, %v5590_v6  ;;  %v8692_v62 = vand.u32 4294901760, %v5614_v52  ;;  %v8693_v34 = vand.u32 4294901760, %v5626_v25  ;;  %4620 = vmatpush3.bf16.msra.mxu0 %v4619_v54  ;;  %720 = vmatprep.mubr.f32.mxu0 %v343_v57  ;;  %v73_v57 = vld [vmem:[%s8418_s1 + $0x190] sm:$0xff] }
  0x41   :  { %8681 = vst [vmem:[#allocation16_spill] sm:$0xff] %v5787_v8  ;;  %v8694_v35 = vand.u32 4294901760, %v5637_v44  ;;  %v8695_v28 = vand.u32 4294901760, %v5644_v38  ;;  %v4623_v50 = vpack.c.bf16 %v5452_v40, %v5441_v31  ;;  %4622 = vmatprep.subr.bf16.mxu0 %v4621_v43  ;;  %827 = vmatprep.mubr.f32.mxu1 %v344_v46  ;;  %v4629_v31 = vpack.c.bf16 %v5514_v16, %v5496_v1  ;;  %v74_v46 = vld [vmem:[%s8418_s1 + $0x198] sm:$0xff] }
  0x42   :  { %v5811_v8 = vpack.c.bf16 %v8689_v51, %v8688_v11  ;;  %v5817_v55 = vpack.c.bf16 %v8692_v62, %v8691_v19  ;;  %v8696_v11 = vand.u32 4294901760, %v5655_v3  ;;  %v5837_v19 = vpack.c.bf16 %v466_v13, %v459_v63  ;;  %4656 = vmatpush3.bf16.msra.mxu1 %v5438_v30  ;;  %v8700_v13 = vld [vmem:[#allocation7_spill] sm:$0xff] }
  0x43   :  { %v5824_v22 = vpack.c.bf16 %v8694_v35, %v8693_v34  ;;  %v4625_v62 = vpack.c.bf16 %v5462_v45, %v5456_v42  ;;  %4658 = vmatprep.subr.bf16.mxu1 %v5454_v41  ;;  %v4631_v40 = vpack.c.bf16 %v5535_v49, %v5521_v23  ;;  %v4633_v42 = vpack.c.bf16 %v5553_v2, %v5542_v59  ;;  %v5872_v59 = vld [vmem:[%s8418_s1 + $0x100] sm:$0xff] }
  0x44   :  { %8690 = vst [vmem:[#allocation17_spill] sm:$0xff] %v5811_v8  ;;  %v5830_v51 = vpack.c.bf16 %v8696_v11, %v8695_v28  ;;  %v5832_v8 = vpack.c.bf16 %v578_v17, %v571_v10  ;;  %4624 = vmatpush3.bf16.msra.mxu0 %v4623_v50  ;;  %v4627_v10 = vpack.c.bf16 %v5489_v60, %v5467_v48  ;;  %v71_v48 = vld [vmem:[%s8418_s1 + $0x180] sm:$0xff]  ;;  %v72_v60 = vld [vmem:[%s8418_s1 + $0x188] sm:$0xff]  ;;  %v8698_v17 = vld [vmem:[#allocation6_spill] sm:$0xff]  ;;  %v1163_v11 = vand.u32 4294901760, %v73_v57 }
  0x45   :  { %4626 = vmatprep.subr.bf16.mxu0 %v4625_v62  ;;  %v4635_v45 = vpack.c.bf16 %v5571_v33, %v5560_v15  ;;  %v4637_v1 = vpack.c.bf16 %v5590_v6, %v5583_v61  ;;  %v1157_v16 = vand.u32 4294901760, %v71_v48  ;;  %v1160_v23 = vand.u32 4294901760, %v72_v60  ;;  %v8697_v15 = vld [vmem:[#allocation5_spill] sm:$0xff]  ;;  %v8702_v35 = vld [vmem:[#allocation8_spill] sm:$0xff] }
  0x46   :  { %4660 = vmatpush3.bf16.msra.mxu1 %v5465_v47  ;;  %v4639_v49 = vpack.c.bf16 %v5614_v52, %v5605_v39  ;;  %v4641_v2 = vpack.c.bf16 %v5637_v44, %v5626_v25  ;;  %v5880_v33 = vld [vmem:[%s8418_s1 + $0x108] sm:$0xff]  ;;  %v1109_v6 = vand.u32 4294901760, %v5872_v59  ;;  %v4643_v52 = vpack.c.bf16 %v5655_v3, %v5644_v38  ;;  %v8699_v44 = vld [vmem:[#allocation10_spill] sm:$0xff] }
  0x47   :  { %4662 = vmatprep.subr.bf16.mxu1 %v5494_v0  ;;  %v5882_v61 = vsub.f32 %v71_v48, %v1157_v16  ;;  %v5884_v39 = vsub.f32 %v72_v60, %v1160_v23  ;;  %v1112_v25 = vand.u32 4294901760, %v5880_v33  ;;  %v4645_v63 = vpack.c.bf16 %v8699_v44, %v5664_v4  ;;  %v5903_v38 = vld [vmem:[%s8418_s1 + $0x110] sm:$0xff]  ;;  %v5911_v4 = vld [vmem:[%s8418_s1 + $0x118] sm:$0xff]  ;;  %v8703_v62 = vld [vmem:[#allocation9_spill] sm:$0xff] }
  0x48   :  { %4628 = vmatpush3.bf16.msra.mxu0 %v4627_v10  ;;  %v5906_v3 = vsub.f32 %v5872_v59, %v1109_v6  ;;  %8701 = vst [vmem:[#allocation5_spill] sm:$0xff] %v5911_v4  ;;  %v4647_v34 = vpack.c.bf16 %v5711_v7, %v5681_v12  ;;  %v1166_v50 = vand.u32 4294901760, %v74_v46  ;;  %v8470_v10 = vand.u32 4294901760, %v5903_v38  ;;  %v5932_v7 = vld [vmem:[%s8418_s1 + $0x1a8] sm:$0xff]  ;;  %v8707_v60 = vld [vmem:[#allocation11_spill] sm:$0xff]  ;;  %v5969_v44 = vld [vmem:[%s8418_s1 + $0x1b0] sm:$0xff] }
  0x49   :  { %4630 = vmatprep.subr.bf16.mxu0 %v4629_v31  ;;  %v8472_v54 = vand.u32 4294901760, %v5882_v61  ;;  %v8471_v43 = vand.u32 4294901760, %v5884_v39  ;;  %v5919_v28 = vsub.f32 %v5880_v33, %v1112_v25  ;;  %v8469_v31 = vand.u32 4294901760, %v5911_v4  ;;  %8705 = vst [vmem:[#allocation10_spill] sm:$0xff] %v5932_v7  ;;  %v5954_v59 = vld [vmem:[%s8418_s1 + $0x128] sm:$0xff]  ;;  %8710 = vst [vmem:[#allocation11_spill] sm:$0xff] %v5969_v44 }
  0x4a   :  { %4664 = vmatpush3.bf16.msra.mxu1 %v5516_v18  ;;  %v8473_v48 = vand.u32 4294901760, %v5906_v3  ;;  %8708 = vst [vmem:[#allocation8_spill] sm:$0xff] %v5954_v59  ;;  %v5959_v33 = vpack.c.bf16 %v1160_v23, %v1157_v16  ;;  %v5982_v23 = vld [vmem:[%s8418_s1 + $0x1b8] sm:$0xff] }
  0x4b   :  { %4666 = vmatprep.subr.bf16.mxu1 %v5540_v56  ;;  %v1336_v12 = vsub.f32 %v5882_v61, %v8472_v54  ;;  %8711 = vst [vmem:[#allocation18_spill] sm:$0xff] %v5982_v23 }
  0x4c   :  { %4632 = vmatpush3.bf16.msra.mxu0 %v4631_v40  ;;  %v5927_v40 = vld [vmem:[%s8418_s1 + $0x1a0] sm:$0xff]  ;;  %8709 = vst [vmem:[#allocation9_spill] sm:$0xff] %v5959_v33  ;;  %v5996_v54 = vsub.f32 %v5906_v3, %v8473_v48 }
  0x4d   :  { %4634 = vmatprep.subr.bf16.mxu0 %v4633_v42  ;;  %8704 = vst [vmem:[#allocation6_spill] sm:$0xff] %v5927_v40  ;;  %v1343_v42 = vsub.f32 %v5884_v39, %v8471_v43  ;;  %v8477_v43 = vand.u32 4294901760, %v5954_v59 }
  0x4e   :  { %4668 = vmatpush3.bf16.msra.mxu1 %v5558_v9 }
  0x4f   :  { %4670 = vmatprep.subr.bf16.mxu1 %v8697_v15  ;;  %v6053_v48 = vsub.f32 %v5954_v59, %v8477_v43  ;;  %v8735_v59 = vld [vmem:[#allocation16_spill] sm:$0xff] }
  0x50   :  { %4636 = vmatpush3.bf16.msra.mxu0 %v4635_v45  ;;  %v5943_v45 = vld [vmem:[%s8418_s1 + $0x120] sm:$0xff] }
  0x51   :  { %4638 = vmatprep.subr.bf16.mxu0 %v4637_v1  ;;  %8706 = vst [vmem:[#allocation7_spill] sm:$0xff] %v5943_v45  ;;  %v5947_v1 = vsub.f32 %v73_v57, %v1163_v11  ;;  %v5987_v57 = vld [vmem:[%s8418_s1 + $0x130] sm:$0xff] }
  0x52   :  { %4672 = vmatpush3.bf16.msra.mxu1 %v8698_v17  ;;  %8712 = vst [vmem:[#allocation19_spill] sm:$0xff] %v5987_v57 }
  0x53   :  { %4674 = vmatprep.subr.bf16.mxu1 %v8700_v13 }
  0x54   :  { %4640 = vmatpush3.bf16.msra.mxu0 %v4639_v49  ;;  %v5949_v49 = vsub.f32 %v74_v46, %v1166_v50  ;;  %v8713_v46 = vld [vmem:[#allocation15_spill] sm:$0xff] }
  0x55   :  { %4642 = vmatprep.subr.bf16.mxu0 %v4641_v2  ;;  %v8474_v2 = vand.u32 4294901760, %v5919_v28 }
  0x56   :  { %4676 = vmatpush3.bf16.msra.mxu1 %v8702_v35 }
  0x57   :  { %4678 = vmatprep.subr.bf16.mxu1 %v8703_v62  ;;  %v6003_v16 = vsub.f32 %v5919_v28, %v8474_v2  ;;  %v5327_v2 = vld [vmem:[%s8417_s0 + $0x4] ss:$16 sps:$4 sm:$0xff]  }
  0x58   :  { %4644 = vmatpush3.bf16.msra.mxu0 %v4643_v52  ;;  %v5964_v52 = vsub.f32 %v5903_v38, %v8470_v10  ;;  %v1344_v10 = vand.u32 4294901760, %v1343_v42  ;;  %v8478_v42 = vand.u32 4294901760, %v5949_v49 }
  0x59   :  { %4646 = vmatprep.subr.bf16.mxu0 %v4645_v63  ;;  %v5974_v63 = vsub.f32 %v5911_v4, %v8469_v31  ;;  %v1337_v31 = vand.u32 4294901760, %v1336_v12  ;;  %v8479_v12 = vand.u32 4294901760, %v5947_v1 }
  0x5a   :  { %4680 = vmatpush3.bf16.msra.mxu1 %v8707_v60 }
  0x5b   :  { %4714 = vmatprep.subr.bf16.mxu1 %v5409_v14  ;;  %v8476_v14 = vand.u32 4294901760, %v5932_v7 }
  0x5c   :  { %4648 = vmatpush3.bf16.msra.mxu0 %v4647_v34  ;;  %v8714_v34 = vand.u32 4294901760, %v8713_v46 }
  0x5d   :  { %4682 = vmatprep.subr.bf16.mxu0 %v5750_v36  ;;  %v8475_v36 = vand.u32 4294901760, %v5927_v40 }
  0x5e   :  { %831 = vmatmul.mubr.f32.vlgmr.msra.gmra.mrb[2].mxu1 %v8714_v34  ;;  %v6010_v34 = vpack.c.bf16 %v1112_v25, %v1109_v6  ;;  %v6034_v6 = vld [vmem:[%s8418_s1 + $0x138] sm:$0xff]  ;;  %v6075_v25 = vsub.f32 %v5947_v1, %v8479_v12  ;;  %v8726_v12 = vand.u32 4294901760, %v5987_v57 }
  0x5f   :  { %723 = vmatmul.mubr.f32.vlgmr.msra.gmra.mrb[2].mxu0 %v8713_v46  ;;  %4716 = vmatpush3.bf16.msra.mxu1 %v5417_v20  ;;  %v8717_v46 = vld [vmem:[#allocation13_spill] sm:$0xff]  ;;  %v6080_v20 = vsub.f32 %v5949_v49, %v8478_v42  ;;  %v6120_v42 = vld [vmem:[%s8418_s1 + $0x1d0] sm:$0xff] }
  0x60   :  { %4684 = vmatpush3.bf16.msra.mxu0 %v5756_v5  ;;  %4718 = vmatprep.subr.bf16.mxu1 %v5432_v27  ;;  %8715 = vst [vmem:[#allocation15_spill] sm:$0xff] %v6010_v34  ;;  %v6012_v5 = vpack.c.bf16 %v1166_v50, %v1163_v11  ;;  %v6024_v27 = vsub.f32 %v5927_v40, %v8475_v36  ;;  %8718 = vst [vmem:[#allocation13_spill] sm:$0xff] %v6034_v6  ;;  %v6041_v50 = vld [vmem:[%s8418_s1 + $0x1c0] sm:$0xff]  ;;  %v8720_v36 = vand.u32 4294901760, %v5943_v45  ;;  %v6059_v11 = vld [vmem:[%s8418_s1 + $0x1c8] sm:$0xff] }
  0x61   :  { %4686 = vmatprep.subr.bf16.mxu0 %v5762_v37  ;;  %997 = vmatprep.mubr.f32.mxu0 %v8717_v46  ;;  %v6029_v37 = vsub.f32 %v5932_v7, %v8476_v14  ;;  %8719 = vst [vmem:[#allocation21_spill] sm:$0xff] %v6041_v50  ;;  %8721 = vst [vmem:[#allocation22_spill] sm:$0xff] %v6059_v11  ;;  %v6171_v7 = vld [vmem:[%s8418_s1 + $0x158] sm:$0xff] }
  0x62   :  { %8716 = vst [vmem:[#allocation20_spill] sm:$0xff] %v6012_v5  ;;  %1101 = vmatprep.mubr.f32.mxu1 %v8717_v46  ;;  %v6043_v46 = vpack.c.bf16 %v1344_v10, %v1337_v31  ;;  %v6048_v14 = vsub.f32 %v5943_v45, %v8720_v36  ;;  %v5330_v10 = vld [vmem:[%s8417_s0 + $0x24] ss:$16 sps:$4 sm:$0xff]   ;;  %v8722_v36 = vand.u32 4294901760, %v5969_v44  ;;  %v8727_v45 = vand.u32 4294901760, %v5964_v52  ;;  %8731 = vst [vmem:[#allocation27_spill] sm:$0xff] %v6120_v42 }
  0x63   :  { %4720 = vmatpush3.bf16.msra.mxu1 %v5438_v30  ;;  %v6085_v30 = vld [vmem:[%s8418_s1 + $0x140] sm:$0xff]  ;;  %8740 = vst [vmem:[#allocation30_spill] sm:$0xff] %v6171_v7 }
  0x64   :  { %4688 = vmatpush3.bf16.msra.mxu0 %v5768_v53  ;;  %v6070_v43 = vsub.f32 %v5969_v44, %v8722_v36  ;;  %8723 = vst [vmem:[#allocation23_spill] sm:$0xff] %v6085_v30  ;;  %v6090_v53 = vld [vmem:[%s8418_s1 + $0x148] sm:$0xff]  ;;  %4722 = vmatprep.subr.bf16.mxu1 %v5454_v41  ;;  %v8725_v36 = vand.u32 4294901760, %v5982_v23  ;;  %v6103_v44 = vsub.f32 %v5987_v57, %v8726_v12  ;;  %v8729_v41 = vand.u32 4294901760, %v5974_v63  ;;  %v8732_v12 = vld [vmem:[#allocation12_spill] sm:$0xff] }
  0x65   :  { %8724 = vst [vmem:[#allocation24_spill] sm:$0xff] %v6090_v53  ;;  %4690 = vmatprep.subr.bf16.mxu0 %v5775_v24  ;;  %v6109_v24 = vsub.f32 %v5964_v52, %v8727_v45  ;;  %v6123_v57 = vrot.slane %v5327_v2, %v8732_v12  ;;  %v6135_v2 = vrot.slane %v5330_v10, %v8732_v12  ;;  %v6153_v10 = vld [vmem:[%s8418_s1 + $0x1d8] sm:$0xff] }
  0x66   :  { %v6097_v31 = vsub.f32 %v5982_v23, %v8725_v36  ;;  %v6114_v5 = vsub.f32 %v5974_v63, %v8729_v41  ;;  %v8736_v23 = vand.u32 4294901760, %v6034_v6  ;;  %v8742_v41 = vand.u32 4294901760, %v6024_v27 }
  0x67   :  { %8728 = vst [vmem:[#allocation25_spill] sm:$0xff] %v6109_v24  ;;  %8733 = vst [vmem:[#allocation28_spill] sm:$0xff] %v6123_v57  ;;  %4724 = vmatpush3.bf16.msra.mxu1 %v5465_v47  ;;  %v8737_v47 = vand.u32 4294901760, %v6041_v50 }
  0x68   :  { %8730 = vst [vmem:[#allocation26_spill] sm:$0xff] %v6114_v5  ;;  %4692 = vmatpush3.bf16.msra.mxu0 %v5781_v26  ;;  %8734 = vst [vmem:[#allocation29_spill] sm:$0xff] %v6135_v2  ;;  %4726 = vmatprep.subr.bf16.mxu1 %v5494_v0  ;;  %v6142_v34 = vsub.f32 %v6034_v6, %v8736_v23  ;;  %v6159_v0 = vld [vmem:[%s8418_s1 + $0x150] sm:$0xff]  ;;  %v201_v23 = vcombine.high %v6123_v57, %v6135_v2  ;;  %v8745_v6 = vand.u32 4294901760, %v6090_v53 }
  0x69   :  { %4694 = vmatprep.subr.bf16.mxu0 %v8735_v59  ;;  %v6147_v26 = vsub.f32 %v6041_v50, %v8737_v47  ;;  %8738 = vst [vmem:[#allocation16_spill] sm:$0xff] %v6159_v0  ;;  %v8739_v47 = vand.u32 4294901760, %v6059_v11  ;;  %v6176_v59 = vld [vmem:[%s8418_s1 + $0x1e0] sm:$0xff]  ;;  %v6183_v45 = vsub.f32 %v6024_v27, %v8742_v41  ;;  %v6203_v41 = vld [vmem:[%s8418_s1 + $0x1e8] sm:$0xff]  ;;  %v6227_v2 = vld [vmem:[%s8418_s1 + $0x1f0] sm:$0xff] }
  0x6a   :  { %8741 = vst [vmem:[#allocation31_spill] sm:$0xff] %v6176_v59  ;;  %v6198_v5 = vsub.f32 %v6090_v53, %v8745_v6  ;;  %v8748_v6 = vand.u32 4294901760, %v6048_v14  ;;  %8750 = vst [vmem:[#allocation35_spill] sm:$0xff] %v6227_v2  ;;  %v8764_v32 = vand.u32 4294901760, %v6176_v59  ;;  %v8768_v24 = vand.u32 4294901760, %v6227_v2 }
  0x6b   :  { %v6166_v36 = vsub.f32 %v6059_v11, %v8739_v47  ;;  %v8743_v47 = vand.u32 4294901760, %v6029_v37  ;;  %v8744_v11 = vand.u32 4294901760, %v6085_v30  ;;  %4728 = vmatpush3.bf16.msra.mxu1 %v5516_v18  ;;  %v6234_v18 = vand.u32 4294901760, %v201_v23 }
  0x6c   :  { %8746 = vst [vmem:[#allocation32_spill] sm:$0xff] %v6198_v5  ;;  %4696 = vmatpush3.bf16.msra.mxu0 %v5793_v58  ;;  %v6220_v53 = vsub.f32 %v6048_v14, %v8748_v6  ;;  %v6232_v58 = vld [vmem:[%s8418_s1 + $0x1f8] sm:$0xff]  ;;  %4730 = vmatprep.subr.bf16.mxu1 %v5540_v56  ;;  %v8752_v6 = vand.u32 4294901760, %v6053_v48  ;;  %v8759_v56 = vand.u32 4294901760, %v6153_v10 }
  0x6d   :  { %v6188_v12 = vsub.f32 %v6029_v37, %v8743_v47  ;;  %v6193_v50 = vsub.f32 %v6085_v30, %v8744_v11  ;;  %v6208_v47 = vld [vmem:[%s8418_s1 + $0x160] sm:$0xff]  ;;  %v6213_v11 = vld [vmem:[%s8418_s1 + $0x168] sm:$0xff]  ;;  %8751 = vst [vmem:[#allocation36_spill] sm:$0xff] %v6234_v18  ;;  %4698 = vmatprep.subr.bf16.mxu0 %v5799_v21  ;;  %v8754_v30 = vand.u32 4294901760, %v6120_v42  ;;  %v6253_v21 = vld [vmem:[%s8418_s1 + $0x170] sm:$0xff]  ;;  %v6268_v4 = vsub.f32 %v201_v23, %v6234_v18 }
  0x6e   :  { %8747 = vst [vmem:[#allocation33_spill] sm:$0xff] %v6213_v11  ;;  %8749 = vst [vmem:[#allocation34_spill] sm:$0xff] %v6220_v53  ;;  %v6241_v57 = vsub.f32 %v6053_v48, %v8752_v6  ;;  %v8761_v6 = vand.u32 4294901760, %v6159_v0  ;;  %v8762_v23 = vld [vmem:[#allocation17_spill] sm:$0xff] }
  0x6f   :  { %v6246_v53 = vsub.f32 %v6120_v42, %v8754_v30  ;;  %8756 = vst [vmem:[#allocation39_spill] sm:$0xff] %v6253_v21  ;;  %v6262_v30 = vld [vmem:[%s8418_s1 + $0x178] sm:$0xff]  ;;  %8758 = vst [vmem:[#allocation41_spill] sm:$0xff] %v6268_v4  ;;  %4732 = vmatpush3.bf16.msra.mxu1 %v5558_v9  ;;  %v8763_v9 = vand.u32 4294901760, %v6171_v7  ;;  %v8765_v42 = vand.u32 4294901760, %v6203_v41 }
  0x70   :  { %8753 = vst [vmem:[#allocation37_spill] sm:$0xff] %v6241_v57  ;;  %8757 = vst [vmem:[#allocation40_spill] sm:$0xff] %v6262_v30  ;;  %4700 = vmatpush3.bf16.msra.mxu0 %v5805_v29  ;;  %v6275_v57 = vsub.f32 %v6153_v10, %v8759_v56  ;;  %v6280_v40 = vsub.f32 %v6159_v0, %v8761_v6  ;;  %4734 = vmatprep.subr.bf16.mxu1 %v8697_v15  ;;  %v8766_v0 = vand.u32 4294901760, %v6208_v47 }
  0x71   :  { %8755 = vst [vmem:[#allocation38_spill] sm:$0xff] %v6246_v53  ;;  %4702 = vmatprep.subr.bf16.mxu0 %v8762_v23  ;;  %v6289_v29 = vsub.f32 %v6171_v7, %v8763_v9  ;;  %v6295_v6 = vsub.f32 %v6176_v59, %v8764_v32  ;;  %v6301_v23 = vsub.f32 %v6203_v41, %v8765_v42  ;;  %v8767_v56 = vand.u32 4294901760, %v6213_v11 }
  0x72   :  { %8760 = vst [vmem:[#allocation42_spill] sm:$0xff] %v6275_v57  ;;  %v6307_v9 = vsub.f32 %v6208_v47, %v8766_v0  ;;  %v6318_v59 = vsub.f32 %v6227_v2, %v8768_v24  ;;  %v8770_v42 = vand.u32 4294901760, %v6232_v58  ;;  %v8771_v24 = vand.u32 4294901760, %v6253_v21 }
  0x73   :  { %v6312_v7 = vsub.f32 %v6213_v11, %v8767_v56  ;;  %4736 = vmatpush3.bf16.msra.mxu1 %v8698_v17  ;;  %v8774_v32 = vand.u32 4294901760, %v5882_v61  ;;  %v8775_v11 = vand.u32 4294901760, %v5884_v39  ;;  %v8777_v0 = vand.u32 4294901760, %v5906_v3 }
  0x74   :  { %8769 = vst [vmem:[#allocation17_spill] sm:$0xff] %v6318_v59  ;;  %v6323_v15 = vsub.f32 %v6232_v58, %v8770_v42  ;;  %4704 = vmatpush3.bf16.msra.mxu0 %v5817_v55  ;;  %v6334_v2 = vsub.f32 %v6253_v21, %v8771_v24  ;;  %4738 = vmatprep.subr.bf16.mxu1 %v8700_v13  ;;  %v8772_v55 = vand.u32 4294901760, %v6262_v30  ;;  %v8773_v13 = vand.u32 4294901760, %v6268_v4 }
  0x75   :  { %4706 = vmatprep.subr.bf16.mxu0 %v5824_v22  ;;  %v8781_v21 = vand.u32 4294901760, %v5949_v49 }
  0x76   :  { %v6342_v17 = vsub.f32 %v6262_v30, %v8772_v55  ;;  %v1207_v42 = vsub.f32 %v6268_v4, %v8773_v13  ;;  %v6359_v30 = vpack.c.bf16 %v8775_v11, %v8774_v32  ;;  %v8778_v13 = vand.u32 4294901760, %v5919_v28 }
  0x77   :  { %4740 = vmatpush3.bf16.msra.mxu1 %v8702_v35  ;;  %v8780_v55 = vand.u32 4294901760, %v5947_v1  ;;  %v8783_v11 = vand.u32 4294901760, %v5964_v52  ;;  %v8796_v35 = vand.u32 4294901760, %v6142_v34 }
  0x78   :  { %8776 = vst [vmem:[#allocation43_spill] sm:$0xff] %v6359_v30  ;;  %4708 = vmatpush3.bf16.msra.mxu0 %v5830_v51  ;;  %v6368_v24 = vpack.c.bf16 %v8778_v13, %v8777_v0  ;;  %v8784_v51 = vand.u32 4294901760, %v5974_v63  ;;  %4742 = vmatprep.subr.bf16.mxu1 %v8703_v62  ;;  %v8786_v0 = vand.u32 4294901760, %v6024_v27  ;;  %v8787_v13 = vand.u32 4294901760, %v6029_v37 }
  0x79   :  { %v6374_v56 = vpack.c.bf16 %v8781_v21, %v8780_v55  ;;  %4710 = vmatprep.subr.bf16.mxu0 %v5832_v8  ;;  %v8789_v21 = vand.u32 4294901760, %v6048_v14  ;;  %v8790_v55 = vand.u32 4294901760, %v6053_v48  ;;  %v8793_v8 = vand.u32 4294901760, %v6097_v31 }
  0x7a   :  { %8779 = vst [vmem:[#allocation44_spill] sm:$0xff] %v6368_v24  ;;  %v6380_v32 = vpack.c.bf16 %v8784_v51, %v8783_v11  ;;  %v6389_v22 = vpack.c.bf16 %v8787_v13, %v8786_v0  ;;  %v8792_v11 = vand.u32 4294901760, %v6070_v43  ;;  %v8795_v62 = vand.u32 4294901760, %v6103_v44  ;;  %v8842_v24 = vld [vmem:[#allocation34_spill] sm:$0xff] }
  0x7b   :  { %8782 = vst [vmem:[#allocation45_spill] sm:$0xff] %v6374_v56  ;;  %v6395_v56 = vpack.c.bf16 %v8790_v55, %v8789_v21  ;;  %v8798_v0 = vand.u32 4294901760, %v6147_v26  ;;  %v8799_v13 = vand.u32 4294901760, %v6166_v36  ;;  %v8801_v21 = vand.u32 4294901760, %v6193_v50  ;;  %4744 = vmatpush3.bf16.msra.mxu1 %v8707_v60 }
  0x7c   :  { %8785 = vst [vmem:[#allocation46_spill] sm:$0xff] %v6380_v32  ;;  %8788 = vst [vmem:[#allocation47_spill] sm:$0xff] %v6389_v22  ;;  %v6401_v51 = vpack.c.bf16 %v8793_v8, %v8792_v11  ;;  %v6407_v32 = vpack.c.bf16 %v8796_v35, %v8795_v62  ;;  %v8802_v55 = vand.u32 4294901760, %v6198_v5  ;;  %v8804_v11 = vand.u32 4294901760, %v6246_v53  ;;  %4712 = vmatpush3.bf16.msra.mxu0 %v5837_v19 }
  0x7d   :  { %8791 = vst [vmem:[#allocation48_spill] sm:$0xff] %v6395_v56  ;;  %v6413_v22 = vpack.c.bf16 %v8799_v13, %v8798_v0  ;;  %v8805_v8 = vand.u32 4294901760, %v6275_v57  ;;  %v8807_v35 = vand.u32 4294901760, %v6280_v40  ;;  %v8808_v62 = vand.u32 4294901760, %v6289_v29  ;;  %4746 = vmatprep.subr.bf16.mxu0 %v5959_v33  ;;  %4778 = vmatprep.subr.bf16.mxu1 %v6043_v46 }
  0x7e   :  { %8794 = vst [vmem:[#allocation49_spill] sm:$0xff] %v6401_v51  ;;  %8797 = vst [vmem:[#allocation50_spill] sm:$0xff] %v6407_v32  ;;  %v6419_v56 = vpack.c.bf16 %v8802_v55, %v8801_v21  ;;  %v8810_v0 = vand.u32 4294901760, %v6295_v6  ;;  %v8811_v13 = vand.u32 4294901760, %v6301_v23  ;;  %v8813_v21 = vand.u32 4294901760, %v6307_v9 }
  0x7f   :  { %8800 = vst [vmem:[#allocation51_spill] sm:$0xff] %v6413_v22  ;;  %v6425_v51 = vpack.c.bf16 %v8805_v8, %v8804_v11  ;;  %v6431_v32 = vpack.c.bf16 %v8808_v62, %v8807_v35  ;;  %v8814_v55 = vand.u32 4294901760, %v6312_v7  ;;  %v8816_v11 = vand.u32 4294901760, %v6318_v59 }
  0x80   :  { %8803 = vst [vmem:[#allocation52_spill] sm:$0xff] %v6419_v56  ;;  %v6437_v22 = vpack.c.bf16 %v8811_v13, %v8810_v0  ;;  %v8817_v8 = vand.u32 4294901760, %v6323_v15  ;;  %v8819_v35 = vand.u32 4294901760, %v5996_v54  ;;  %v8820_v62 = vand.u32 4294901760, %v6003_v16 }
  0x81   :  { %8806 = vst [vmem:[#allocation53_spill] sm:$0xff] %v6425_v51  ;;  %8809 = vst [vmem:[#allocation54_spill] sm:$0xff] %v6431_v32  ;;  %v6443_v56 = vpack.c.bf16 %v8814_v55, %v8813_v21  ;;  %v1365_v13 = vand.u32 4294901760, %v6183_v45  ;;  %v1372_v21 = vand.u32 4294901760, %v6188_v12  ;;  %v8821_v55 = vand.u32 4294901760, %v6334_v2 }
  0x82   :  { %8812 = vst [vmem:[#allocation55_spill] sm:$0xff] %v6437_v22  ;;  %v6449_v51 = vpack.c.bf16 %v8817_v8, %v8816_v11  ;;  %v4779_v0 = vpack.c.bf16 %v8820_v62, %v8819_v35  ;;  %v8824_v19 = vand.u32 4294901760, %v6075_v25  ;;  %v8825_v54 = vand.u32 4294901760, %v6080_v20  ;;  %v8829_v8 = vld [vmem:[#allocation5_spill] sm:$0xff]  ;;  %v8833_v20 = vld [vmem:[#allocation6_spill] sm:$0xff] }
  0x83   :  { %8815 = vst [vmem:[#allocation56_spill] sm:$0xff] %v6443_v56  ;;  %v8822_v56 = vand.u32 4294901760, %v6342_v17  ;;  %v8826_v16 = vand.u32 4294901760, %v6070_v43  ;;  %v8827_v12 = vand.u32 4294901760, %v6097_v31  ;;  %v8830_v35 = vand.u32 4294901760, %v8829_v8 }
  0x84   :  { %8818 = vst [vmem:[#allocation57_spill] sm:$0xff] %v6449_v51  ;;  %v4781_v60 = vpack.c.bf16 %v8825_v54, %v8824_v19  ;;  %v1208_v46 = vand.u32 4294901760, %v1207_v42  ;;  %v8834_v25 = vand.u32 4294901760, %v8833_v20  ;;  %v8835_v19 = vld [vmem:[#allocation10_spill] sm:$0xff]  ;;  %v1253_v8 = vand.u32 4294901760, %v8842_v24  ;;  %v8844_v42 = vld [vmem:[#allocation15_spill] sm:$0xff] }
  0x85   :  { %v6463_v22 = vpack.c.bf16 %v8822_v56, %v8821_v55  ;;  %v1378_v45 = vsub.f32 %v6070_v43, %v8826_v16  ;;  %v1385_v11 = vsub.f32 %v6097_v31, %v8827_v12  ;;  %v8828_v56 = vand.u32 4294901760, %v5903_v38  ;;  %v8832_v55 = vld [vmem:[#allocation14_spill] sm:$0xff] }
  0x86   :  { %999 = vmatmul.mubr.f32.vlgmr.msra.gmra.mrb[4].mxu0 %v8832_v55  ;;  %1103 = vmatmul.mubr.f32.vlgmr.msra.gmra.mrb[4].mxu1 %v8832_v55  ;;  %v8836_v54 = vand.u32 4294901760, %v8835_v19  ;;  %v8840_v12 = vld [vmem:[#allocation26_spill] sm:$0xff]  ;;  %v4785_v30 = vpack.c.bf16 %v1372_v21, %v1365_v13  ;;  %v8845_v55 = vand.u32 4294901760, %v6103_v44  ;;  %v8848_v24 = vand.u32 4294901760, %v6147_v26  ;;  %v8850_v21 = vld [vmem:[#allocation7_spill] sm:$0xff] }
  0x87   :  { %8823 = vst [vmem:[#allocation58_spill] sm:$0xff] %v6463_v22  ;;  %v6481_v62 = vpack.c.bf16 %v8830_v35, %v8828_v56  ;;  %v8838_v22 = vld [vmem:[#allocation25_spill] sm:$0xff]  ;;  %v8841_v32 = vand.u32 4294901760, %v8840_v12  ;;  %4748 = vmatpush3.bf16.msra.mxu0 %v8844_v42  ;;  %4780 = vmatpush3.bf16.msra.mxu1 %v4779_v0  ;;  %v8849_v0 = vand.u32 4294901760, %v6166_v36  ;;  %v8851_v12 = vand.u32 4294901760, %v8850_v21 }
  0x88   :  { %v6489_v16 = vpack.c.bf16 %v8836_v54, %v8834_v25  ;;  %v8839_v51 = vand.u32 4294901760, %v8838_v22  ;;  %v8843_v56 = vld [vmem:[#allocation37_spill] sm:$0xff]  ;;  %v1266_v20 = vsub.f32 %v6103_v44, %v8845_v55  ;;  %v8846_v25 = vand.u32 4294901760, %v6142_v34  ;;  %v8847_v22 = vld [vmem:[#allocation20_spill] sm:$0xff]  ;;  %4782 = vmatprep.subr.bf16.mxu1 %v4781_v60  ;;  %1209 = vmatprep.mubr.f32.mxu0 %v1208_v46 }
  0x89   :  { %8831 = vst [vmem:[#allocation5_spill] sm:$0xff] %v6481_v62  ;;  %v1260_v35 = vand.u32 4294901760, %v8843_v56  ;;  %4750 = vmatprep.subr.bf16.mxu0 %v8847_v22  ;;  %v1392_v54 = vsub.f32 %v6147_v26, %v8848_v24  ;;  %v1399_v13 = vsub.f32 %v6166_v36, %v8849_v0  ;;  %1445 = vmatprep.mubr.f32.mxu1 %v6234_v18  ;;  %v8852_v56 = vld [vmem:[#allocation8_spill] sm:$0xff]  ;;  %v8855_v24 = vand.u32 4294901760, %v6198_v5  ;;  %v8865_v42 = vld [vmem:[#allocation13_spill] sm:$0xff] }
  0x8a   :  { %8837 = vst [vmem:[#allocation14_spill] sm:$0xff] %v6489_v16  ;;  %v4783_v38 = vpack.c.bf16 %v8841_v32, %v8839_v51  ;;  %v1273_v19 = vsub.f32 %v6142_v34, %v8846_v25  ;;  %v1379_v32 = vand.u32 4294901760, %v1378_v45  ;;  %v1386_v51 = vand.u32 4294901760, %v1385_v11 }
  0x8b   :  { %v8853_v55 = vand.u32 4294901760, %v8852_v56  ;;  %v4787_v60 = vpack.c.bf16 %v1260_v35, %v1253_v8  ;;  %v8854_v45 = vand.u32 4294901760, %v6193_v50  ;;  %v1287_v4 = vsub.f32 %v6198_v5, %v8855_v24  ;;  %4752 = vmatpush3.bf16.msra.mxu0 %v6481_v62  ;;  %v8858_v35 = vld [vmem:[#allocation11_spill] sm:$0xff] }
  0x8c   :  { %4784 = vmatpush3.bf16.msra.mxu1 %v4783_v38  ;;  %v1267_v46 = vand.u32 4294901760, %v1266_v20  ;;  %v1274_v0 = vand.u32 4294901760, %v1273_v19  ;;  %v8856_v21 = vand.u32 4294901760, %v6246_v53  ;;  %4754 = vmatprep.subr.bf16.mxu0 %v6489_v16  ;;  %v4789_v38 = vpack.c.bf16 %v1386_v51, %v1379_v32  ;;  %v8863_v62 = vld [vmem:[#allocation19_spill] sm:$0xff] }
  0x8d   :  { %v6516_v25 = vpack.c.bf16 %v8853_v55, %v8851_v12  ;;  %v1280_v11 = vsub.f32 %v6193_v50, %v8854_v45  ;;  %v8857_v12 = vand.u32 4294901760, %v6275_v57  ;;  %v8859_v55 = vand.u32 4294901760, %v8858_v35  ;;  %v8860_v45 = vld [vmem:[#allocation18_spill] sm:$0xff]  ;;  %4786 = vmatprep.subr.bf16.mxu1 %v4785_v30 }
  0x8e   :  { %v1406_v56 = vsub.f32 %v6246_v53, %v8856_v21  ;;  %v8861_v18 = vand.u32 4294901760, %v8860_v45  ;;  %v1393_v20 = vand.u32 4294901760, %v1392_v54  ;;  %v1400_v19 = vand.u32 4294901760, %v1399_v13  ;;  %v8867_v53 = vld [vmem:[#allocation29_spill] sm:$0xff] }
  0x8f   :  { %v1413_v8 = vsub.f32 %v6275_v57, %v8857_v12  ;;  %v8864_v22 = vand.u32 4294901760, %v8863_v62  ;;  %v8866_v21 = vand.u32 4294901760, %v8865_v42  ;;  %v8868_v12 = vld [vmem:[#allocation28_spill] sm:$0xff]  ;;  %v1281_v16 = vand.u32 4294901760, %v1280_v11  ;;  %4756 = vmatpush3.bf16.msra.mxu0 %v6516_v25  ;;  %v8871_v62 = vld [vmem:[#allocation21_spill] sm:$0xff]  ;;  %v8873_v42 = vld [vmem:[#allocation22_spill] sm:$0xff] }
  0x90   :  { %v6536_v24 = vpack.c.bf16 %v8861_v18, %v8859_v55  ;;  %v200_v57 = vcombine.low %v8868_v12, %v8867_v53  ;;  %v1288_v5 = vand.u32 4294901760, %v1287_v4  ;;  %v8869_v35 = vand.u32 4294901760, %v6280_v40  ;;  %4788 = vmatpush3.bf16.msra.mxu1 %v4787_v60 }
  0x91   :  { %v6542_v33 = vpack.c.bf16 %v8866_v21, %v8864_v22  ;;  %v8870_v30 = vand.u32 4294901760, %v6289_v29  ;;  %v8872_v51 = vand.u32 4294901760, %v8871_v62  ;;  %v8874_v22 = vand.u32 4294901760, %v8873_v42  ;;  %4790 = vmatprep.subr.bf16.mxu1 %v4789_v38  ;;  %v8879_v62 = vld [vmem:[#allocation24_spill] sm:$0xff] }
  0x92   :  { %8862 = vst [vmem:[#allocation6_spill] sm:$0xff] %v6536_v24  ;;  %v1294_v18 = vsub.f32 %v6280_v40, %v8869_v35  ;;  %v4791_v53 = vpack.c.bf16 %v1274_v0, %v1267_v46  ;;  %v1407_v13 = vand.u32 4294901760, %v1406_v56  ;;  %v1414_v4 = vand.u32 4294901760, %v1413_v8  ;;  %4758 = vmatprep.subr.bf16.mxu0 %v6536_v24  ;;  %v8877_v35 = vld [vmem:[#allocation23_spill] sm:$0xff] }
  0x93   :  { %v1301_v32 = vsub.f32 %v6289_v29, %v8870_v30  ;;  %v6557_v54 = vpack.c.bf16 %v8874_v22, %v8872_v51  ;;  %v4793_v11 = vpack.c.bf16 %v1400_v19, %v1393_v20  ;;  %v8875_v55 = vand.u32 4294901760, %v6295_v6  ;;  %v8882_v0 = vld [vmem:[#allocation27_spill] sm:$0xff]  ;;  %4760 = vmatpush3.bf16.msra.mxu0 %v6542_v33 }
  0x94   :  { %v8876_v21 = vand.u32 4294901760, %v6301_v23  ;;  %v8878_v30 = vand.u32 4294901760, %v8877_v35  ;;  %v8880_v51 = vand.u32 4294901760, %v8879_v62  ;;  %v6572_v46 = vand.u32 4294901760, %v200_v57  ;;  %4792 = vmatpush3.bf16.msra.mxu1 %v4791_v53 }
  0x95   :  { %v1420_v45 = vsub.f32 %v6295_v6, %v8875_v55  ;;  %v8883_v56 = vand.u32 4294901760, %v8882_v0  ;;  %v8884_v8 = vand.u32 4294901760, %v6153_v10  ;;  %v4795_v20 = vpack.c.bf16 %v1288_v5, %v1281_v16  ;;  %4762 = vmatprep.subr.bf16.mxu0 %v6557_v54  ;;  %4794 = vmatprep.subr.bf16.mxu1 %v4793_v11 }
  0x96   :  { %v1427_v12 = vsub.f32 %v6301_v23, %v8876_v21  ;;  %v6570_v60 = vpack.c.bf16 %v8880_v51, %v8878_v30  ;;  %8881 = vst [vmem:[#allocation10_spill] sm:$0xff] %v6572_v46  ;;  %v1295_v19 = vand.u32 4294901760, %v1294_v18  ;;  %v1302_v42 = vand.u32 4294901760, %v1301_v32  ;;  %v8892_v51 = vld [vmem:[#allocation30_spill] sm:$0xff] }
  0x97   :  { %v6578_v38 = vpack.c.bf16 %v8884_v8, %v8883_v56  ;;  %v4797_v22 = vpack.c.bf16 %v1414_v4, %v1407_v13  ;;  %v8885_v55 = vand.u32 4294901760, %v6307_v9  ;;  %v8886_v35 = vand.u32 4294901760, %v6312_v7  ;;  %v8890_v13 = vld [vmem:[#allocation16_spill] sm:$0xff] }
  0x98   :  { %v1421_v10 = vand.u32 4294901760, %v1420_v45  ;;  %v1428_v62 = vand.u32 4294901760, %v1427_v12  ;;  %v8887_v5 = vand.u32 4294901760, %v6318_v59  ;;  %v8888_v18 = vand.u32 4294901760, %v6323_v15  ;;  %4764 = vmatpush3.bf16.msra.mxu0 %v6570_v60  ;;  %4796 = vmatpush3.bf16.msra.mxu1 %v4795_v20 }
  0x99   :  { %v1308_v21 = vsub.f32 %v6307_v9, %v8885_v55  ;;  %v1315_v30 = vsub.f32 %v6312_v7, %v8886_v35  ;;  %v6595_v53 = vsub.f32 %v200_v57, %v6572_v46  ;;  %v8891_v4 = vand.u32 4294901760, %v8890_v13  ;;  %4766 = vmatprep.subr.bf16.mxu0 %v6578_v38  ;;  %4798 = vmatprep.subr.bf16.mxu1 %v4797_v22  ;;  %v8902_v22 = vld [vmem:[#allocation35_spill] sm:$0xff] }
  0x9a   :  { %v1434_v16 = vsub.f32 %v6318_v59, %v8887_v5  ;;  %v1441_v32 = vsub.f32 %v6323_v15, %v8888_v18  ;;  %v8893_v0 = vand.u32 4294901760, %v8892_v51  ;;  %v4799_v11 = vpack.c.bf16 %v1302_v42, %v1295_v19  ;;  %v8896_v5 = vld [vmem:[#allocation31_spill] sm:$0xff]  ;;  %v8900_v51 = vld [vmem:[#allocation33_spill] sm:$0xff] }
  0x9b   :  { %8889 = vst [vmem:[#allocation25_spill] sm:$0xff] %v6595_v53  ;;  %v1309_v45 = vand.u32 4294901760, %v1308_v21  ;;  %v1316_v12 = vand.u32 4294901760, %v1315_v30  ;;  %v8894_v8 = vand.u32 4294901760, %v6334_v2  ;;  %v8895_v35 = vand.u32 4294901760, %v6342_v17  ;;  %v6954_v59 = vld [vmem:[%s8418_s1 + $0x268] sm:$0xff] }
  0x9c   :  { %v6601_v56 = vpack.c.bf16 %v8893_v0, %v8891_v4  ;;  %v8897_v18 = vand.u32 4294901760, %v8896_v5  ;;  %v8898_v13 = vand.u32 4294901760, %v6203_v41  ;;  %v4801_v20 = vpack.c.bf16 %v1428_v62, %v1421_v10  ;;  %4800 = vmatpush3.bf16.msra.mxu1 %v4799_v11  ;;  %v8908_v11 = vld [vmem:[#allocation40_spill] sm:$0xff] }
  0x9d   :  { %v1322_v55 = vsub.f32 %v6334_v2, %v8894_v8  ;;  %v1329_v57 = vsub.f32 %v6342_v17, %v8895_v35  ;;  %v1435_v42 = vand.u32 4294901760, %v1434_v16  ;;  %v1442_v21 = vand.u32 4294901760, %v1441_v32 }
  0x9e   :  { %v6615_v19 = vpack.c.bf16 %v8898_v13, %v8897_v18  ;;  %v8526_v30 = vand.u32 4294901760, %v6595_v53  ;;  %4768 = vmatpush3.bf16.msra.mxu0 %v6601_v56  ;;  %v8899_v4 = vand.u32 4294901760, %v6208_v47  ;;  %v8901_v0 = vand.u32 4294901760, %v8900_v51  ;;  %4802 = vmatprep.subr.bf16.mxu1 %v4801_v20  ;;  %v8906_v18 = vld [vmem:[#allocation39_spill] sm:$0xff]  ;;  %v6653_v20 = vld [vmem:[%s8418_s1 + $0x288] sm:$0xff] }
  0x9f   :  { %v4803_v35 = vpack.c.bf16 %v1316_v12, %v1309_v45  ;;  %v1323_v5 = vand.u32 4294901760, %v1322_v55  ;;  %v1330_v41 = vand.u32 4294901760, %v1329_v57  ;;  %v8903_v10 = vand.u32 4294901760, %v8902_v22  ;;  %v6648_v57 = vld [vmem:[%s8418_s1 + $0x280] sm:$0xff]  ;;  %8912 = vst [vmem:[#allocation7_spill] sm:$0xff] %v6653_v20  ;;  %v6685_v51 = vld [vmem:[%s8418_s1 + $0x298] sm:$0xff] }
  0xa0   :  { %v6623_v8 = vpack.c.bf16 %v8901_v0, %v8899_v4  ;;  %4770 = vmatprep.subr.bf16.mxu0 %v6615_v19  ;;  %v8904_v62 = vand.u32 4294901760, %v6232_v58  ;;  %v4805_v32 = vpack.c.bf16 %v1442_v21, %v1435_v42  ;;  %v1213_v47 = vsub.f32 %v6595_v53, %v8526_v30  ;;  %8911 = vst [vmem:[#allocation37_spill] sm:$0xff] %v6648_v57  ;;  %v6680_v4 = vld [vmem:[%s8418_s1 + $0x290] sm:$0xff]  ;;  %v6761_v21 = vld [vmem:[%s8418_s1 + $0x2b8] sm:$0xff] }
  0xa1   :  { %v8907_v13 = vand.u32 4294901760, %v8906_v18  ;;  %v8909_v45 = vand.u32 4294901760, %v8908_v11  ;;  %v4809_v55 = vpack.c.bf16 %v5884_v39, %v5882_v61  ;;  %v4811_v58 = vpack.c.bf16 %v5919_v28, %v5906_v3  ;;  %4804 = vmatpush3.bf16.msra.mxu1 %v4803_v35  ;;  %v6663_v3 = vld [vmem:[%s8418_s1 + $0x200] sm:$0xff]  ;;  %v6668_v28 = vld [vmem:[%s8418_s1 + $0x208] sm:$0xff]  ;;  %8915 = vst [vmem:[#allocation18_spill] sm:$0xff] %v6680_v4  ;;  %8916 = vst [vmem:[#allocation19_spill] sm:$0xff] %v6685_v51 }
  0xa2   :  { %v6630_v16 = vpack.c.bf16 %v8904_v62, %v8903_v10  ;;  %4772 = vmatpush3.bf16.msra.mxu0 %v6623_v8  ;;  %v4813_v42 = vpack.c.bf16 %v5949_v49, %v5947_v1  ;;  %v4807_v61 = vpack.c.bf16 %v1330_v41, %v1323_v5  ;;  %8913 = vst [vmem:[#allocation8_spill] sm:$0xff] %v6663_v3  ;;  %8914 = vst [vmem:[#allocation11_spill] sm:$0xff] %v6668_v28  ;;  %v6694_v22 = vld [vmem:[%s8418_s1 + $0x210] sm:$0xff]  ;;  %v6699_v10 = vld [vmem:[%s8418_s1 + $0x218] sm:$0xff] }
  0xa3   :  { %v6639_v12 = vpack.c.bf16 %v8909_v45, %v8907_v13  ;;  %4806 = vmatprep.subr.bf16.mxu1 %v4805_v32  ;;  %v1214_v0 = vand.u32 4294901760, %v1213_v47  ;;  %v8527_v5 = vand.u32 4294901760, %v6648_v57  ;;  %v8528_v41 = vand.u32 4294901760, %v6653_v20  ;;  %8917 = vst [vmem:[#allocation13_spill] sm:$0xff] %v6694_v22  ;;  %8918 = vst [vmem:[#allocation29_spill] sm:$0xff] %v6699_v10  ;;  %v6704_v62 = vld [vmem:[%s8418_s1 + $0x2a0] sm:$0xff] }
  0xa4   :  { %8905 = vst [vmem:[#allocation26_spill] sm:$0xff] %v6630_v16  ;;  %4774 = vmatprep.subr.bf16.mxu0 %v6630_v16  ;;  %8919 = vst [vmem:[#allocation28_spill] sm:$0xff] %v6704_v62  ;;  %v8920_v47 = vld [vmem:[#allocation32_spill] sm:$0xff]  ;;  %v8532_v13 = vand.u32 4294901760, %v6663_v3  ;;  %v6715_v45 = vld [vmem:[%s8418_s1 + $0x2a8] sm:$0xff]  ;;  %v8932_v18 = vand.u32 4294901760, %v6680_v4  ;;  %v8951_v53 = vpack.c.bf16 %v5974_v63, %v5964_v52  ;;  %v8956_v63 = vpack.c.bf16 %v6029_v37, %v6024_v27 }
  0xa5   :  { %8910 = vst [vmem:[#allocation34_spill] sm:$0xff] %v6639_v12  ;;  %8921 = vst [vmem:[#allocation21_spill] sm:$0xff] %v6715_v45  ;;  %4808 = vmatpush3.bf16.msra.mxu1 %v4807_v61  ;;  %v8922_v30 = vld [vmem:[#allocation38_spill] sm:$0xff]  ;;  %v6727_v1 = vld [vmem:[%s8418_s1 + $0x220] sm:$0xff]  ;;  %v6750_v61 = vsub.f32 %v6648_v57, %v8527_v5  ;;  %v6755_v32 = vsub.f32 %v6653_v20, %v8528_v41  ;;  %v8929_v41 = vand.u32 4294901760, %v6668_v28 }
  0xa6   :  { %4776 = vmatpush3.bf16.msra.mxu0 %v6639_v12  ;;  %v8923_v35 = vld [vmem:[#allocation42_spill] sm:$0xff]  ;;  %8924 = vst [vmem:[#allocation22_spill] sm:$0xff] %v6727_v1  ;;  %v8925_v39 = vld [vmem:[#allocation9_spill] sm:$0xff]  ;;  %8928 = vst [vmem:[#allocation27_spill] sm:$0xff] %v6761_v21  ;;  %v6769_v5 = vsub.f32 %v6663_v3, %v8532_v13  ;;  %v6786_v13 = vsub.f32 %v6680_v4, %v8932_v18  ;;  %v8933_v3 = vand.u32 4294901760, %v6685_v51  ;;  %v8941_v4 = vand.u32 4294901760, %v6704_v62 }
  0xa7   :  { %4810 = vmatprep.subr.bf16.mxu0 %v4809_v55  ;;  %4842 = vmatprep.subr.bf16.mxu1 %v8925_v39  ;;  %v6738_v49 = vld [vmem:[%s8418_s1 + $0x228] sm:$0xff]  ;;  %v6743_v55 = vld [vmem:[%s8418_s1 + $0x2b0] sm:$0xff]  ;;  %v6774_v11 = vsub.f32 %v6668_v28, %v8929_v41  ;;  %v6803_v57 = vld [vmem:[%s8418_s1 + $0x2c0] sm:$0xff]  ;;  %v8939_v28 = vand.u32 4294901760, %v6699_v10  ;;  %v8949_v39 = vand.u32 4294901760, %v6727_v1 }
  0xa8   :  { %8926 = vst [vmem:[#allocation23_spill] sm:$0xff] %v6738_v49  ;;  %8927 = vst [vmem:[#allocation24_spill] sm:$0xff] %v6743_v55  ;;  %1447 = vmatmul.mubr.f32.vlgmr.msra.gmra.mrb[6].mxu1 %v6572_v46  ;;  %v8931_v46 = vld [vmem:[#allocation15_spill] sm:$0xff]  ;;  %v6791_v41 = vsub.f32 %v6685_v51, %v8933_v3  ;;  %v8936_v18 = vld [vmem:[#allocation20_spill] sm:$0xff]  ;;  %v8937_v3 = vand.u32 4294901760, %v6694_v22 }
  0xa9   :  { %1215 = vmatmul.mubr.f32.vlgmr.msra.gmra.mrb[6].mxu0 %v1214_v0  ;;  %v6780_v0 = vld [vmem:[%s8418_s1 + $0x230] sm:$0xff]  ;;  %4844 = vmatpush3.bf16.msra.mxu1 %v8931_v46  ;;  %8935 = vst [vmem:[#allocation31_spill] sm:$0xff] %v6803_v57  ;;  %v6814_v20 = vsub.f32 %v6699_v10, %v8939_v28  ;;  %v6819_v46 = vsub.f32 %v6704_v62, %v8941_v4  ;;  %v8946_v28 = vand.u32 4294901760, %v6715_v45  ;;  %v6854_v62 = vld [vmem:[%s8418_s1 + $0x248] sm:$0xff]  ;;  %v8954_v4 = vand.u32 4294901760, %v6743_v55 }
  0xaa   :  { %8930 = vst [vmem:[#allocation16_spill] sm:$0xff] %v6780_v0  ;;  %4812 = vmatpush3.bf16.msra.mxu0 %v4811_v58  ;;  %v6798_v58 = vld [vmem:[%s8418_s1 + $0x238] sm:$0xff]  ;;  %4846 = vmatprep.subr.bf16.mxu1 %v8936_v18  ;;  %v6809_v51 = vsub.f32 %v6694_v22, %v8937_v3  ;;  %v8944_v18 = vld [vmem:[#allocation41_spill] sm:$0xff]  ;;  %v6841_v22 = vld [vmem:[%s8418_s1 + $0x240] sm:$0xff]  ;;  %v8959_v27 = vand.u32 4294901760, %v6780_v0 }
  0xab   :  { %8934 = vst [vmem:[#allocation30_spill] sm:$0xff] %v6798_v58  ;;  %4814 = vmatprep.subr.bf16.mxu0 %v4813_v42  ;;  %8940 = vst [vmem:[#allocation35_spill] sm:$0xff] %v6814_v20  ;;  %v6825_v42 = vld [vmem:[%s8418_s1 + $0x2c8] sm:$0xff]  ;;  %1582 = vmatprep.mubr.f32.mxu0 %v8944_v18  ;;  %v8945_v3 = vand.u32 4294901760, %v8944_v18  ;;  %v6833_v10 = vsub.f32 %v6715_v45, %v8946_v28  ;;  %v6846_v18 = vsub.f32 %v6727_v1, %v8949_v39  ;;  %v6875_v52 = vld [vmem:[%s8418_s1 + $0x2d0] sm:$0xff] }
  0xac   :  { %8938 = vst [vmem:[#allocation33_spill] sm:$0xff] %v6809_v51  ;;  %8942 = vst [vmem:[#allocation39_spill] sm:$0xff] %v6819_v46  ;;  %v8952_v45 = vld [vmem:[#allocation5_spill] sm:$0xff]  ;;  %v8953_v39 = vand.u32 4294901760, %v6738_v49  ;;  %v6869_v28 = vsub.f32 %v6743_v55, %v8954_v4  ;;  %v6897_v37 = vsub.f32 %v6780_v0, %v8959_v27  ;;  %v6905_v12 = vld [vmem:[%s8418_s1 + $0x250] sm:$0xff]  ;;  %v8968_v4 = vand.u32 4294901760, %v6825_v42 }
  0xad   :  { %8943 = vst [vmem:[#allocation40_spill] sm:$0xff] %v6825_v42  ;;  %1689 = vmatprep.mubr.f32.mxu1 %v8945_v3  ;;  %8947 = vst [vmem:[#allocation32_spill] sm:$0xff] %v6833_v10  ;;  %4848 = vmatpush3.bf16.msra.mxu1 %v8952_v45  ;;  %v6910_v55 = vld [vmem:[%s8418_s1 + $0x258] sm:$0xff]  ;;  %v6932_v45 = vld [vmem:[%s8418_s1 + $0x2e8] sm:$0xff] }
  0xae   :  { %8948 = vst [vmem:[#allocation38_spill] sm:$0xff] %v6841_v22  ;;  %8950 = vst [vmem:[#allocation42_spill] sm:$0xff] %v6854_v62  ;;  %4816 = vmatpush3.bf16.msra.mxu0 %v8951_v53  ;;  %v6863_v1 = vsub.f32 %v6738_v49, %v8953_v39  ;;  %v8957_v53 = vld [vmem:[#allocation14_spill] sm:$0xff]  ;;  %v8958_v39 = vand.u32 4294901760, %v6761_v21  ;;  %v6892_v49 = vld [vmem:[%s8418_s1 + $0x2d8] sm:$0xff]  ;;  %v6946_v0 = vsub.f32 %v6825_v42, %v8968_v4 }
  0xaf   :  { %8955 = vst [vmem:[#allocation41_spill] sm:$0xff] %v6875_v52  ;;  %4818 = vmatprep.subr.bf16.mxu0 %v8956_v63  ;;  %4850 = vmatprep.subr.bf16.mxu1 %v8957_v53  ;;  %8960 = vst [vmem:[#allocation59_spill] sm:$0xff] %v6897_v37  ;;  %v8965_v63 = vand.u32 4294901760, %v6803_v57  ;;  %v6927_v53 = vld [vmem:[%s8418_s1 + $0x2e0] sm:$0xff]  ;;  %v6971_v16 = vld [vmem:[%s8418_s1 + $0x2f0] sm:$0xff]  ;;  %v8980_v42 = vpack.c.bf16 %v6142_v34, %v6103_v44  ;;  %v8984_v44 = vand.u32 4294901760, %v6905_v12 }
  0xb0   :  { %v6884_v3 = vsub.f32 %v6761_v21, %v8958_v39  ;;  %8961 = vst [vmem:[#allocation60_spill] sm:$0xff] %v6905_v12  ;;  %8962 = vst [vmem:[#allocation61_spill] sm:$0xff] %v6910_v55  ;;  %v8963_v21 = vand.u32 4294901760, %v6798_v58 }
  0xb1   :  { %v6920_v39 = vsub.f32 %v6803_v57, %v8965_v63  ;;  %8966 = vst [vmem:[#allocation63_spill] sm:$0xff] %v6927_v53  ;;  %v8967_v63 = vpack.c.bf16 %v6053_v48, %v6048_v14  ;;  %4852 = vmatpush3.bf16.msra.mxu1 %v6516_v25  ;;  %v8969_v48 = vpack.c.bf16 %v6097_v31, %v6070_v43  ;;  %v8970_v14 = vand.u32 4294901760, %v6841_v22  ;;  %v6984_v57 = vld [vmem:[%s8418_s1 + $0x2f8] sm:$0xff] }
  0xb2   :  { %v6915_v27 = vsub.f32 %v6798_v58, %v8963_v21  ;;  %v6937_v21 = vld [vmem:[%s8418_s1 + $0x260] sm:$0xff]  ;;  %4854 = vmatprep.subr.bf16.mxu1 %v6536_v24  ;;  %8972 = vst [vmem:[#allocation65_spill] sm:$0xff] %v6971_v16  ;;  %v8973_v43 = vand.u32 4294901760, %v6854_v62  ;;  %8975 = vst [vmem:[#allocation67_spill] sm:$0xff] %v6984_v57  ;;  %v6989_v58 = vld [vmem:[%s8418_s1 + $0x270] sm:$0xff]  ;;  %v8983_v24 = vpack.c.bf16 %v6166_v36, %v6147_v26  ;;  %v8987_v26 = vand.u32 4294901760, %v6932_v45 }
  0xb3   :  { %4820 = vmatpush3.bf16.msra.mxu0 %v8967_v63  ;;  %v6963_v4 = vsub.f32 %v6841_v22, %v8970_v14  ;;  %8976 = vst [vmem:[#allocation68_spill] sm:$0xff] %v6989_v58  ;;  %v8977_v22 = vand.u32 4294901760, %v6875_v52  ;;  %v7023_v34 = vsub.f32 %v6905_v12, %v8984_v44  ;;  %v8986_v63 = vand.u32 4294901760, %v6927_v53 }
  0xb4   :  { %8964 = vst [vmem:[#allocation62_spill] sm:$0xff] %v6915_v27  ;;  %4822 = vmatprep.subr.bf16.mxu0 %v8969_v48  ;;  %v6976_v31 = vsub.f32 %v6854_v62, %v8973_v43  ;;  %v7002_v62 = vld [vmem:[%s8418_s1 + $0x278] sm:$0xff]  ;;  %v8988_v44 = vand.u32 4294901760, %v6937_v21 }
  0xb5   :  { %8971 = vst [vmem:[#allocation64_spill] sm:$0xff] %v6963_v4  ;;  %v6994_v43 = vsub.f32 %v6875_v52, %v8977_v22  ;;  %8979 = vst [vmem:[#allocation70_spill] sm:$0xff] %v7002_v62  ;;  %4856 = vmatpush3.bf16.msra.mxu1 %v6542_v33  ;;  %v8981_v22 = vand.u32 4294901760, %v6892_v49  ;;  %v7035_v36 = vsub.f32 %v6927_v53, %v8986_v63 }
  0xb6   :  { %8974 = vst [vmem:[#allocation66_spill] sm:$0xff] %v6976_v31  ;;  %4858 = vmatprep.subr.bf16.mxu1 %v6557_v54  ;;  %v7045_v12 = vsub.f32 %v6937_v21, %v8988_v44  ;;  %v8992_v53 = vpack.c.bf16 %v8923_v35, %v8922_v30  ;;  %v8995_v44 = vand.u32 4294901760, %v7002_v62  ;;  %v9002_v35 = vand.u32 4294901760, %v6786_v13 }
  0xb7   :  { %8978 = vst [vmem:[#allocation69_spill] sm:$0xff] %v6994_v43  ;;  %4824 = vmatpush3.bf16.msra.mxu0 %v8980_v42  ;;  %v7011_v52 = vsub.f32 %v6892_v49, %v8981_v22  ;;  %v8985_v42 = vand.u32 4294901760, %v6910_v55 }
  0xb8   :  { %4826 = vmatprep.subr.bf16.mxu0 %v8983_v24  ;;  %v7040_v24 = vsub.f32 %v6932_v45, %v8987_v26  ;;  %v8990_v26 = vpack.c.bf16 %v8920_v47, %v6193_v50  ;;  %v8993_v50 = vand.u32 4294901760, %v6984_v57  ;;  %v7087_v30 = vsub.f32 %v7002_v62, %v8995_v44 }
  0xb9   :  { %8982 = vst [vmem:[#allocation71_spill] sm:$0xff] %v7011_v52  ;;  %v7028_v22 = vsub.f32 %v6910_v55, %v8985_v42  ;;  %v8989_v55 = vand.u32 4294901760, %v6954_v59  ;;  %4860 = vmatpush3.bf16.msra.mxu1 %v6570_v60  ;;  %v8991_v42 = vand.u32 4294901760, %v6971_v16 }
  0xba   :  { %4862 = vmatprep.subr.bf16.mxu1 %v6578_v38  ;;  %v7075_v47 = vsub.f32 %v6984_v57, %v8993_v50  ;;  %v9005_v57 = vpack.c.bf16 %v6289_v29, %v6280_v40  ;;  %v9007_v50 = vand.u32 4294901760, %v6814_v20  ;;  %v9013_v40 = vand.u32 4294901760, %v6863_v1 }
  0xbb   :  { %v7053_v63 = vsub.f32 %v6954_v59, %v8989_v55  ;;  %4828 = vmatpush3.bf16.msra.mxu0 %v8990_v26  ;;  %v7064_v48 = vsub.f32 %v6971_v16, %v8991_v42  ;;  %v8994_v26 = vand.u32 4294901760, %v6989_v58  ;;  %v8999_v55 = vand.u32 4294901760, %v6769_v5 }
  0xbc   :  { %4830 = vmatprep.subr.bf16.mxu0 %v8992_v53  ;;  %v9000_v16 = vand.u32 4294901760, %v6774_v11  ;;  %v9003_v53 = vand.u32 4294901760, %v6791_v41 }
  0xbd   :  { %v7080_v42 = vsub.f32 %v6989_v58, %v8994_v26  ;;  %v8996_v26 = vand.u32 4294901760, %v6750_v61  ;;  %v8997_v58 = vand.u32 4294901760, %v6755_v32  ;;  %4864 = vmatpush3.bf16.msra.mxu1 %v6601_v56 }
  0xbe   :  { %v7103_v44 = vpack.c.bf16 %v9000_v16, %v8999_v55  ;;  %v7109_v62 = vpack.c.bf16 %v9003_v53, %v9002_v35  ;;  %v9009_v55 = vand.u32 4294901760, %v6819_v46  ;;  %v9012_v53 = vand.u32 4294901760, %v6846_v18  ;;  %4866 = vmatprep.subr.bf16.mxu1 %v6615_v19 }
  0xbf   :  { %v7097_v14 = vpack.c.bf16 %v8997_v58, %v8996_v26  ;;  %4832 = vmatpush3.bf16.msra.mxu0 %v9005_v57  ;;  %v9006_v26 = vand.u32 4294901760, %v6809_v51  ;;  %v9015_v57 = vpack.c.bf16 %v6301_v23, %v6295_v6  ;;  %v9017_v58 = vand.u32 4294901760, %v6884_v3 }
  0xc0   :  { %9001 = vst [vmem:[#allocation73_spill] sm:$0xff] %v7103_v44  ;;  %9004 = vst [vmem:[#allocation74_spill] sm:$0xff] %v7109_v62  ;;  %v9010_v44 = vand.u32 4294901760, %v6833_v10  ;;  %v7132_v29 = vpack.c.bf16 %v9013_v40, %v9012_v53  ;;  %v9022_v40 = vand.u32 4294901760, %v6920_v39  ;;  %v9023_v6 = vand.u32 4294901760, %v6946_v0 }
  0xc1   :  { %8998 = vst [vmem:[#allocation72_spill] sm:$0xff] %v7097_v14  ;;  %v7120_v16 = vpack.c.bf16 %v9007_v50, %v9006_v26  ;;  %4834 = vmatprep.subr.bf16.mxu0 %v9015_v57  ;;  %v9016_v26 = vand.u32 4294901760, %v6869_v28  ;;  %v9025_v57 = vand.u32 4294901760, %v6963_v4  ;;  %v9026_v50 = vand.u32 4294901760, %v6976_v31  ;;  %4868 = vmatpush3.bf16.msra.mxu1 %v6623_v8  ;;  %v9091_v14 = vld [vmem:[#allocation8_spill] sm:$0xff] }
  0xc2   :  { %v7126_v35 = vpack.c.bf16 %v9010_v44, %v9009_v55  ;;  %9014 = vst [vmem:[#allocation77_spill] sm:$0xff] %v7132_v29  ;;  %v9019_v55 = vand.u32 4294901760, %v6897_v37  ;;  %v7155_v23 = vpack.c.bf16 %v9023_v6, %v9022_v40  ;;  %v9034_v40 = vand.u32 4294901760, %v7035_v36 }
  0xc3   :  { %9008 = vst [vmem:[#allocation75_spill] sm:$0xff] %v7120_v16  ;;  %v7143_v44 = vpack.c.bf16 %v9017_v58, %v9016_v26  ;;  %v7161_v29 = vpack.c.bf16 %v9026_v50, %v9025_v57  ;;  %v9028_v58 = vand.u32 4294901760, %v6994_v43  ;;  %v9029_v26 = vand.u32 4294901760, %v7011_v52  ;;  %v9044_v50 = vld [vmem:[#allocation17_spill] sm:$0xff] }
  0xc4   :  { %9011 = vst [vmem:[#allocation76_spill] sm:$0xff] %v7126_v35  ;;  %v9020_v35 = vand.u32 4294901760, %v6915_v27  ;;  %9024 = vst [vmem:[#allocation80_spill] sm:$0xff] %v7155_v23  ;;  %v9035_v6 = vand.u32 4294901760, %v7040_v24 }
  0xc5   :  { %9018 = vst [vmem:[#allocation78_spill] sm:$0xff] %v7143_v44  ;;  %9027 = vst [vmem:[#allocation81_spill] sm:$0xff] %v7161_v29  ;;  %v7167_v44 = vpack.c.bf16 %v9029_v26, %v9028_v58  ;;  %v9037_v29 = vand.u32 4294901760, %v7045_v12  ;;  %v9038_v58 = vand.u32 4294901760, %v7053_v63 }
  0xc6   :  { %v7149_v53 = vpack.c.bf16 %v9020_v35, %v9019_v55  ;;  %v9031_v35 = vand.u32 4294901760, %v7023_v34  ;;  %v9032_v55 = vand.u32 4294901760, %v7028_v22  ;;  %v7179_v23 = vpack.c.bf16 %v9035_v6, %v9034_v40 }
  0xc7   :  { %9030 = vst [vmem:[#allocation82_spill] sm:$0xff] %v7167_v44  ;;  %v7187_v26 = vpack.c.bf16 %v9038_v58, %v9037_v29  ;;  %v9041_v40 = vand.u32 4294901760, %v7064_v48  ;;  %v9042_v6 = vand.u32 4294901760, %v7075_v47  ;;  %v9046_v29 = vld [vmem:[#allocation26_spill] sm:$0xff]  ;;  %v9087_v44 = vld [vmem:[#allocation37_spill] sm:$0xff] }
  0xc8   :  { %9021 = vst [vmem:[#allocation79_spill] sm:$0xff] %v7149_v53  ;;  %v7173_v53 = vpack.c.bf16 %v9032_v55, %v9031_v35  ;;  %9036 = vst [vmem:[#allocation84_spill] sm:$0xff] %v7179_v23  ;;  %v9040_v35 = vpack.c.bf16 %v6312_v7, %v6307_v9  ;;  %v4839_v55 = vpack.c.bf16 %v6342_v17, %v6334_v2  ;;  %4870 = vmatprep.subr.bf16.mxu1 %v9046_v29  ;;  %v9050_v2 = vld [vmem:[#allocation34_spill] sm:$0xff]  ;;  %v9051_v17 = vld [vmem:[#allocation43_spill] sm:$0xff] }
  0xc9   :  { %9039 = vst [vmem:[#allocation85_spill] sm:$0xff] %v7187_v26  ;;  %v7199_v57 = vpack.c.bf16 %v9042_v6, %v9041_v40  ;;  %v9045_v23 = vpack.c.bf16 %v6323_v15, %v9044_v50  ;;  %v9047_v7 = vand.u32 4294901760, %v7080_v42  ;;  %v9048_v9 = vand.u32 4294901760, %v7087_v30  ;;  %4872 = vmatpush3.bf16.msra.mxu1 %v9050_v2  ;;  %v9053_v40 = vld [vmem:[#allocation25_spill] sm:$0xff]  ;;  %v9056_v50 = vld [vmem:[#allocation15_spill] sm:$0xff] }
  0xca   :  { %9033 = vst [vmem:[#allocation83_spill] sm:$0xff] %v7173_v53  ;;  %4836 = vmatpush3.bf16.msra.mxu0 %v9040_v35  ;;  %v9052_v35 = vld [vmem:[#allocation9_spill] sm:$0xff]  ;;  %v9054_v15 = vand.u32 4294901760, %v9053_v40 }
  0xcb   :  { %9043 = vst [vmem:[#allocation86_spill] sm:$0xff] %v7199_v57  ;;  %4838 = vmatprep.subr.bf16.mxu0 %v9045_v23  ;;  %v7209_v58 = vpack.c.bf16 %v9048_v9, %v9047_v7  ;;  %4906 = vmatprep.subr.bf16.mxu1 %v9052_v35  ;;  %v9055_v23 = vld [vmem:[#allocation44_spill] sm:$0xff]  ;;  %v9057_v6 = vld [vmem:[#allocation45_spill] sm:$0xff]  ;;  %v9060_v35 = vld [vmem:[#allocation46_spill] sm:$0xff] }
  0xcc   :  { %1693 = vmatmul.mubr.f32.vlgmr.msra.gmra.mrb[8].mxu1 %v9054_v15  ;;  %v9058_v7 = vld [vmem:[#allocation20_spill] sm:$0xff]  ;;  %v5331_v9 = vld [vmem:[%s8417_s0 + $0x8] ss:$16 sps:$4 sm:$0xff]   ;;  %v9067_v57 = vld [vmem:[#allocation6_spill] sm:$0xff] }
  0xcd   :  { %9049 = vst [vmem:[#allocation17_spill] sm:$0xff] %v7209_v58  ;;  %4908 = vmatpush3.bf16.msra.mxu1 %v9056_v50  ;;  %v9062_v15 = vld [vmem:[#allocation47_spill] sm:$0xff]  ;;  %v9064_v50 = vld [vmem:[#allocation12_spill] sm:$0xff]  ;;  %v9066_v58 = vld [vmem:[#allocation49_spill] sm:$0xff] }
  0xce   :  { %4840 = vmatpush3.bf16.msra.mxu0 %v4839_v55  ;;  %4910 = vmatprep.subr.bf16.mxu1 %v9058_v7  ;;  %v9059_v55 = vld [vmem:[#allocation36_spill] sm:$0xff] }
  0xcf   :  { %4874 = vmatprep.subr.bf16.mxu0 %v9051_v17  ;;  %1963 = vmatprep.mubr.f32.mxu1 %v9059_v55  ;;  %v5333_v17 = vld [vmem:[%s8417_s0 + $0x28] ss:$16 sps:$4 sm:$0xff]  }
  0xd0   :  { %v7237_v7 = vrot.slane %v5333_v17, %v9064_v50 }
  0xd1   :  { %1585 = vmatmul.mubr.f32.vlgmr.msra.gmra.mrb[8].mxu0 %v9053_v40  ;;  %v9061_v40 = vld [vmem:[#allocation5_spill] sm:$0xff] }
  0xd2   :  { %4876 = vmatpush3.bf16.msra.mxu0 %v9055_v23  ;;  %1859 = vmatprep.mubr.f32.mxu0 %v9059_v55  ;;  %v9063_v23 = vld [vmem:[#allocation14_spill] sm:$0xff]  ;;  %v9065_v55 = vld [vmem:[#allocation48_spill] sm:$0xff] }
  0xd3   :  { %4878 = vmatprep.subr.bf16.mxu0 %v9057_v6  ;;  %4912 = vmatpush3.bf16.msra.mxu1 %v9061_v40  ;;  %v7234_v6 = vrot.slane %v5331_v9, %v9064_v50  ;;  %v9068_v40 = vld [vmem:[#allocation50_spill] sm:$0xff]  ;;  %v9069_v9 = vld [vmem:[#allocation51_spill] sm:$0xff] }
  0xd4   :  { %4914 = vmatprep.subr.bf16.mxu1 %v9063_v23  ;;  %v9089_v50 = vld [vmem:[#allocation7_spill] sm:$0xff] }
  0xd5   :  { %v9090_v16 = vand.u32 4294901760, %v9089_v50  ;;  %v9098_v50 = vld [vmem:[#allocation19_spill] sm:$0xff] }
  0xd6   :  { %4880 = vmatpush3.bf16.msra.mxu0 %v9060_v35  ;;  %v235_v35 = vcombine.high %v7234_v6, %v7237_v7 }
  0xd7   :  { %4882 = vmatprep.subr.bf16.mxu0 %v9062_v15  ;;  %4916 = vmatpush3.bf16.msra.mxu1 %v6516_v25  ;;  %v9071_v15 = vld [vmem:[#allocation52_spill] sm:$0xff]  ;;  %v9072_v25 = vld [vmem:[#allocation53_spill] sm:$0xff] }
  0xd8   :  { %4918 = vmatprep.subr.bf16.mxu1 %v9067_v57  ;;  %v7249_v17 = vand.u32 4294901760, %v235_v35  ;;  %v9073_v57 = vand.u32 4294901760, %v6750_v61 }
  0xda   :  { %4884 = vmatpush3.bf16.msra.mxu0 %v9065_v55  ;;  %9070 = vst [vmem:[#allocation26_spill] sm:$0xff] %v7249_v17  ;;  %v9075_v55 = vand.u32 4294901760, %v6769_v5 }
  0xdb   :  { %4886 = vmatprep.subr.bf16.mxu0 %v9066_v58  ;;  %4920 = vmatpush3.bf16.msra.mxu1 %v6542_v33  ;;  %v2198_v58 = vsub.f32 %v6750_v61, %v9073_v57  ;;  %v9074_v33 = vand.u32 4294901760, %v6755_v32 }
  0xdc   :  { %4922 = vmatprep.subr.bf16.mxu1 %v6557_v54  ;;  %v7262_v54 = vsub.f32 %v235_v35, %v7249_v17  ;;  %v9079_v35 = vand.u32 4294901760, %v6786_v13 }
  0xdd   :  { %v2205_v23 = vsub.f32 %v6755_v32, %v9074_v33 }
  0xde   :  { %4888 = vmatpush3.bf16.msra.mxu0 %v9068_v40  ;;  %v2086_v40 = vsub.f32 %v6769_v5, %v9075_v55  ;;  %v2212_v33 = vsub.f32 %v6786_v13, %v9079_v35  ;;  %v9080_v55 = vand.u32 4294901760, %v6791_v41  ;;  %v9084_v35 = vand.u32 4294901760, %v6819_v46 }
  0xdf   :  { %4890 = vmatprep.subr.bf16.mxu0 %v9069_v9  ;;  %4924 = vmatpush3.bf16.msra.mxu1 %v6570_v60  ;;  %v9076_v60 = vand.u32 4294901760, %v6774_v11  ;;  %v2206_v57 = vand.u32 4294901760, %v2205_v23  ;;  %v9083_v23 = vld [vmem:[#allocation56_spill] sm:$0xff] }
  0xe0   :  { %4926 = vmatprep.subr.bf16.mxu1 %v6578_v38  ;;  %v9077_v38 = vld [vmem:[#allocation54_spill] sm:$0xff]  ;;  %v2219_v26 = vsub.f32 %v6791_v41, %v9080_v55  ;;  %v2087_v53 = vand.u32 4294901760, %v2086_v40  ;;  %v2226_v55 = vsub.f32 %v6819_v46, %v9084_v35  ;;  %v9093_v35 = vld [vmem:[#allocation11_spill] sm:$0xff] }
  0xe1   :  { %v2093_v9 = vsub.f32 %v6774_v11, %v9076_v60  ;;  %v9085_v60 = vand.u32 4294901760, %v6833_v10  ;;  %v9094_v46 = vand.u32 4294901760, %v9093_v35  ;;  %v9102_v35 = vand.u32 4294901760, %v6863_v1 }
  0xe2   :  { %4892 = vmatpush3.bf16.msra.mxu0 %v9071_v15  ;;  %v9078_v15 = vld [vmem:[#allocation55_spill] sm:$0xff] }
  0xe3   :  { %4894 = vmatprep.subr.bf16.mxu0 %v9072_v25  ;;  %4928 = vmatpush3.bf16.msra.mxu1 %v6601_v56  ;;  %v2199_v25 = vand.u32 4294901760, %v2198_v58  ;;  %v9081_v56 = vand.u32 4294901760, %v6809_v51  ;;  %v2233_v40 = vsub.f32 %v6833_v10, %v9085_v60  ;;  %v9095_v60 = vand.u32 4294901760, %v7262_v54 }
  0xe4   :  { %4930 = vmatprep.subr.bf16.mxu1 %v6615_v19  ;;  %v9082_v19 = vand.u32 4294901760, %v6814_v20 }
  0xe6   :  { %4896 = vmatpush3.bf16.msra.mxu0 %v9077_v38  ;;  %v2094_v38 = vand.u32 4294901760, %v2093_v9  ;;  %v2107_v58 = vsub.f32 %v6814_v20, %v9082_v19  ;;  %v9086_v9 = vld [vmem:[#allocation57_spill] sm:$0xff]  ;;  %v4969_v19 = vpack.c.bf16 %v2206_v57, %v2199_v25  ;;  %v9092_v20 = vand.u32 4294901760, %v9091_v14 }
  0xe7   :  { %4898 = vmatprep.subr.bf16.mxu0 %v9078_v15  ;;  %v2100_v15 = vsub.f32 %v6809_v51, %v9081_v56  ;;  %4932 = vmatpush3.bf16.msra.mxu1 %v6623_v8  ;;  %v9088_v56 = vand.u32 4294901760, %v9087_v44  ;;  %v2213_v8 = vand.u32 4294901760, %v2212_v33  ;;  %v9096_v44 = vld [vmem:[#allocation18_spill] sm:$0xff]  ;;  %v2227_v14 = vand.u32 4294901760, %v2226_v55 }
  0xe8   :  { %4934 = vmatprep.subr.bf16.mxu1 %v9046_v29  ;;  %v7307_v51 = vpack.c.bf16 %v9094_v46, %v9092_v20  ;;  %v9097_v10 = vand.u32 4294901760, %v9096_v44  ;;  %v4971_v29 = vpack.c.bf16 %v2094_v38, %v2087_v53  ;;  %v2108_v57 = vand.u32 4294901760, %v2107_v58  ;;  %v9105_v58 = vld [vmem:[#allocation13_spill] sm:$0xff] }
  0xe9   :  { %v7300_v62 = vpack.c.bf16 %v9090_v16, %v9088_v56  ;;  %v9099_v16 = vand.u32 4294901760, %v9098_v50  ;;  %v2101_v25 = vand.u32 4294901760, %v2100_v15  ;;  %v2234_v46 = vand.u32 4294901760, %v2233_v40  ;;  %v9107_v40 = vld [vmem:[#allocation29_spill] sm:$0xff] }
  0xea   :  { %4900 = vmatpush3.bf16.msra.mxu0 %v9083_v23  ;;  %v2220_v23 = vand.u32 4294901760, %v2219_v26  ;;  %v9100_v26 = vld [vmem:[#allocation58_spill] sm:$0xff]  ;;  %v9101_v20 = vand.u32 4294901760, %v6846_v18  ;;  %v9103_v53 = vand.u32 4294901760, %v6869_v28  ;;  %v9106_v55 = vand.u32 4294901760, %v9105_v58 }
  0xeb   :  { %4902 = vmatprep.subr.bf16.mxu0 %v9086_v9  ;;  %v2069_v9 = vsub.f32 %v7262_v54, %v9095_v60  ;;  %v7316_v56 = vpack.c.bf16 %v9099_v16, %v9097_v10  ;;  %4936 = vmatpush3.bf16.msra.mxu1 %v9050_v2  ;;  %v2121_v60 = vsub.f32 %v6863_v1, %v9102_v35  ;;  %v9104_v2 = vand.u32 4294901760, %v6884_v3 }
  0xec   :  { %v2114_v33 = vsub.f32 %v6846_v18, %v9101_v20  ;;  %4970 = vmatprep.subr.bf16.mxu1 %v4969_v19  ;;  %v4973_v10 = vpack.c.bf16 %v2220_v23, %v2213_v8  ;;  %v2240_v38 = vsub.f32 %v6869_v28, %v9103_v53  ;;  %v9108_v44 = vand.u32 4294901760, %v9107_v40  ;;  %v9110_v19 = vld [vmem:[#allocation28_spill] sm:$0xff]  ;;  %v9112_v23 = vld [vmem:[#allocation21_spill] sm:$0xff] }
  0xed   :  { %v2247_v15 = vsub.f32 %v6884_v3, %v9104_v2  ;;  %v2070_v16 = vand.u32 4294901760, %v2069_v9  ;;  %v9111_v8 = vand.u32 4294901760, %v9110_v19  ;;  %v9113_v20 = vand.u32 4294901760, %v9112_v23 }
  0xee   :  { %4904 = vmatpush3.bf16.msra.mxu0 %v9100_v26  ;;  %v7337_v50 = vpack.c.bf16 %v9108_v44, %v9106_v55  ;;  %v9109_v26 = vld [vmem:[#allocation10_spill] sm:$0xff]  ;;  %v9114_v53 = vand.u32 4294901760, %v6897_v37  ;;  %v9115_v58 = vand.u32 4294901760, %v6915_v27  ;;  %v4975_v9 = vpack.c.bf16 %v2108_v57, %v2101_v25 }
  0xef   :  { %4938 = vmatprep.subr.bf16.mxu0 %v7300_v62  ;;  %1965 = vmatmul.mubr.f32.vlgmr.msra.gmra.mrb[10].mxu1 %v9109_v26  ;;  %v7345_v35 = vpack.c.bf16 %v9113_v20, %v9111_v8  ;;  %v4977_v40 = vpack.c.bf16 %v2234_v46, %v2227_v14  ;;  %v2115_v44 = vand.u32 4294901760, %v2114_v33  ;;  %v2241_v19 = vand.u32 4294901760, %v2240_v38 }
  0xf0   :  { %v2128_v2 = vsub.f32 %v6897_v37, %v9114_v53  ;;  %v2135_v55 = vsub.f32 %v6915_v27, %v9115_v58  ;;  %4972 = vmatpush3.bf16.msra.mxu1 %v4971_v29  ;;  %v2248_v8 = vand.u32 4294901760, %v2247_v15  ;;  %v9116_v23 = vand.u32 4294901760, %v6920_v39  ;;  %v9118_v27 = vld [vmem:[#allocation22_spill] sm:$0xff]  ;;  %v9120_v29 = vld [vmem:[#allocation23_spill] sm:$0xff]  ;;  %2307 = vmatprep.mubr.f32.mxu1 %v7249_v17 }
  0xf1   :  { %1861 = vmatmul.mubr.f32.vlgmr.msra.gmra.mrb[10].mxu0 %v9109_v26  ;;  %v2122_v26 = vand.u32 4294901760, %v2121_v60  ;;  %4974 = vmatprep.subr.bf16.mxu1 %v4973_v10  ;;  %v9117_v53 = vand.u32 4294901760, %v6946_v0  ;;  %v9119_v37 = vand.u32 4294901760, %v9118_v27  ;;  %v9121_v25 = vand.u32 4294901760, %v9120_v29  ;;  %v9132_v17 = vld [vmem:[#allocation30_spill] sm:$0xff] }
  0xf2   :  { %4940 = vmatpush3.bf16.msra.mxu0 %v7307_v51  ;;  %v2254_v20 = vsub.f32 %v6920_v39, %v9116_v23  ;;  %2071 = vmatprep.mubr.f32.mxu0 %v2070_v16  ;;  %v2129_v14 = vand.u32 4294901760, %v2128_v2  ;;  %v2136_v46 = vand.u32 4294901760, %v2135_v55  ;;  %v9122_v33 = vand.u32 4294901760, %v6963_v4  ;;  %v9126_v55 = vld [vmem:[#allocation24_spill] sm:$0xff] }
  0xf3   :  { %4942 = vmatprep.subr.bf16.mxu0 %v7316_v56  ;;  %v2261_v58 = vsub.f32 %v6946_v0, %v9117_v53  ;;  %v7365_v57 = vpack.c.bf16 %v9121_v25, %v9119_v37  ;;  %v9123_v10 = vand.u32 4294901760, %v6976_v31  ;;  %v4979_v27 = vpack.c.bf16 %v2122_v26, %v2115_v44  ;;  %v9128_v53 = vld [vmem:[#allocation27_spill] sm:$0xff]  ;;  %v9130_v26 = vld [vmem:[#allocation16_spill] sm:$0xff] }
  0xf4   :  { %v2142_v60 = vsub.f32 %v6963_v4, %v9122_v33  ;;  %4976 = vmatpush3.bf16.msra.mxu1 %v4975_v9  ;;  %v9124_v37 = vand.u32 4294901760, %v6994_v43  ;;  %v9125_v16 = vand.u32 4294901760, %v7011_v52  ;;  %v9127_v23 = vand.u32 4294901760, %v9126_v55  ;;  %v9136_v55 = vld [vmem:[#allocation40_spill] sm:$0xff] }
  0xf5   :  { %v2149_v38 = vsub.f32 %v6976_v31, %v9123_v10  ;;  %v9129_v29 = vand.u32 4294901760, %v9128_v53  ;;  %4978 = vmatprep.subr.bf16.mxu1 %v4977_v40  ;;  %v4981_v33 = vpack.c.bf16 %v2248_v8, %v2241_v19  ;;  %v2255_v9 = vand.u32 4294901760, %v2254_v20 }
  0xf6   :  { %4944 = vmatpush3.bf16.msra.mxu0 %v7337_v50  ;;  %v2268_v15 = vsub.f32 %v6994_v43, %v9124_v37  ;;  %v2275_v2 = vsub.f32 %v7011_v52, %v9125_v16  ;;  %v2262_v44 = vand.u32 4294901760, %v2261_v58  ;;  %v9131_v10 = vand.u32 4294901760, %v9130_v26  ;;  %v9134_v52 = vld [vmem:[#allocation31_spill] sm:$0xff]  ;;  %v9147_v26 = vld [vmem:[#allocation41_spill] sm:$0xff] }
  0xf7   :  { %4946 = vmatprep.subr.bf16.mxu0 %v7345_v35  ;;  %v7386_v25 = vpack.c.bf16 %v9129_v29, %v9127_v23  ;;  %v9133_v37 = vand.u32 4294901760, %v9132_v17  ;;  %v234_v16 = vcombine.low %v7234_v6, %v7237_v7  ;;  %v9135_v31 = vand.u32 4294901760, %v9134_v52 }
  0xf8   :  { %v9137_v4 = vand.u32 4294901760, %v9136_v55  ;;  %v4983_v23 = vpack.c.bf16 %v2136_v46, %v2129_v14  ;;  %v2143_v40 = vand.u32 4294901760, %v2142_v60  ;;  %v2150_v19 = vand.u32 4294901760, %v2149_v38  ;;  %4980 = vmatpush3.bf16.msra.mxu1 %v4979_v27  ;;  %v9143_v38 = vld [vmem:[#allocation38_spill] sm:$0xff] }
  0xf9   :  { %v7392_v43 = vpack.c.bf16 %v9133_v37, %v9131_v10  ;;  %v2269_v8 = vand.u32 4294901760, %v2268_v15  ;;  %v2276_v20 = vand.u32 4294901760, %v2275_v2  ;;  %v9138_v17 = vand.u32 4294901760, %v7023_v34  ;;  %4982 = vmatprep.subr.bf16.mxu1 %v4981_v33  ;;  %v9145_v15 = vld [vmem:[#allocation42_spill] sm:$0xff] }
  0xfa   :  { %v7400_v53 = vpack.c.bf16 %v9137_v4, %v9135_v31  ;;  %4948 = vmatpush3.bf16.msra.mxu0 %v7365_v57  ;;  %v9139_v6 = vand.u32 4294901760, %v7028_v22  ;;  %v4985_v4 = vpack.c.bf16 %v2262_v44, %v2255_v9  ;;  %v9140_v31 = vand.u32 4294901760, %v7035_v36 }
  0xfb   :  { %v2156_v58 = vsub.f32 %v7023_v34, %v9138_v17  ;;  %4950 = vmatprep.subr.bf16.mxu0 %v7386_v25  ;;  %v9141_v14 = vand.u32 4294901760, %v7040_v24  ;;  %v7416_v60 = vand.u32 4294901760, %v234_v16  ;;  %v9144_v27 = vand.u32 4294901760, %v9143_v38 }
  0xfc   :  { %v2163_v52 = vsub.f32 %v7028_v22, %v9139_v6  ;;  %v2282_v7 = vsub.f32 %v7035_v36, %v9140_v31  ;;  %v9146_v2 = vand.u32 4294901760, %v9145_v15  ;;  %v9148_v10 = vand.u32 4294901760, %v9147_v26  ;;  %4984 = vmatpush3.bf16.msra.mxu1 %v4983_v23  ;;  %v9155_v23 = vld [vmem:[#allocation60_spill] sm:$0xff] }
  0xfd   :  { %v2289_v46 = vsub.f32 %v7040_v24, %v9141_v14  ;;  %9142 = vst [vmem:[#allocation34_spill] sm:$0xff] %v7416_v60  ;;  %v9149_v33 = vand.u32 4294901760, %v6892_v49  ;;  %v9150_v44 = vand.u32 4294901760, %v7045_v12  ;;  %v9151_v55 = vand.u32 4294901760, %v7053_v63  ;;  %4986 = vmatprep.subr.bf16.mxu1 %v4985_v4 }
  0xfe   :  { %v7422_v29 = vpack.c.bf16 %v9146_v2, %v9144_v27  ;;  %4952 = vmatpush3.bf16.msra.mxu0 %v7392_v43  ;;  %v4987_v6 = vpack.c.bf16 %v2150_v19, %v2143_v40  ;;  %v4989_v31 = vpack.c.bf16 %v2276_v20, %v2269_v8  ;;  %v2157_v14 = vand.u32 4294901760, %v2156_v58  ;;  %v9157_v19 = vld [vmem:[#allocation61_spill] sm:$0xff] }
  0xff   :  { %v7428_v9 = vpack.c.bf16 %v9149_v33, %v9148_v10  ;;  %v2170_v37 = vsub.f32 %v7045_v12, %v9150_v44  ;;  %v2177_v17 = vsub.f32 %v7053_v63, %v9151_v55  ;;  %v2164_v38 = vand.u32 4294901760, %v2163_v52  ;;  %4954 = vmatprep.subr.bf16.mxu0 %v7400_v53  ;;  %v7463_v55 = vld [vmem:[%s8418_s1 + $0x380] sm:$0xff] }
 0x100   :  { %v2283_v49 = vand.u32 4294901760, %v2282_v7  ;;  %v2290_v27 = vand.u32 4294901760, %v2289_v46  ;;  %v9152_v15 = vand.u32 4294901760, %v7064_v48  ;;  %v9153_v26 = vand.u32 4294901760, %v7075_v47  ;;  %4988 = vmatpush3.bf16.msra.mxu1 %v4987_v6  ;;  %9161 = vst [vmem:[#allocation9_spill] sm:$0xff] %v7463_v55 }
 0x101   :  { %v7445_v33 = vsub.f32 %v234_v16, %v7416_v60  ;;  %v9156_v40 = vand.u32 4294901760, %v9155_v23  ;;  %v9158_v8 = vand.u32 4294901760, %v9157_v19  ;;  %v2171_v58 = vand.u32 4294901760, %v2170_v37  ;;  %v7468_v37 = vld [vmem:[%s8418_s1 + $0x388] sm:$0xff]  ;;  %4990 = vmatprep.subr.bf16.mxu1 %v4989_v31 }
 0x102   :  { %v2296_v2 = vsub.f32 %v7064_v48, %v9152_v15  ;;  %v2303_v10 = vsub.f32 %v7075_v47, %v9153_v26  ;;  %v2178_v52 = vand.u32 4294901760, %v2177_v17  ;;  %4956 = vmatpush3.bf16.msra.mxu0 %v7422_v29  ;;  %v4991_v4 = vpack.c.bf16 %v2164_v38, %v2157_v14  ;;  %9162 = vst [vmem:[#allocation25_spill] sm:$0xff] %v7468_v37  ;;  %v9163_v17 = vld [vmem:[#allocation63_spill] sm:$0xff]  ;;  %v7485_v19 = vld [vmem:[%s8418_s1 + $0x308] sm:$0xff] }
 0x103   :  { %9154 = vst [vmem:[#allocation43_spill] sm:$0xff] %v7445_v33  ;;  %v7451_v20 = vpack.c.bf16 %v9158_v8, %v9156_v40  ;;  %v9159_v7 = vand.u32 4294901760, %v7080_v42  ;;  %v9160_v44 = vand.u32 4294901760, %v7087_v30  ;;  %4958 = vmatprep.subr.bf16.mxu0 %v7428_v9  ;;  %v9164_v6 = vand.u32 4294901760, %v9163_v17  ;;  %v7480_v40 = vld [vmem:[%s8418_s1 + $0x300] sm:$0xff]  ;;  %9167 = vst [vmem:[#allocation15_spill] sm:$0xff] %v7485_v19 }
 0x104   :  { %v9165_v14 = vand.u32 4294901760, %v6932_v45  ;;  %v4993_v15 = vpack.c.bf16 %v2290_v27, %v2283_v49  ;;  %v2297_v26 = vand.u32 4294901760, %v2296_v2  ;;  %v2304_v23 = vand.u32 4294901760, %v2303_v10  ;;  %9166 = vst [vmem:[#allocation44_spill] sm:$0xff] %v7480_v40  ;;  %v9170_v49 = vld [vmem:[#allocation65_spill] sm:$0xff]  ;;  %v9172_v2 = vld [vmem:[#allocation67_spill] sm:$0xff]  ;;  %4992 = vmatpush3.bf16.msra.mxu1 %v4991_v4 }
 0x105   :  { %v2184_v46 = vsub.f32 %v7080_v42, %v9159_v7  ;;  %v2191_v16 = vsub.f32 %v7087_v30, %v9160_v44  ;;  %v9168_v8 = vand.u32 4294901760, %v6937_v21  ;;  %v9169_v45 = vand.u32 4294901760, %v6954_v59  ;;  %v7505_v21 = vld [vmem:[%s8418_s1 + $0x390] sm:$0xff]  ;;  %v7510_v59 = vld [vmem:[%s8418_s1 + $0x398] sm:$0xff] }
 0x106   :  { %v7475_v38 = vpack.c.bf16 %v9165_v14, %v9164_v6  ;;  %v8581_v31 = vand.u32 4294901760, %v7445_v33  ;;  %v9171_v27 = vand.u32 4294901760, %v9170_v49  ;;  %v9173_v10 = vand.u32 4294901760, %v9172_v2  ;;  %9174 = vst [vmem:[#allocation45_spill] sm:$0xff] %v7505_v21  ;;  %9175 = vst [vmem:[#allocation20_spill] sm:$0xff] %v7510_v59  ;;  %4960 = vmatpush3.bf16.msra.mxu0 %v7451_v20  ;;  %v7518_v49 = vld [vmem:[%s8418_s1 + $0x310] sm:$0xff]  ;;  %4994 = vmatprep.subr.bf16.mxu1 %v4993_v15 }
 0x107   :  { %v7491_v7 = vpack.c.bf16 %v9169_v45, %v9168_v8  ;;  %v4995_v17 = vpack.c.bf16 %v2178_v52, %v2171_v58  ;;  %v2185_v8 = vand.u32 4294901760, %v2184_v46  ;;  %v2192_v45 = vand.u32 4294901760, %v2191_v16  ;;  %9176 = vst [vmem:[#allocation36_spill] sm:$0xff] %v7518_v49  ;;  %v9178_v2 = vld [vmem:[#allocation68_spill] sm:$0xff]  ;;  %v9180_v46 = vld [vmem:[#allocation70_spill] sm:$0xff] }
 0x108   :  { %v7498_v44 = vpack.c.bf16 %v9173_v10, %v9171_v27  ;;  %v7523_v27 = vld [vmem:[%s8418_s1 + $0x318] sm:$0xff]  ;;  %4962 = vmatprep.subr.bf16.mxu0 %v7475_v38  ;;  %v9179_v4 = vand.u32 4294901760, %v9178_v2  ;;  %v9181_v16 = vand.u32 4294901760, %v9180_v46  ;;  %v5001_v52 = vpack.c.bf16 %v6755_v32, %v6750_v61  ;;  %v7537_v14 = vld [vmem:[%s8418_s1 + $0x3a0] sm:$0xff]  ;;  %v7549_v32 = vld [vmem:[%s8418_s1 + $0x3a8] sm:$0xff] }
 0x109   :  { %9177 = vst [vmem:[#allocation46_spill] sm:$0xff] %v7523_v27  ;;  %v4997_v58 = vpack.c.bf16 %v2304_v23, %v2297_v26  ;;  %9182 = vst [vmem:[#allocation5_spill] sm:$0xff] %v7537_v14  ;;  %v2075_v6 = vsub.f32 %v7445_v33, %v8581_v31  ;;  %v5003_v2 = vpack.c.bf16 %v6774_v11, %v6769_v5  ;;  %v7554_v61 = vld [vmem:[%s8418_s1 + $0x320] sm:$0xff]  ;;  %v9185_v26 = vand.u32 4294901760, %v7463_v55  ;;  %v7571_v31 = vld [vmem:[%s8418_s1 + $0x328] sm:$0xff] }
 0x10a   :  { %v7530_v10 = vpack.c.bf16 %v9181_v16, %v9179_v4  ;;  %9183 = vst [vmem:[#allocation47_spill] sm:$0xff] %v7549_v32  ;;  %9184 = vst [vmem:[#allocation14_spill] sm:$0xff] %v7554_v61  ;;  %v9186_v5 = vand.u32 4294901760, %v7468_v37  ;;  %4964 = vmatpush3.bf16.msra.mxu0 %v7491_v7  ;;  %4996 = vmatpush3.bf16.msra.mxu1 %v4995_v17  ;;  %v4999_v15 = vpack.c.bf16 %v2192_v45, %v2185_v8  ;;  %v9191_v17 = vld [vmem:[#allocation33_spill] sm:$0xff]  ;;  %v9192_v8 = vld [vmem:[#allocation35_spill] sm:$0xff] }
 0x10b   :  { %v7559_v23 = vsub.f32 %v7463_v55, %v9185_v26  ;;  %9187 = vst [vmem:[#allocation48_spill] sm:$0xff] %v7571_v31  ;;  %v9188_v26 = vand.u32 4294901760, %v7480_v40  ;;  %4966 = vmatprep.subr.bf16.mxu0 %v7498_v44  ;;  %4998 = vmatprep.subr.bf16.mxu1 %v4997_v58  ;;  %v5007_v45 = vpack.c.bf16 %v9192_v8, %v9191_v17  ;;  %v9194_v16 = vand.u32 4294901760, %v7505_v21  ;;  %v7611_v8 = vld [vmem:[%s8418_s1 + $0x3b8] sm:$0xff] }
 0x10c   :  { %v7564_v11 = vsub.f32 %v7468_v37, %v9186_v5  ;;  %v9189_v5 = vand.u32 4294901760, %v7485_v19  ;;  %v5005_v37 = vpack.c.bf16 %v6791_v41, %v6786_v13  ;;  %v9196_v13 = vand.u32 4294901760, %v7510_v59  ;;  %9197 = vst [vmem:[#allocation51_spill] sm:$0xff] %v7611_v8 }
 0x10d   :  { %v7577_v4 = vsub.f32 %v7480_v40, %v9188_v26  ;;  %v7600_v58 = vsub.f32 %v7505_v21, %v9194_v16  ;;  %v9198_v26 = vand.u32 4294901760, %v7518_v49  ;;  %v9199_v16 = vand.u32 4294901760, %v7523_v27 }
 0x10e   :  { %v7582_v46 = vsub.f32 %v7485_v19, %v9189_v5  ;;  %v7595_v5 = vld [vmem:[%s8418_s1 + $0x3b0] sm:$0xff]  ;;  %v2076_v19 = vand.u32 4294901760, %v2075_v6  ;;  %v7605_v41 = vsub.f32 %v7510_v59, %v9196_v13  ;;  %v8594_v13 = vand.u32 4294901760, %v7559_v23  ;;  %4968 = vmatpush3.bf16.msra.mxu0 %v7530_v10  ;;  %5000 = vmatpush3.bf16.msra.mxu1 %v4999_v15  ;;  %v7642_v15 = vld [vmem:[%s8418_s1 + $0x338] sm:$0xff]  ;;  %v7677_v59 = vld [vmem:[%s8418_s1 + $0x3c8] sm:$0xff] }
 0x10f   :  { %9193 = vst [vmem:[#allocation6_spill] sm:$0xff] %v7595_v5  ;;  %9195 = vst [vmem:[#allocation50_spill] sm:$0xff] %v7600_v58  ;;  %v7616_v6 = vsub.f32 %v7518_v49, %v9198_v26  ;;  %v7621_v55 = vsub.f32 %v7523_v27, %v9199_v16  ;;  %v9200_v17 = vand.u32 4294901760, %v7537_v14  ;;  %v7637_v16 = vld [vmem:[%s8418_s1 + $0x330] sm:$0xff]  ;;  %5002 = vmatprep.subr.bf16.mxu0 %v5001_v52  ;;  %5034 = vmatprep.subr.bf16.mxu1 %v7300_v62 }
 0x110   :  { %9190 = vst [vmem:[#allocation49_spill] sm:$0xff] %v7582_v46  ;;  %9201 = vst [vmem:[#allocation52_spill] sm:$0xff] %v7637_v16  ;;  %v9204_v40 = vand.u32 4294901760, %v7554_v61  ;;  %v9208_v52 = vand.u32 4294901760, %v7571_v31 }
 0x111   :  { %v7629_v21 = vsub.f32 %v7537_v14, %v9200_v17  ;;  %9202 = vst [vmem:[#allocation53_spill] sm:$0xff] %v7642_v15  ;;  %v9203_v17 = vand.u32 4294901760, %v7549_v32  ;;  %v9206_v14 = vand.u32 4294901760, %v7564_v11  ;;  %9211 = vst [vmem:[#allocation37_spill] sm:$0xff] %v7677_v59  ;;  %2077 = vmatmul.mubr.f32.vlgmr.msra.gmra.mrb[12].mxu0 %v2076_v19  ;;  %2309 = vmatmul.mubr.f32.vlgmr.msra.gmra.mrb[12].mxu1 %v7416_v60  ;;  %v9217_v19 = vld [vmem:[#allocation39_spill] sm:$0xff] }
 0x112   :  { %v7653_v49 = vsub.f32 %v7554_v61, %v9204_v40  ;;  %v7665_v33 = vsub.f32 %v7571_v31, %v9208_v52  ;;  %v7672_v40 = vld [vmem:[%s8418_s1 + $0x3c0] sm:$0xff]  ;;  %5004 = vmatpush3.bf16.msra.mxu0 %v5003_v2  ;;  %5036 = vmatpush3.bf16.msra.mxu1 %v7307_v51  ;;  %v9224_v2 = vand.u32 4294901760, %v7611_v8 }
 0x113   :  { %v7648_v26 = vsub.f32 %v7549_v32, %v9203_v17  ;;  %v7660_v27 = vpack.c.bf16 %v9206_v14, %v8594_v13  ;;  %9210 = vst [vmem:[#allocation57_spill] sm:$0xff] %v7672_v40  ;;  %v9212_v14 = vand.u32 4294901760, %v7577_v4  ;;  %v9213_v13 = vand.u32 4294901760, %v7582_v46  ;;  %v7693_v61 = vld [vmem:[%s8418_s1 + $0x340] sm:$0xff]  ;;  %5006 = vmatprep.subr.bf16.mxu0 %v5005_v37  ;;  %5038 = vmatprep.subr.bf16.mxu1 %v7316_v56  ;;  %v7738_v46 = vld [vmem:[%s8418_s1 + $0x3d0] sm:$0xff] }
 0x114   :  { %9205 = vst [vmem:[#allocation54_spill] sm:$0xff] %v7653_v49  ;;  %9209 = vst [vmem:[#allocation56_spill] sm:$0xff] %v7665_v33  ;;  %v9219_v17 = vand.u32 4294901760, %v7595_v5  ;;  %2444 = vmatprep.mubr.f32.mxu0 %v7262_v54  ;;  %v9229_v37 = vand.u32 4294901760, %v7262_v54  ;;  %v9233_v54 = vand.u32 4294901760, %v7642_v15 }
 0x115   :  { %9207 = vst [vmem:[#allocation55_spill] sm:$0xff] %v7660_v27  ;;  %v7683_v52 = vpack.c.bf16 %v9213_v13, %v9212_v14  ;;  %9215 = vst [vmem:[#allocation8_spill] sm:$0xff] %v7693_v61  ;;  %v7698_v13 = vld [vmem:[%s8418_s1 + $0x348] sm:$0xff]  ;;  %v9218_v14 = vld [vmem:[#allocation32_spill] sm:$0xff]  ;;  %v9221_v27 = vand.u32 4294901760, %v7600_v58 }
 0x116   :  { %9216 = vst [vmem:[#allocation11_spill] sm:$0xff] %v7698_v13  ;;  %v5009_v32 = vpack.c.bf16 %v9218_v14, %v9217_v19  ;;  %v7706_v31 = vsub.f32 %v7595_v5, %v9219_v17  ;;  %v7718_v19 = vsub.f32 %v7611_v8, %v9224_v2  ;;  %v9226_v17 = vand.u32 4294901760, %v7616_v6  ;;  %2551 = vmatprep.mubr.f32.mxu1 %v9229_v37  ;;  %v9259_v8 = vld [vmem:[#allocation66_spill] sm:$0xff] }
 0x117   :  { %9214 = vst [vmem:[#allocation7_spill] sm:$0xff] %v7683_v52  ;;  %v9222_v52 = vand.u32 4294901760, %v7605_v41  ;;  %v9227_v5 = vand.u32 4294901760, %v7621_v55  ;;  %9230 = vst [vmem:[#allocation29_spill] sm:$0xff] %v7738_v46  ;;  %v7748_v37 = vsub.f32 %v7642_v15, %v9233_v54  ;;  %5008 = vmatpush3.bf16.msra.mxu0 %v5007_v45  ;;  %v5011_v14 = vpack.c.bf16 %v6863_v1, %v6846_v18  ;;  %v7765_v54 = vld [vmem:[%s8418_s1 + $0x350] sm:$0xff] }
 0x118   :  { %9220 = vst [vmem:[#allocation18_spill] sm:$0xff] %v7706_v31  ;;  %9225 = vst [vmem:[#allocation58_spill] sm:$0xff] %v7718_v19  ;;  %5040 = vmatpush3.bf16.msra.mxu1 %v7337_v50  ;;  %v9237_v45 = vand.u32 4294901760, %v7629_v21  ;;  %v9238_v2 = vand.u32 4294901760, %v7648_v26  ;;  %5010 = vmatprep.subr.bf16.mxu0 %v5009_v32  ;;  %v9240_v18 = vand.u32 4294901760, %v7672_v40  ;;  %v9245_v32 = vand.u32 4294901760, %v7653_v49 }
 0x119   :  { %v7712_v60 = vpack.c.bf16 %v9222_v52, %v9221_v27  ;;  %v7726_v58 = vpack.c.bf16 %v9227_v5, %v9226_v17  ;;  %v9231_v5 = vand.u32 4294901760, %v7637_v16  ;;  %9234 = vst [vmem:[#allocation28_spill] sm:$0xff] %v7748_v37  ;;  %v5013_v27 = vpack.c.bf16 %v6884_v3, %v6869_v28  ;;  %9236 = vst [vmem:[#allocation22_spill] sm:$0xff] %v7765_v54 }
 0x11a   :  { %v7771_v1 = vpack.c.bf16 %v9238_v2, %v9237_v45  ;;  %5042 = vmatprep.subr.bf16.mxu1 %v7345_v35  ;;  %v7777_v3 = vsub.f32 %v7672_v40, %v9240_v18  ;;  %v9242_v28 = vand.u32 4294901760, %v7677_v59  ;;  %v7788_v2 = vld [vmem:[%s8418_s1 + $0x358] sm:$0xff]  ;;  %v9246_v45 = vand.u32 4294901760, %v7665_v33 }
 0x11b   :  { %9223 = vst [vmem:[#allocation19_spill] sm:$0xff] %v7712_v60  ;;  %9228 = vst [vmem:[#allocation13_spill] sm:$0xff] %v7726_v58  ;;  %v7743_v17 = vsub.f32 %v7637_v16, %v9231_v5  ;;  %v7760_v5 = vld [vmem:[%s8418_s1 + $0x3d8] sm:$0xff]  ;;  %v9248_v18 = vand.u32 4294901760, %v7693_v61  ;;  %5012 = vmatpush3.bf16.msra.mxu0 %v5011_v14  ;;  %v5017_v16 = vpack.c.bf16 %v6946_v0, %v6920_v39  ;;  %v7845_v39 = vld [vmem:[%s8418_s1 + $0x360] sm:$0xff] }
 0x11c   :  { %9235 = vst [vmem:[#allocation21_spill] sm:$0xff] %v7760_v5  ;;  %9239 = vst [vmem:[#allocation23_spill] sm:$0xff] %v7771_v1  ;;  %v7782_v52 = vsub.f32 %v7677_v59, %v9242_v28  ;;  %v7794_v1 = vpack.c.bf16 %v9246_v45, %v9245_v32  ;;  %v9250_v28 = vand.u32 4294901760, %v7698_v13  ;;  %v9253_v40 = vld [vmem:[#allocation59_spill] sm:$0xff]  ;;  %v9254_v59 = vld [vmem:[#allocation62_spill] sm:$0xff]  ;;  %5044 = vmatpush3.bf16.msra.mxu1 %v7365_v57  ;;  %v9255_v32 = vand.u32 4294901760, %v7706_v31 }
 0x11d   :  { %9232 = vst [vmem:[#allocation10_spill] sm:$0xff] %v7743_v17  ;;  %9241 = vst [vmem:[#allocation24_spill] sm:$0xff] %v7777_v3  ;;  %v7799_v60 = vsub.f32 %v7693_v61, %v9248_v18  ;;  %v7815_v18 = vld [vmem:[%s8418_s1 + $0x3e0] sm:$0xff]  ;;  %v5015_v15 = vpack.c.bf16 %v9254_v59, %v9253_v40  ;;  %5014 = vmatprep.subr.bf16.mxu0 %v5013_v27  ;;  %5046 = vmatprep.subr.bf16.mxu1 %v7386_v25  ;;  %v9260_v59 = vand.u32 4294901760, %v7738_v46  ;;  %v7850_v40 = vld [vmem:[%s8418_s1 + $0x368] sm:$0xff] }
 0x11e   :  { %9243 = vst [vmem:[#allocation27_spill] sm:$0xff] %v7782_v52  ;;  %9244 = vst [vmem:[#allocation16_spill] sm:$0xff] %v7788_v2  ;;  %v7804_v58 = vsub.f32 %v7698_v13, %v9250_v28  ;;  %v7820_v28 = vld [vmem:[%s8418_s1 + $0x3e8] sm:$0xff]  ;;  %v9258_v61 = vld [vmem:[#allocation64_spill] sm:$0xff]  ;;  %v9264_v27 = vand.u32 4294901760, %v7743_v17 }
 0x11f   :  { %9247 = vst [vmem:[#allocation30_spill] sm:$0xff] %v7794_v1  ;;  %9249 = vst [vmem:[#allocation31_spill] sm:$0xff] %v7799_v60  ;;  %v9256_v1 = vand.u32 4294901760, %v7718_v19  ;;  %v5019_v14 = vpack.c.bf16 %v9259_v8, %v9258_v61  ;;  %v7840_v0 = vsub.f32 %v7738_v46, %v9260_v59  ;;  %v9265_v61 = vand.u32 4294901760, %v7748_v37  ;;  %5016 = vmatpush3.bf16.msra.mxu0 %v5015_v15  ;;  %v7895_v45 = vld [vmem:[%s8418_s1 + $0x370] sm:$0xff]  ;;  %v7900_v15 = vld [vmem:[%s8418_s1 + $0x378] sm:$0xff] }
 0x120   :  { %9251 = vst [vmem:[#allocation40_spill] sm:$0xff] %v7804_v58  ;;  %9252 = vst [vmem:[#allocation38_spill] sm:$0xff] %v7820_v28  ;;  %v8625_v59 = vand.u32 4294901760, %v7777_v3  ;;  %v9269_v19 = vand.u32 4294901760, %v7765_v54  ;;  %5048 = vmatpush3.bf16.msra.mxu1 %v7392_v43  ;;  %5018 = vmatprep.subr.bf16.mxu0 %v5017_v16  ;;  %v9278_v37 = vand.u32 4294901760, %v7804_v58  ;;  %v9280_v3 = vand.u32 4294901760, %v7815_v18 }
 0x121   :  { %v7832_v13 = vpack.c.bf16 %v9256_v1, %v9255_v32  ;;  %9261 = vst [vmem:[#allocation41_spill] sm:$0xff] %v7840_v0  ;;  %9262 = vst [vmem:[#allocation60_spill] sm:$0xff] %v7845_v39  ;;  %v7856_v8 = vpack.c.bf16 %v9265_v61, %v9264_v27  ;;  %v7877_v32 = vld [vmem:[%s8418_s1 + $0x3f0] sm:$0xff]  ;;  %v7882_v1 = vld [vmem:[%s8418_s1 + $0x3f8] sm:$0xff]  ;;  %5050 = vmatprep.subr.bf16.mxu1 %v7400_v53  ;;  %v9281_v16 = vand.u32 4294901760, %v7820_v28 }
 0x122   :  { %9263 = vst [vmem:[#allocation61_spill] sm:$0xff] %v7850_v40  ;;  %v7870_v17 = vsub.f32 %v7765_v54, %v9269_v19  ;;  %9270 = vst [vmem:[#allocation67_spill] sm:$0xff] %v7877_v32  ;;  %v9275_v61 = vld [vmem:[#allocation69_spill] sm:$0xff]  ;;  %v5023_v54 = vpack.c.bf16 %v7028_v22, %v7023_v34  ;;  %v9283_v34 = vand.u32 4294901760, %v7850_v40 }
 0x123   :  { %9257 = vst [vmem:[#allocation42_spill] sm:$0xff] %v7832_v13  ;;  %9266 = vst [vmem:[#allocation63_spill] sm:$0xff] %v7856_v8  ;;  %v9267_v13 = vand.u32 4294901760, %v7760_v5  ;;  %v9273_v8 = vand.u32 4294901760, %v7782_v52  ;;  %5020 = vmatpush3.bf16.msra.mxu0 %v5019_v14  ;;  %v5025_v14 = vpack.c.bf16 %v7040_v24, %v7035_v36  ;;  %v9288_v36 = vand.u32 4294901760, %v7882_v1 }
 0x124   :  { %9271 = vst [vmem:[#allocation68_spill] sm:$0xff] %v7882_v1  ;;  %5052 = vmatpush3.bf16.msra.mxu1 %v7422_v29  ;;  %v7944_v22 = vsub.f32 %v7850_v40, %v9283_v34  ;;  %v5027_v34 = vpack.c.bf16 %v7053_v63, %v7045_v12  ;;  %v3712_v12 = vld [vmem:[%s8419_s2] ss:$0 sm:$0xff] }
 0x125   :  { %v7865_v46 = vsub.f32 %v7760_v5, %v9267_v13  ;;  %v9272_v13 = vand.u32 4294901760, %v7788_v2  ;;  %v9277_v5 = vand.u32 4294901760, %v7799_v60  ;;  %5054 = vmatprep.subr.bf16.mxu1 %v7428_v9  ;;  %v7967_v24 = vsub.f32 %v7882_v1, %v9288_v36 }
 0x126   :  { %v9295_v36 = vand.u32 4294901760, %v7900_v15 }
 0x127   :  { %9268 = vst [vmem:[#allocation65_spill] sm:$0xff] %v7865_v46  ;;  %v7888_v19 = vsub.f32 %v7788_v2, %v9272_v13  ;;  %v7906_v13 = vpack.c.bf16 %v9273_v8, %v8625_v59  ;;  %v9276_v2 = vld [vmem:[#allocation71_spill] sm:$0xff]  ;;  %v7917_v31 = vpack.c.bf16 %v9278_v37, %v9277_v5  ;;  %v7922_v8 = vsub.f32 %v7815_v18, %v9280_v3 }
 0x128   :  { %v5021_v27 = vpack.c.bf16 %v9276_v2, %v9275_v61  ;;  %v7927_v2 = vsub.f32 %v7820_v28, %v9281_v16  ;;  %v9282_v3 = vand.u32 4294901760, %v7845_v39  ;;  %v9284_v5 = vand.u32 4294901760, %v7840_v0  ;;  %9289 = vst [vmem:[#allocation39_spill] sm:$0xff] %v7967_v24  ;;  %5056 = vmatpush3.bf16.msra.mxu1 %v7451_v20 }
 0x129   :  { %9274 = vst [vmem:[#allocation70_spill] sm:$0xff] %v7906_v13  ;;  %9279 = vst [vmem:[#allocation33_spill] sm:$0xff] %v7917_v31  ;;  %v3745_v31 = vpop.f32.mrb[0].mxu0  ;;  %v3780_v13 = vpop.f32.mrb[0].mxu1  ;;  %v9287_v61 = vand.u32 4294901760, %v7877_v32  ;;  %v9290_v59 = vand.u32 4294901760, %v7870_v17  ;;  %v7986_v1 = vsub.f32 %v7900_v15, %v9295_v36  ;;  %5058 = vmatprep.subr.bf16.mxu1 %v7475_v38 }
 0x12a   :  { %v7939_v16 = vsub.f32 %v7845_v39, %v9282_v3  ;;  %5022 = vmatprep.subr.bf16.mxu0 %v5021_v27  ;;  %v9285_v3 = vand.u32 4294901760, %v7865_v46  ;;  %v3746_v63 = vpop.f32.mrb[1].mxu0  ;;  %v8638_v40 = vand.u32 4294901760, %v7922_v8  ;;  %v8635_v28 = vand.u32 4294901760, %v7944_v22 }
 0x12b   :  { %v7962_v27 = vsub.f32 %v7877_v32, %v9287_v61  ;;  %v9293_v61 = vand.u32 4294901760, %v7895_v45  ;;  %9296 = vst [vmem:[#allocation62_spill] sm:$0xff] %v7986_v1  ;;  %5024 = vmatpush3.bf16.msra.mxu0 %v5023_v54 }
 0x12c   :  { %v7955_v37 = vpack.c.bf16 %v9285_v3, %v9284_v5  ;;  %v9291_v5 = vand.u32 4294901760, %v7888_v19  ;;  %v8636_v39 = vand.u32 4294901760, %v7939_v16  ;;  %5026 = vmatprep.subr.bf16.mxu0 %v5025_v14  ;;  %5060 = vmatpush3.bf16.msra.mxu1 %v7491_v7 }
 0x12d   :  { %v7981_v32 = vsub.f32 %v7895_v45, %v9293_v61  ;;  %v5029_v61 = vpack.c.bf16 %v7075_v47, %v7064_v48  ;;  %v8634_v54 = vand.u32 4294901760, %v7962_v27  ;;  %v8631_v47 = vand.u32 4294901760, %v7986_v1  ;;  %5062 = vmatprep.subr.bf16.mxu1 %v7498_v44 }
 0x12e   :  { %9286 = vst [vmem:[#allocation35_spill] sm:$0xff] %v7955_v37  ;;  %v7973_v3 = vpack.c.bf16 %v9291_v5, %v9290_v59  ;;  %v3781_v37 = vpop.f32.mrb[1].mxu1  ;;  %v8637_v59 = vand.u32 4294901760, %v7927_v2  ;;  %v3747_v5 = vadd.f32 %v3746_v63, %v3745_v31  ;;  %v5031_v63 = vpack.c.bf16 %v7087_v30, %v7080_v42  ;;  %v9301_v42 = vld [vmem:[#allocation72_spill] sm:$0xff]  ;;  %v9302_v30 = vld [vmem:[#allocation43_spill] sm:$0xff] }
 0x12f   :  { %9294 = vst [vmem:[#allocation59_spill] sm:$0xff] %v7981_v32  ;;  %v8632_v48 = vand.u32 4294901760, %v7981_v32  ;;  %5028 = vmatpush3.bf16.msra.mxu0 %v5027_v34 }
 0x130   :  { %9292 = vst [vmem:[#allocation32_spill] sm:$0xff] %v7973_v3  ;;  %v3782_v3 = vadd.f32 %v3781_v37, %v3780_v13  ;;  %v8000_v36 = vpack.c.bf16 %v8637_v59, %v8638_v40  ;;  %v355_v31 = vadd.f32 %v3747_v5, %v3712_v12  ;;  %v8633_v13 = vand.u32 4294901760, %v7967_v24  ;;  %5030 = vmatprep.subr.bf16.mxu0 %v5029_v61  ;;  %v9304_v5 = vld [vmem:[#allocation73_spill] sm:$0xff]  ;;  %v9305_v61 = vld [vmem:[#allocation74_spill] sm:$0xff] }
 0x131   :  { %v8008_v37 = vpack.c.bf16 %v8635_v28, %v8636_v39  ;;  %v8026_v34 = vpack.c.bf16 %v8631_v47, %v8632_v48  ;;  %5064 = vmatpush3.bf16.msra.mxu1 %v7530_v10  ;;  %v9322_v47 = vld [vmem:[#allocation83_spill] sm:$0xff]  ;;  %v9326_v39 = vand.u32 4294901760, %v7605_v41  ;;  %v9335_v59 = vld [vmem:[#allocation25_spill] sm:$0xff] }
 0x132   :  { %9297 = vst [vmem:[#allocation64_spill] sm:$0xff] %v8000_v36  ;;  %v587_v14 = vadd.f32 %v3782_v3, %v355_v31  ;;  %v8019_v12 = vpack.c.bf16 %v8633_v13, %v8634_v54  ;;  %5098 = vmatprep.subr.bf16.mxu1 %v7300_v62  ;;  %v9303_v3 = vand.u32 4294901760, %v9302_v30  ;;  %v9306_v31 = vld [vmem:[#allocation26_spill] sm:$0xff]  ;;  %v5335_v62 = vld [vmem:[%s8417_s0 + $0xc] ss:$16 sps:$4 sm:$0xff]  }
 0x133   :  { %9298 = vst [vmem:[#allocation66_spill] sm:$0xff] %v8008_v37  ;;  %9300 = vst [vmem:[#allocation71_spill] sm:$0xff] %v8026_v34  ;;  %5032 = vmatpush3.bf16.msra.mxu0 %v5031_v63  ;;  %v5336_v63 = vld [vmem:[%s8417_s0 + $0x2c] ss:$16 sps:$4 sm:$0xff]   ;;  %v9324_v54 = vld [vmem:[#allocation50_spill] sm:$0xff] }
 0x134   :  { %9299 = vst [vmem:[#allocation69_spill] sm:$0xff] %v8019_v12  ;;  %5066 = vmatprep.subr.bf16.mxu0 %v9301_v42  ;;  %2555 = vmatmul.mubr.f32.vlgmr.msra.gmra.mrb[14].mxu1 %v9303_v3  ;;  %v9307_v42 = vld [vmem:[#allocation75_spill] sm:$0xff]  ;;  %v9325_v28 = vand.u32 4294901760, %v9324_v54 }
 0x135   :  { %5100 = vmatpush3.bf16.msra.mxu1 %v7307_v51  ;;  %2825 = vmatprep.mubr.f32.mxu1 %v9306_v31  ;;  %v9308_v51 = vld [vmem:[#allocation76_spill] sm:$0xff] }
 0x136   :  { %2447 = vmatmul.mubr.f32.vlgmr.msra.gmra.mrb[14].mxu0 %v9302_v30  ;;  %5102 = vmatprep.subr.bf16.mxu1 %v7316_v56  ;;  %v9309_v56 = vld [vmem:[#allocation12_spill] sm:$0xff] }
 0x137   :  { %5068 = vmatpush3.bf16.msra.mxu0 %v9304_v5  ;;  %2721 = vmatprep.mubr.f32.mxu0 %v9306_v31  ;;  %v8051_v30 = vrot.slane %v5335_v62, %v9309_v56  ;;  %v8054_v3 = vrot.slane %v5336_v63, %v9309_v56  ;;  %v9310_v5 = vld [vmem:[#allocation77_spill] sm:$0xff]  ;;  %v9312_v31 = vld [vmem:[#allocation79_spill] sm:$0xff]  ;;  %v3815_v56 = vpop.f32.mrb[2].mxu0 }
 0x138   :  { %5070 = vmatprep.subr.bf16.mxu0 %v9305_v61  ;;  %v9311_v61 = vld [vmem:[#allocation78_spill] sm:$0xff]  ;;  %v9315_v63 = vld [vmem:[#allocation81_spill] sm:$0xff] }
 0x139   :  { %5104 = vmatpush3.bf16.msra.mxu1 %v7337_v50  ;;  %v237_v50 = vcombine.high %v8051_v30, %v8054_v3 }
 0x13a   :  { %5106 = vmatprep.subr.bf16.mxu1 %v7345_v35  ;;  %v9313_v35 = vld [vmem:[#allocation80_spill] sm:$0xff] }
 0x13b   :  { %5072 = vmatpush3.bf16.msra.mxu0 %v9307_v42  ;;  %v8066_v62 = vand.u32 4294901760, %v237_v50 }
 0x13c   :  { %5074 = vmatprep.subr.bf16.mxu0 %v9308_v51 }
 0x13d   :  { %5108 = vmatpush3.bf16.msra.mxu1 %v7365_v57  ;;  %9314 = vst [vmem:[#allocation72_spill] sm:$0xff] %v8066_v62  ;;  %v9316_v57 = vld [vmem:[#allocation82_spill] sm:$0xff] }
 0x13e   :  { %5110 = vmatprep.subr.bf16.mxu1 %v7386_v25  ;;  %v9317_v25 = vand.u32 4294901760, %v7559_v23 }
 0x13f   :  { %5076 = vmatpush3.bf16.msra.mxu0 %v9310_v5  ;;  %v8079_v5 = vsub.f32 %v237_v50, %v8066_v62 }
 0x140   :  { %5078 = vmatprep.subr.bf16.mxu0 %v9311_v61  ;;  %v3060_v42 = vsub.f32 %v7559_v23, %v9317_v25  ;;  %v3816_v61 = vpop.f32.mrb[3].mxu0 }
 0x141   :  { %5112 = vmatpush3.bf16.msra.mxu1 %v7392_v43  ;;  %v9318_v43 = vand.u32 4294901760, %v7564_v11  ;;  %v3817_v25 = vadd.f32 %v3816_v61, %v3815_v56 }
 0x142   :  { %5114 = vmatprep.subr.bf16.mxu1 %v7400_v53  ;;  %v3850_v53 = vpop.f32.mrb[2].mxu1  ;;  %v3061_v50 = vand.u32 4294901760, %v3060_v42 }
 0x143   :  { %5080 = vmatpush3.bf16.msra.mxu0 %v9312_v31  ;;  %v3067_v51 = vsub.f32 %v7564_v11, %v9318_v43  ;;  %v3851_v31 = vpop.f32.mrb[3].mxu1  ;;  %v9323_v43 = vld [vmem:[#allocation84_spill] sm:$0xff]  ;;  %v725_v56 = vadd.f32 %v3817_v25, %v587_v14  ;;  %v9332_v25 = vld [vmem:[#allocation86_spill] sm:$0xff] }
 0x144   :  { %5082 = vmatprep.subr.bf16.mxu0 %v9313_v35  ;;  %v3852_v48 = vadd.f32 %v3851_v31, %v3850_v53 }
 0x145   :  { %5116 = vmatpush3.bf16.msra.mxu1 %v7422_v29  ;;  %v9319_v29 = vand.u32 4294901760, %v7577_v4  ;;  %v3068_v13 = vand.u32 4294901760, %v3067_v51  ;;  %v9329_v51 = vld [vmem:[#allocation85_spill] sm:$0xff] }
 0x146   :  { %5118 = vmatprep.subr.bf16.mxu1 %v7428_v9  ;;  %v9320_v9 = vld [vmem:[#allocation49_spill] sm:$0xff] }
 0x147   :  { %5084 = vmatpush3.bf16.msra.mxu0 %v9315_v63  ;;  %v2948_v35 = vsub.f32 %v7577_v4, %v9319_v29  ;;  %v9321_v63 = vand.u32 4294901760, %v9320_v9  ;;  %v3074_v29 = vsub.f32 %v9324_v54, %v9325_v28  ;;  %v8105_v28 = vadd.f32 %v3852_v48, %v725_v56 }
 0x148   :  { %5086 = vmatprep.subr.bf16.mxu0 %v9316_v57  ;;  %v5161_v48 = vpack.c.bf16 %v3068_v13, %v3061_v50 }
 0x149   :  { %v2955_v57 = vsub.f32 %v9320_v9, %v9321_v63  ;;  %5120 = vmatpush3.bf16.msra.mxu1 %v7451_v20  ;;  %v3081_v63 = vsub.f32 %v7605_v41, %v9326_v39  ;;  %v2949_v53 = vand.u32 4294901760, %v2948_v35  ;;  %v9327_v20 = vand.u32 4294901760, %v7616_v6 }
 0x14a   :  { %5122 = vmatprep.subr.bf16.mxu1 %v7475_v38  ;;  %v9328_v38 = vand.u32 4294901760, %v7621_v55  ;;  %v9330_v39 = vand.u32 4294901760, %v7629_v21  ;;  %v9331_v35 = vand.u32 4294901760, %v7648_v26 }
 0x14b   :  { %5088 = vmatpush3.bf16.msra.mxu0 %v9322_v47  ;;  %v2956_v61 = vand.u32 4294901760, %v2955_v57  ;;  %v2962_v31 = vsub.f32 %v7616_v6, %v9327_v20  ;;  %v3082_v56 = vand.u32 4294901760, %v3081_v63 }
 0x14c   :  { %5090 = vmatprep.subr.bf16.mxu0 %v9323_v43  ;;  %v2969_v42 = vsub.f32 %v7621_v55, %v9328_v38  ;;  %v3088_v14 = vsub.f32 %v7629_v21, %v9330_v39  ;;  %v3095_v57 = vsub.f32 %v7648_v26, %v9331_v35  ;;  %v9333_v43 = vld [vmem:[#allocation9_spill] sm:$0xff]  ;;  %v9336_v38 = vand.u32 4294901760, %v9335_v59  ;;  %v9339_v39 = vld [vmem:[#allocation15_spill] sm:$0xff]  ;;  %v9344_v59 = vld [vmem:[#allocation20_spill] sm:$0xff] }
 0x14d   :  { %5124 = vmatpush3.bf16.msra.mxu1 %v7491_v7  ;;  %v9334_v20 = vand.u32 4294901760, %v9333_v43  ;;  %v3075_v7 = vand.u32 4294901760, %v3074_v29  ;;  %v9340_v34 = vand.u32 4294901760, %v9339_v39  ;;  %v9341_v35 = vand.u32 4294901760, %v8079_v5  ;;  %v9342_v43 = vld [vmem:[#allocation45_spill] sm:$0xff] }
 0x14e   :  { %5126 = vmatprep.subr.bf16.mxu1 %v7498_v44  ;;  %v9343_v37 = vand.u32 4294901760, %v9342_v43  ;;  %v5163_v44 = vpack.c.bf16 %v2956_v61, %v2949_v53  ;;  %v2963_v13 = vand.u32 4294901760, %v2962_v31  ;;  %v2970_v50 = vand.u32 4294901760, %v2969_v42  ;;  %v9346_v29 = vld [vmem:[#allocation17_spill] sm:$0xff]  ;;  %v9349_v53 = vld [vmem:[#allocation18_spill] sm:$0xff] }
 0x14f   :  { %5092 = vmatpush3.bf16.msra.mxu0 %v9329_v51  ;;  %v8119_v40 = vpack.c.bf16 %v9336_v38, %v9334_v20  ;;  %v9337_v51 = vld [vmem:[#allocation44_spill] sm:$0xff]  ;;  %v9345_v20 = vand.u32 4294901760, %v9344_v59  ;;  %v3089_v63 = vand.u32 4294901760, %v3088_v14  ;;  %v9348_v39 = vand.u32 4294901760, %v7665_v33  ;;  %v9351_v42 = vld [vmem:[#allocation58_spill] sm:$0xff] }
 0x150   :  { %5094 = vmatprep.subr.bf16.mxu0 %v9332_v25  ;;  %v9338_v47 = vand.u32 4294901760, %v9337_v51  ;;  %v2931_v25 = vsub.f32 %v8079_v5, %v9341_v35  ;;  %v9350_v61 = vand.u32 4294901760, %v9349_v53  ;;  %v9355_v59 = vld [vmem:[#allocation46_spill] sm:$0xff] }
 0x151   :  { %v8135_v38 = vpack.c.bf16 %v9345_v20, %v9343_v37  ;;  %5128 = vmatpush3.bf16.msra.mxu1 %v7530_v10  ;;  %v2983_v35 = vsub.f32 %v7665_v33, %v9348_v39  ;;  %v5165_v37 = vpack.c.bf16 %v3082_v56, %v3075_v7  ;;  %v9352_v10 = vand.u32 4294901760, %v9351_v42  ;;  %v9357_v39 = vld [vmem:[#allocation34_spill] sm:$0xff]  ;;  %v9360_v56 = vld [vmem:[#allocation47_spill] sm:$0xff] }
 0x152   :  { %v8126_v12 = vpack.c.bf16 %v9340_v34, %v9338_v47  ;;  %v3096_v34 = vand.u32 4294901760, %v3095_v57  ;;  %v9347_v47 = vand.u32 4294901760, %v7653_v49  ;;  %5162 = vmatprep.subr.bf16.mxu1 %v5161_v48  ;;  %v3102_v31 = vsub.f32 %v9349_v53, %v9350_v61  ;;  %v9353_v57 = vld [vmem:[#allocation36_spill] sm:$0xff]  ;;  %v9358_v48 = vld [vmem:[#allocation5_spill] sm:$0xff]  ;;  %v9362_v53 = vld [vmem:[#allocation10_spill] sm:$0xff] }
 0x153   :  { %5096 = vmatpush3.bf16.msra.mxu0 %v9346_v29  ;;  %v3109_v14 = vsub.f32 %v9351_v42, %v9352_v10  ;;  %v9354_v43 = vand.u32 4294901760, %v9353_v57  ;;  %v9356_v20 = vand.u32 4294901760, %v9355_v59  ;;  %v9359_v7 = vand.u32 4294901760, %v9358_v48  ;;  %v9364_v57 = vld [vmem:[#allocation28_spill] sm:$0xff] }
 0x154   :  { %v2976_v51 = vsub.f32 %v7653_v49, %v9347_v47  ;;  %5130 = vmatprep.subr.bf16.mxu0 %v8119_v40  ;;  %v2932_v47 = vand.u32 4294901760, %v2931_v25  ;;  %2827 = vmatmul.mubr.f32.vlgmr.msra.gmra.mrb[16].mxu1 %v9357_v39  ;;  %v9361_v36 = vand.u32 4294901760, %v9360_v56  ;;  %v9363_v33 = vand.u32 4294901760, %v9362_v53 }
 0x155   :  { %v8156_v29 = vpack.c.bf16 %v9356_v20, %v9354_v43  ;;  %v9365_v42 = vand.u32 4294901760, %v9364_v57  ;;  %5164 = vmatpush3.bf16.msra.mxu1 %v5163_v44  ;;  %v5167_v25 = vpack.c.bf16 %v2970_v50, %v2963_v13  ;;  %v5169_v59 = vpack.c.bf16 %v3096_v34, %v3089_v63  ;;  %v9371_v44 = vld [vmem:[#allocation48_spill] sm:$0xff]  ;;  %3169 = vmatprep.mubr.f32.mxu1 %v8066_v62  ;;  %v9383_v62 = vld [vmem:[#allocation53_spill] sm:$0xff] }
 0x156   :  { %2723 = vmatmul.mubr.f32.vlgmr.msra.gmra.mrb[16].mxu0 %v9357_v39  ;;  %v8164_v61 = vpack.c.bf16 %v9361_v36, %v9359_v7  ;;  %v2990_v10 = vsub.f32 %v9362_v53, %v9363_v33  ;;  %v2977_v20 = vand.u32 4294901760, %v2976_v51  ;;  %v2984_v39 = vand.u32 4294901760, %v2983_v35  ;;  %5166 = vmatprep.subr.bf16.mxu1 %v5165_v37  ;;  %v9366_v7 = vld [vmem:[#allocation24_spill] sm:$0xff] }
 0x157   :  { %v2997_v43 = vsub.f32 %v9364_v57, %v9365_v42  ;;  %5132 = vmatpush3.bf16.msra.mxu0 %v8126_v12  ;;  %v3103_v36 = vand.u32 4294901760, %v3102_v31  ;;  %v3110_v48 = vand.u32 4294901760, %v3109_v14  ;;  %v9367_v56 = vand.u32 4294901760, %v9366_v7  ;;  %v9369_v57 = vld [vmem:[#allocation14_spill] sm:$0xff]  ;;  %2933 = vmatprep.mubr.f32.mxu0 %v2932_v47 }
 0x158   :  { %5134 = vmatprep.subr.bf16.mxu0 %v8135_v38  ;;  %v9368_v53 = vand.u32 4294901760, %v7782_v52  ;;  %v9370_v49 = vand.u32 4294901760, %v9369_v57  ;;  %v9372_v13 = vand.u32 4294901760, %v9371_v44  ;;  %v2991_v63 = vand.u32 4294901760, %v2990_v10  ;;  %v9377_v57 = vld [vmem:[#allocation6_spill] sm:$0xff] }
 0x159   :  { %v3116_v33 = vsub.f32 %v9366_v7, %v9367_v56  ;;  %v2998_v34 = vand.u32 4294901760, %v2997_v43  ;;  %v9373_v51 = vand.u32 4294901760, %v7799_v60  ;;  %v9374_v37 = vand.u32 4294901760, %v7804_v58  ;;  %5168 = vmatpush3.bf16.msra.mxu1 %v5167_v25  ;;  %v9379_v56 = vld [vmem:[#allocation51_spill] sm:$0xff] }
 0x15a   :  { %v3123_v42 = vsub.f32 %v7782_v52, %v9368_v53  ;;  %v8184_v50 = vpack.c.bf16 %v9372_v13, %v9370_v49  ;;  %v5171_v53 = vpack.c.bf16 %v2984_v39, %v2977_v20  ;;  %v9375_v49 = vand.u32 4294901760, %v7840_v0  ;;  %5170 = vmatprep.subr.bf16.mxu1 %v5169_v59  ;;  %v9381_v39 = vld [vmem:[#allocation52_spill] sm:$0xff] }
 0x15b   :  { %v3004_v35 = vsub.f32 %v7799_v60, %v9373_v51  ;;  %v3011_v31 = vsub.f32 %v7804_v58, %v9374_v37  ;;  %5136 = vmatpush3.bf16.msra.mxu0 %v8156_v29  ;;  %v9376_v47 = vand.u32 4294901760, %v7865_v46  ;;  %v9378_v43 = vand.u32 4294901760, %v9377_v57  ;;  %v9385_v58 = vld [vmem:[#allocation57_spill] sm:$0xff] }
 0x15c   :  { %v3130_v14 = vsub.f32 %v7840_v0, %v9375_v49  ;;  %5138 = vmatprep.subr.bf16.mxu0 %v8164_v61  ;;  %v9380_v44 = vand.u32 4294901760, %v9379_v56  ;;  %v5173_v51 = vpack.c.bf16 %v3110_v48, %v3103_v36  ;;  %v3117_v25 = vand.u32 4294901760, %v3116_v33 }
 0x15d   :  { %v3137_v10 = vsub.f32 %v7865_v46, %v9376_v47  ;;  %v3124_v20 = vand.u32 4294901760, %v3123_v42  ;;  %v9382_v37 = vand.u32 4294901760, %v9381_v39  ;;  %v9384_v49 = vand.u32 4294901760, %v9383_v62  ;;  %v9387_v46 = vld [vmem:[#allocation37_spill] sm:$0xff]  ;;  %5172 = vmatpush3.bf16.msra.mxu1 %v5171_v53 }
 0x15e   :  { %v8205_v13 = vpack.c.bf16 %v9380_v44, %v9378_v43  ;;  %v9386_v47 = vand.u32 4294901760, %v9385_v58  ;;  %v9388_v60 = vand.u32 4294901760, %v9387_v46  ;;  %v5175_v57 = vpack.c.bf16 %v2998_v34, %v2991_v63  ;;  %5174 = vmatprep.subr.bf16.mxu1 %v5173_v51  ;;  %v9393_v34 = vld [vmem:[#allocation8_spill] sm:$0xff]  ;;  %v9399_v39 = vld [vmem:[#allocation21_spill] sm:$0xff] }
 0x15f   :  { %v8211_v0 = vpack.c.bf16 %v9384_v49, %v9382_v37  ;;  %v3005_v56 = vand.u32 4294901760, %v3004_v35  ;;  %v3012_v43 = vand.u32 4294901760, %v3011_v31  ;;  %v236_v59 = vcombine.low %v8051_v30, %v8054_v3  ;;  %5140 = vmatpush3.bf16.msra.mxu0 %v8184_v50  ;;  %v9395_v31 = vld [vmem:[#allocation11_spill] sm:$0xff] }
 0x160   :  { %v8217_v52 = vpack.c.bf16 %v9388_v60, %v9386_v47  ;;  %v3131_v36 = vand.u32 4294901760, %v3130_v14  ;;  %v3138_v48 = vand.u32 4294901760, %v3137_v10  ;;  %v9389_v62 = vand.u32 4294901760, %v7870_v17  ;;  %5142 = vmatprep.subr.bf16.mxu0 %v8205_v13  ;;  %v9397_v10 = vld [vmem:[#allocation29_spill] sm:$0xff] }
 0x161   :  { %v9390_v58 = vand.u32 4294901760, %v7888_v19  ;;  %v5177_v46 = vpack.c.bf16 %v3124_v20, %v3117_v25  ;;  %v9391_v42 = vand.u32 4294901760, %v7922_v8  ;;  %v9392_v3 = vand.u32 4294901760, %v7927_v2  ;;  %5176 = vmatpush3.bf16.msra.mxu1 %v5175_v57  ;;  %v9407_v57 = vld [vmem:[#allocation16_spill] sm:$0xff] }
 0x162   :  { %v3018_v33 = vsub.f32 %v7870_v17, %v9389_v62  ;;  %v9394_v35 = vand.u32 4294901760, %v9393_v34  ;;  %v9396_v53 = vand.u32 4294901760, %v9395_v31  ;;  %v9398_v44 = vand.u32 4294901760, %v9397_v10 }
 0x163   :  { %v3025_v60 = vsub.f32 %v7888_v19, %v9390_v58  ;;  %v3144_v30 = vsub.f32 %v7922_v8, %v9391_v42  ;;  %v3151_v63 = vsub.f32 %v7927_v2, %v9392_v3  ;;  %v9400_v37 = vand.u32 4294901760, %v9399_v39  ;;  %5144 = vmatpush3.bf16.msra.mxu0 %v8211_v0  ;;  %5178 = vmatprep.subr.bf16.mxu1 %v5177_v46 }
 0x164   :  { %v8239_v14 = vpack.c.bf16 %v9396_v53, %v9394_v35  ;;  %v8247_v25 = vand.u32 4294901760, %v236_v59  ;;  %v9401_v20 = vand.u32 4294901760, %v7939_v16  ;;  %v9402_v47 = vand.u32 4294901760, %v7944_v22  ;;  %5146 = vmatprep.subr.bf16.mxu0 %v8217_v52 }
 0x165   :  { %v8245_v51 = vpack.c.bf16 %v9400_v37, %v9398_v44  ;;  %v5179_v58 = vpack.c.bf16 %v3012_v43, %v3005_v56  ;;  %v5181_v42 = vpack.c.bf16 %v3138_v48, %v3131_v36  ;;  %v3019_v3 = vand.u32 4294901760, %v3018_v33  ;;  %v9405_v37 = vld [vmem:[#allocation22_spill] sm:$0xff] }
 0x166   :  { %v3032_v49 = vsub.f32 %v7939_v16, %v9401_v20  ;;  %v3039_v62 = vsub.f32 %v7944_v22, %v9402_v47  ;;  %v3026_v34 = vand.u32 4294901760, %v3025_v60  ;;  %v3145_v35 = vand.u32 4294901760, %v3144_v30 }
 0x167   :  { %v3152_v31 = vand.u32 4294901760, %v3151_v63  ;;  %v9403_v53 = vand.u32 4294901760, %v7962_v27  ;;  %v9404_v44 = vand.u32 4294901760, %v7967_v24  ;;  %v9406_v20 = vand.u32 4294901760, %v9405_v37  ;;  %5148 = vmatpush3.bf16.msra.mxu0 %v8239_v14  ;;  %5180 = vmatpush3.bf16.msra.mxu1 %v5179_v58  ;;  %v3920_v37 = vpop.f32.mrb[4].mxu1 }
 0x168   :  { %v9408_v56 = vand.u32 4294901760, %v9407_v57  ;;  %v8270_v36 = vsub.f32 %v236_v59, %v8247_v25  ;;  %v3033_v48 = vand.u32 4294901760, %v3032_v49  ;;  %v3040_v33 = vand.u32 4294901760, %v3039_v62  ;;  %5150 = vmatprep.subr.bf16.mxu0 %v8245_v51  ;;  %v9412_v59 = vld [vmem:[#allocation38_spill] sm:$0xff]  ;;  %5182 = vmatprep.subr.bf16.mxu1 %v5181_v42  ;;  %v9414_v57 = vld [vmem:[#allocation60_spill] sm:$0xff] }
 0x169   :  { %v3158_v10 = vsub.f32 %v7962_v27, %v9403_v53  ;;  %v3165_v39 = vsub.f32 %v7967_v24, %v9404_v44  ;;  %v5183_v60 = vpack.c.bf16 %v3026_v34, %v3019_v3  ;;  %v9409_v46 = vand.u32 4294901760, %v7981_v32  ;;  %v3885_v34 = vpop.f32.mrb[4].mxu0 }
 0x16a   :  { %v8267_v43 = vpack.c.bf16 %v9408_v56, %v9406_v20  ;;  %v9410_v63 = vand.u32 4294901760, %v7986_v1  ;;  %v9411_v53 = vand.u32 4294901760, %v7815_v18  ;;  %v9413_v44 = vand.u32 4294901760, %v9412_v59  ;;  %v3886_v20 = vpop.f32.mrb[5].mxu0 }
 0x16b   :  { %v3046_v30 = vsub.f32 %v7981_v32, %v9409_v46  ;;  %v5185_v62 = vpack.c.bf16 %v3152_v31, %v3145_v35  ;;  %v3159_v58 = vand.u32 4294901760, %v3158_v10  ;;  %v3166_v3 = vand.u32 4294901760, %v3165_v39  ;;  %v9416_v46 = vld [vmem:[#allocation61_spill] sm:$0xff]  ;;  %5184 = vmatpush3.bf16.msra.mxu1 %v5183_v60  ;;  %v9418_v10 = vld [vmem:[#allocation67_spill] sm:$0xff] }
 0x16c   :  { %v3053_v47 = vsub.f32 %v7986_v1, %v9410_v63  ;;  %v8284_v49 = vpack.c.bf16 %v9413_v44, %v9411_v53  ;;  %v9415_v56 = vand.u32 4294901760, %v9414_v57  ;;  %v9417_v32 = vand.u32 4294901760, %v9416_v46  ;;  %v3921_v1 = vpop.f32.mrb[5].mxu1  ;;  %5152 = vmatpush3.bf16.msra.mxu0 %v8267_v43  ;;  %v9420_v53 = vld [vmem:[#allocation68_spill] sm:$0xff]  ;;  %v9434_v46 = vld [vmem:[#allocation41_spill] sm:$0xff] }
 0x16d   :  { %v2936_v18 = vand.u32 4294901760, %v8270_v36  ;;  %v5187_v24 = vpack.c.bf16 %v3040_v33, %v3033_v48  ;;  %v3887_v59 = vadd.f32 %v3886_v20, %v3885_v34  ;;  %v3922_v42 = vadd.f32 %v3921_v1, %v3920_v37  ;;  %5186 = vmatprep.subr.bf16.mxu1 %v5185_v62  ;;  %v9432_v34 = vld [vmem:[#allocation31_spill] sm:$0xff]  ;;  %v9433_v37 = vld [vmem:[#allocation40_spill] sm:$0xff] }
 0x16e   :  { %v8290_v63 = vpack.c.bf16 %v9417_v32, %v9415_v56  ;;  %v3047_v35 = vand.u32 4294901760, %v3046_v30  ;;  %v3054_v31 = vand.u32 4294901760, %v3053_v47  ;;  %5154 = vmatprep.subr.bf16.mxu0 %v8284_v49  ;;  %v9419_v39 = vand.u32 4294901760, %v9418_v10 }
 0x16f   :  { %v9421_v44 = vand.u32 4294901760, %v9420_v53  ;;  %v5189_v32 = vpack.c.bf16 %v3166_v3, %v3159_v58  ;;  %v1001_v56 = vadd.f32 %v3887_v59, %v8105_v28  ;;  %v2937_v48 = vsub.f32 %v8270_v36, %v2936_v18  ;;  %5188 = vmatpush3.bf16.msra.mxu1 %v5187_v24  ;;  %v9435_v59 = vld [vmem:[#allocation65_spill] sm:$0xff] }
 0x170   :  { %5156 = vmatpush3.bf16.msra.mxu0 %v8290_v63  ;;  %v9422_v33 = vand.u32 4294901760, %v7895_v45  ;;  %v9423_v60 = vand.u32 4294901760, %v7900_v15  ;;  %v5191_v47 = vpack.c.bf16 %v3054_v31, %v3047_v35  ;;  %v5193_v28 = vpack.c.bf16 %v7564_v11, %v7559_v23  ;;  %v9426_v15 = vld [vmem:[#allocation56_spill] sm:$0xff] }
 0x171   :  { %v8299_v57 = vpack.c.bf16 %v9421_v44, %v9419_v39  ;;  %v1105_v1 = vadd.f32 %v3922_v42, %v1001_v56  ;;  %5190 = vmatprep.subr.bf16.mxu1 %v5189_v32  ;;  %v2938_v62 = vand.u32 4294901760, %v2937_v48  ;;  %v5195_v58 = vpack.c.bf16 %v9320_v9, %v7577_v4  ;;  %v9437_v48 = vld [vmem:[#allocation59_spill] sm:$0xff] }
 0x172   :  { %v8310_v30 = vpack.c.bf16 %v9423_v60, %v9422_v33  ;;  %v5197_v45 = vpack.c.bf16 %v7605_v41, %v9324_v54  ;;  %v5199_v23 = vpack.c.bf16 %v7621_v55, %v7616_v6  ;;  %v5201_v4 = vpack.c.bf16 %v7648_v26, %v7629_v21  ;;  %v9425_v41 = vld [vmem:[#allocation54_spill] sm:$0xff]  ;;  %v9430_v26 = vld [vmem:[#allocation28_spill] sm:$0xff] }
 0x173   :  { %5158 = vmatprep.subr.bf16.mxu0 %v8299_v57  ;;  %5192 = vmatpush3.bf16.msra.mxu1 %v5191_v47  ;;  %v9424_v11 = vand.u32 4294901760, %v8079_v5  ;;  %v5203_v24 = vpack.c.bf16 %v9426_v15, %v9425_v41  ;;  %v9427_v55 = vld [vmem:[#allocation18_spill] sm:$0xff]  ;;  %v5211_v20 = vpack.c.bf16 %v9433_v37, %v9432_v34  ;;  %v5213_v42 = vpack.c.bf16 %v9435_v59, %v9434_v46  ;;  %v9443_v47 = vld [vmem:[#allocation13_spill] sm:$0xff] }
 0x174   :  { %5160 = vmatpush3.bf16.msra.mxu0 %v8310_v30  ;;  %5226 = vmatprep.subr.bf16.mxu1 %v8119_v40  ;;  %v9428_v6 = vld [vmem:[#allocation58_spill] sm:$0xff]  ;;  %v5215_v35 = vpack.c.bf16 %v7888_v19, %v7870_v17  ;;  %v5219_v32 = vpack.c.bf16 %v7944_v22, %v7939_v16  ;;  %v9436_v17 = vld [vmem:[#allocation39_spill] sm:$0xff] }
 0x175   :  { %5194 = vmatprep.subr.bf16.mxu0 %v5193_v28  ;;  %v5205_v54 = vpack.c.bf16 %v9428_v6, %v9427_v55  ;;  %v9429_v21 = vld [vmem:[#allocation10_spill] sm:$0xff]  ;;  %v5221_v19 = vpack.c.bf16 %v9436_v17, %v7962_v27  ;;  %v9439_v22 = vld [vmem:[#allocation55_spill] sm:$0xff] }
 0x176   :  { %3171 = vmatmul.mubr.f32.vlgmr.msra.gmra.mrb[18].mxu1 %v8247_v25  ;;  %v5207_v9 = vpack.c.bf16 %v9430_v26, %v9429_v21  ;;  %v9438_v33 = vld [vmem:[#allocation62_spill] sm:$0xff]  ;;  %v9440_v16 = vld [vmem:[#allocation7_spill] sm:$0xff] }
 0x177   :  { %2939 = vmatmul.mubr.f32.vlgmr.msra.gmra.mrb[18].mxu0 %v2938_v62  ;;  %5228 = vmatpush3.bf16.msra.mxu1 %v8126_v12  ;;  %v5223_v60 = vpack.c.bf16 %v9438_v33, %v9437_v48  ;;  %v9441_v27 = vld [vmem:[#allocation19_spill] sm:$0xff] }
 0x178   :  { %5196 = vmatpush3.bf16.msra.mxu0 %v5195_v58  ;;  %5230 = vmatprep.subr.bf16.mxu1 %v8135_v38 }
 0x179   :  { %5198 = vmatprep.subr.bf16.mxu0 %v5197_v45  ;;  %3306 = vmatprep.mubr.f32.mxu0 %v8079_v5  ;;  %v9431_v5 = vld [vmem:[#allocation27_spill] sm:$0xff]  ;;  %v9451_v45 = vld [vmem:[#allocation32_spill] sm:$0xff] }
 0x17a   :  { %3413 = vmatprep.mubr.f32.mxu1 %v9424_v11  ;;  %v5209_v3 = vpack.c.bf16 %v9431_v5, %v9366_v7  ;;  %v5217_v7 = vpack.c.bf16 %v7927_v2, %v7922_v8  ;;  %v9455_v11 = vld [vmem:[#allocation71_spill] sm:$0xff] }
 0x17b   :  { %5232 = vmatpush3.bf16.msra.mxu1 %v8156_v29  ;;  %v3990_v10 = vpop.f32.mrb[6].mxu1 }
 0x17c   :  { %5200 = vmatpush3.bf16.msra.mxu0 %v5199_v23  ;;  %5234 = vmatprep.subr.bf16.mxu1 %v8164_v61  ;;  %v3955_v31 = vpop.f32.mrb[6].mxu0  ;;  %v3991_v53 = vpop.f32.mrb[7].mxu1  ;;  %v9452_v23 = vld [vmem:[#allocation64_spill] sm:$0xff] }
 0x17d   :  { %5202 = vmatprep.subr.bf16.mxu0 %v5201_v4  ;;  %v3956_v39 = vpop.f32.mrb[7].mxu0  ;;  %v3992_v56 = vadd.f32 %v3991_v53, %v3990_v10 }
 0x17e   :  { %v3957_v44 = vadd.f32 %v3956_v39, %v3955_v31 }
 0x17f   :  { %5236 = vmatpush3.bf16.msra.mxu1 %v8184_v50 }
 0x180   :  { %5204 = vmatpush3.bf16.msra.mxu0 %v5203_v24  ;;  %5238 = vmatprep.subr.bf16.mxu1 %v8205_v13  ;;  %v1217_v8 = vadd.f32 %v3957_v44, %v1105_v1  ;;  %v9442_v1 = vld [vmem:[#allocation72_spill] sm:$0xff] }
 0x181   :  { %5206 = vmatprep.subr.bf16.mxu0 %v5205_v54 }
 0x182   :  { %v1449_v2 = vadd.f32 %v3992_v56, %v1217_v8 }
 0x183   :  { %5240 = vmatpush3.bf16.msra.mxu1 %v8211_v0 }
 0x184   :  { %5208 = vmatpush3.bf16.msra.mxu0 %v5207_v9  ;;  %5242 = vmatprep.subr.bf16.mxu1 %v8217_v52 }
 0x185   :  { %5210 = vmatprep.subr.bf16.mxu0 %v5209_v3 }
 0x187   :  { %5244 = vmatpush3.bf16.msra.mxu1 %v8239_v14 }
 0x188   :  { %5212 = vmatpush3.bf16.msra.mxu0 %v5211_v20  ;;  %5246 = vmatprep.subr.bf16.mxu1 %v8245_v51 }
 0x189   :  { %5214 = vmatprep.subr.bf16.mxu0 %v5213_v42 }
 0x18b   :  { %5248 = vmatpush3.bf16.msra.mxu1 %v8267_v43 }
 0x18c   :  { %5216 = vmatpush3.bf16.msra.mxu0 %v5215_v35  ;;  %5250 = vmatprep.subr.bf16.mxu1 %v8284_v49 }
 0x18d   :  { %5218 = vmatprep.subr.bf16.mxu0 %v5217_v7 }
 0x18f   :  { %5252 = vmatpush3.bf16.msra.mxu1 %v8290_v63 }
 0x190   :  { %5220 = vmatpush3.bf16.msra.mxu0 %v5219_v32  ;;  %5254 = vmatprep.subr.bf16.mxu1 %v8299_v57 }
 0x191   :  { %5222 = vmatprep.subr.bf16.mxu0 %v5221_v19 }
 0x193   :  { %5256 = vmatpush3.bf16.msra.mxu1 %v8310_v30 }
 0x194   :  { %5224 = vmatpush3.bf16.msra.mxu0 %v5223_v60  ;;  %5290 = vmatprep.subr.bf16.mxu1 %v8119_v40  ;;  %v9444_v40 = vld [vmem:[#allocation23_spill] sm:$0xff] }
 0x195   :  { %5258 = vmatprep.subr.bf16.mxu0 %v9439_v22 }
 0x196   :  { %3417 = vmatmul.mubr.f32.vlgmr.msra.gmra.mrb[20].mxu1 %v2936_v18  ;;  %v9448_v18 = vld [vmem:[#allocation70_spill] sm:$0xff] }
 0x197   :  { %3309 = vmatmul.mubr.f32.vlgmr.msra.gmra.mrb[20].mxu0 %v8270_v36  ;;  %5292 = vmatpush3.bf16.msra.mxu1 %v8126_v12  ;;  %v9445_v36 = vld [vmem:[#allocation30_spill] sm:$0xff] }
 0x198   :  { %5260 = vmatpush3.bf16.msra.mxu0 %v9440_v16  ;;  %5294 = vmatprep.subr.bf16.mxu1 %v8135_v38  ;;  %v9446_v12 = vld [vmem:[#allocation42_spill] sm:$0xff]  ;;  %v9447_v38 = vld [vmem:[#allocation63_spill] sm:$0xff] }
 0x199   :  { %5262 = vmatprep.subr.bf16.mxu0 %v9441_v27  ;;  %3583 = vmatprep.mubr.f32.mxu0 %v9442_v1 }
 0x19a   :  { %3687 = vmatprep.mubr.f32.mxu1 %v9442_v1 }
 0x19b   :  { %5296 = vmatpush3.bf16.msra.mxu1 %v8156_v29  ;;  %v9449_v29 = vld [vmem:[#allocation33_spill] sm:$0xff] }
 0x19c   :  { %5264 = vmatpush3.bf16.msra.mxu0 %v9443_v47  ;;  %5298 = vmatprep.subr.bf16.mxu1 %v8164_v61  ;;  %v9450_v61 = vld [vmem:[#allocation35_spill] sm:$0xff] }
 0x19d   :  { %5266 = vmatprep.subr.bf16.mxu0 %v9444_v40 }
 0x19f   :  { %5300 = vmatpush3.bf16.msra.mxu1 %v8184_v50  ;;  %v4060_v28 = vpop.f32.mrb[8].mxu1 }
 0x1a0   :  { %5268 = vmatpush3.bf16.msra.mxu0 %v9445_v36  ;;  %5302 = vmatprep.subr.bf16.mxu1 %v8205_v13  ;;  %v4061_v13 = vpop.f32.mrb[9].mxu1 }
 0x1a1   :  { %5270 = vmatprep.subr.bf16.mxu0 %v9446_v12 }
 0x1a3   :  { %5304 = vmatpush3.bf16.msra.mxu1 %v8211_v0  ;;  %v4062_v0 = vadd.f32 %v4061_v13, %v4060_v28 }
 0x1a4   :  { %5272 = vmatpush3.bf16.msra.mxu0 %v9447_v38  ;;  %5306 = vmatprep.subr.bf16.mxu1 %v8217_v52  ;;  %v4025_v50 = vpop.f32.mrb[8].mxu0 }
 0x1a5   :  { %5274 = vmatprep.subr.bf16.mxu0 %v9448_v18  ;;  %v4026_v62 = vpop.f32.mrb[9].mxu0 }
 0x1a6   :  { %v4027_v58 = vadd.f32 %v4026_v62, %v4025_v50 }
 0x1a7   :  { %5308 = vmatpush3.bf16.msra.mxu1 %v8239_v14  ;;  %v9453_v14 = vld [vmem:[#allocation66_spill] sm:$0xff] }
 0x1a8   :  { %5276 = vmatpush3.bf16.msra.mxu0 %v9449_v29  ;;  %5310 = vmatprep.subr.bf16.mxu1 %v8245_v51  ;;  %v1587_v52 = vadd.f32 %v4027_v58, %v1449_v2  ;;  %v9454_v51 = vld [vmem:[#allocation69_spill] sm:$0xff] }
 0x1a9   :  { %5278 = vmatprep.subr.bf16.mxu0 %v9450_v61 }
 0x1aa   :  { %v1695_v4 = vadd.f32 %v4062_v0, %v1587_v52 }
 0x1ab   :  { %5312 = vmatpush3.bf16.msra.mxu1 %v8267_v43 }
 0x1ac   :  { %5280 = vmatpush3.bf16.msra.mxu0 %v9451_v45  ;;  %5314 = vmatprep.subr.bf16.mxu1 %v8284_v49 }
 0x1ad   :  { %5282 = vmatprep.subr.bf16.mxu0 %v9452_v23 }
 0x1af   :  { %5316 = vmatpush3.bf16.msra.mxu1 %v8290_v63 }
 0x1b0   :  { %5284 = vmatpush3.bf16.msra.mxu0 %v9453_v14  ;;  %5318 = vmatprep.subr.bf16.mxu1 %v8299_v57 }
 0x1b1   :  { %5286 = vmatprep.subr.bf16.mxu0 %v9454_v51 }
 0x1b3   :  { %5320 = vmatpush3.bf16.msra.mxu1 %v8310_v30 }
 0x1b4   :  { %5288 = vmatpush3.bf16.msra.mxu0 %v9455_v11 }
 0x1b6   :  { %3689 = vmatmul.mubr.f32.vlgmr.msra.gmra.mrb[22].mxu1 %v8247_v25 }
 0x1b7   :  { %3585 = vmatmul.mubr.f32.vlgmr.msra.gmra.mrb[22].mxu0 %v8247_v25 }
 0x1c2   :  { %v4130_v49 = vpop.f32.mrb[10].mxu1 }
 0x1c3   :  { %v4131_v15 = vpop.f32.mrb[11].mxu1 }
 0x1c4   :  { %v4095_v43 = vpop.f32.mrb[10].mxu0  ;;  %v4132_v55 = vadd.f32 %v4131_v15, %v4130_v49 }
 0x1c5   :  { %v4096_v41 = vpop.f32.mrb[11].mxu0 }
 0x1c6   :  { %v4097_v24 = vadd.f32 %v4096_v41, %v4095_v43 }
 0x1c8   :  { %v1863_v6 = vadd.f32 %v4097_v24, %v1695_v4 }
 0x1ca   :  { %v1967_v63 = vadd.f32 %v4132_v55, %v1863_v6 }
 0x1e4   :  { %v4165_v54 = vpop.f32.mrb[12].mxu0  ;;  %v4200_v21 = vpop.f32.mrb[12].mxu1 }
 0x1e5   :  { %v4166_v26 = vpop.f32.mrb[13].mxu0  ;;  %v4201_v57 = vpop.f32.mrb[13].mxu1 }
 0x1e6   :  { %v4167_v9 = vadd.f32 %v4166_v26, %v4165_v54  ;;  %v4202_v5 = vadd.f32 %v4201_v57, %v4200_v21 }
 0x1e8   :  { %v2079_v3 = vadd.f32 %v4167_v9, %v1967_v63 }
 0x1ea   :  { %v2311_v30 = vadd.f32 %v4202_v5, %v2079_v3 }
 0x207   :  { %v4270_v37 = vpop.f32.mrb[14].mxu1 }
 0x208   :  { %v4271_v25 = vpop.f32.mrb[15].mxu1 }
 0x209   :  { %v4235_v34 = vpop.f32.mrb[14].mxu0  ;;  %v4272_v59 = vadd.f32 %v4271_v25, %v4270_v37 }
 0x20a   :  { %v4236_v20 = vpop.f32.mrb[15].mxu0 }
 0x20b   :  { %v4237_v46 = vadd.f32 %v4236_v20, %v4235_v34 }
 0x20d   :  { %v2449_v42 = vadd.f32 %v4237_v46, %v2311_v30 }
 0x20f   :  { %v2557_v35 = vadd.f32 %v4272_v59, %v2449_v42 }
 0x227   :  { %v4340_v31 = vpop.f32.mrb[16].mxu1 }
 0x228   :  { %v4341_v39 = vpop.f32.mrb[17].mxu1 }
 0x229   :  { %v4305_v7 = vpop.f32.mrb[16].mxu0  ;;  %v4342_v44 = vadd.f32 %v4341_v39, %v4340_v31 }
 0x22a   :  { %v4306_v10 = vpop.f32.mrb[17].mxu0 }
 0x22b   :  { %v4307_v53 = vadd.f32 %v4306_v10, %v4305_v7 }
 0x22d   :  { %v2725_v32 = vadd.f32 %v4307_v53, %v2557_v35 }
 0x22f   :  { %v2829_v56 = vadd.f32 %v4342_v44, %v2725_v32 }
 0x249   :  { %v4410_v19 = vpop.f32.mrb[18].mxu1 }
 0x24a   :  { %v4375_v17 = vpop.f32.mrb[18].mxu0  ;;  %v4411_v2 = vpop.f32.mrb[19].mxu1 }
 0x24b   :  { %v4376_v8 = vpop.f32.mrb[19].mxu0  ;;  %v4412_v33 = vadd.f32 %v4411_v2, %v4410_v19 }
 0x24c   :  { %v4377_v48 = vadd.f32 %v4376_v8, %v4375_v17 }
 0x24e   :  { %v2941_v60 = vadd.f32 %v4377_v48, %v2829_v56 }
 0x250   :  { %v3173_v22 = vadd.f32 %v4412_v33, %v2941_v60 }
 0x269   :  { %v4480_v27 = vpop.f32.mrb[20].mxu1 }
 0x26a   :  { %v4445_v16 = vpop.f32.mrb[20].mxu0  ;;  %v4481_v47 = vpop.f32.mrb[21].mxu1 }
 0x26b   :  { %v4446_v1 = vpop.f32.mrb[21].mxu0  ;;  %v4482_v36 = vadd.f32 %v4481_v47, %v4480_v27 }
 0x26c   :  { %v4447_v40 = vadd.f32 %v4446_v1, %v4445_v16 }
 0x26e   :  { %v3311_v12 = vadd.f32 %v4447_v40, %v3173_v22 }
 0x270   :  { %v3419_v38 = vadd.f32 %v4482_v36, %v3311_v12 }
 0x289   :  { %v4550_v29 = vpop.f32.mrb[22].mxu1 }
 0x28a   :  { %v4515_v18 = vpop.f32.mrb[22].mxu0  ;;  %v4551_v50 = vpop.f32.mrb[23].mxu1 }
 0x28b   :  { %v4516_v61 = vpop.f32.mrb[23].mxu0  ;;  %v4552_v62 = vadd.f32 %v4551_v50, %v4550_v29 }
 0x28c   :  { %v4517_v28 = vadd.f32 %v4516_v61, %v4515_v18 }
 0x28e   :  { %v3587_v13 = vadd.f32 %v4517_v28, %v3419_v38 }
 0x290   :  { %v3691_v58 = vadd.f32 %v4552_v62, %v3587_v13 }
 0x292   :  { %3695 = vst.msk [vmem:[#allocation2] sm:$0xff] %vm3694_vm0, %v3691_v58 }
 0x293   :  { %3700 = vsyncadd [#allocation3], 96  ;;  %s5362_s0 = smov [#allocation2]  }
 0x294   :  { %s3701_s14 = sshll.u32 %s5362_s0, 4  ;;  %s3702_s14 = int_to_ptr.vmem [resolvable:$true] %s3701_s14 }
 0x295   :  { %s5337_s15 = scalar_lea.vmem %s3702_s14, 32  ;;  %s5341_s16 = scalar_lea.vmem %s3702_s14, 128 }
 0x296   :  { %p5338_p0 = scmp.ne.s32.totalorder %s3702_s14, %s5337_s15  ;;  %p5342_p1 = scmp.lt.s32.totalorder %s3702_s14, %s3702_s14 }
 0x297   :  { %p5343_p2 = scmp.lt.s32.totalorder %s5341_s16, %s5337_s15 }
 0x299   :  { %p5344_p3 = por %p5343_p2, %p5342_p1 }
 0x29b   :  { %p5345_p4 = pnand %p5344_p3, %p5338_p0 }
 0x29d   :  { %5348 = shalt.err (!%p5345_p4)
}
 0x29e   :  { %s5349_s19 = scalar_lea.hbm %s8420_s3, 32 }
 0x29f   :  { %p5350_p5 = scmp.ne.s32.totalorder %s8420_s3, %s5349_s19  ;;  %p5353_p6 = scmp.lt.u32.totalorder %s5349_s19, %s8420_s3 }
 0x2a1   :  { %p5355_p7 = pnand %p5353_p6, %p5350_p5 }
 0x2a3   :  { %5358 = shalt.err (!%p5355_p7)
}
 0x2a4   :  { %s5363_s24 = smov 32   ;;  %s5364_s25 = smov 2  }
 0x2a5   :  { %3707 = dma.vmem_to_hbm [thread:$0]  %s3702_s14, 32, %s8420_s3, [#allocation3], %s5363_s24, %s5363_s24, %s5364_s25  }
 0x2a6   :  { %5359 = dma.done.wait [#allocation3], 128  }
 0x2a7   :  { %5360 = vsyncadd [#allocation3], 4294967168 }
 0x2a8   :  { %3711 = vsyncpa [#allocation3], 1 }

</bundles_post_ra>
